<compile_context>
chip_gen: v5e
topology: v5e:2x2
jax: 0.10.0
libtpu: 0.0.40
codegen_flags: <defaults>
</compile_context>

<pallas_src>
import jax
import jax.numpy as jnp
from jax import lax
from jax.experimental import pallas as pl
from jax.experimental.pallas import tpu as pltpu
import numpy as np


def _round_up(x, m):
    return (x + m - 1) // m * m


# ---------------------------------------------------------------------------
# Kernel
# ---------------------------------------------------------------------------
def rnn_encoder_kernel(sched_ref,                       # SMEM (2,) int32: [max_len, last_chunk]
                       len_ref, x_ref,
                       wi0_ref, wh0_ref, bi0_ref, bh0n_ref,
                       w1_ref, b1_ref, bh1n_ref,
                       out_ref,
                       h0_ref, h1_ref, gi0_ref):
    c = pl.program_id(1)
    TT, BB, Ep = x_ref.shape
    Hp = h0_ref.shape[-1]

    @pl.when(c == 0)
    def _init():
        h0_ref[...] = jnp.zeros_like(h0_ref)
        h1_ref[...] = jnp.zeros_like(h1_ref)
        out_ref[...] = jnp.zeros_like(out_ref)   # masked-sum acc, resident across c

    # Skip fully-padded tail chunks (their mask is all-zero).  Their x DMA is
    # also avoided: the x index_map clamps dead chunks to the last valid chunk,
    # so the block index is unchanged and Pallas does not re-fetch.
    @pl.when(c * TT < sched_ref[0])
    def _compute():
        # Hoisted layer-0 input projection: one bf16 GEMM for the whole chunk.
        x_chunk = x_ref[...].reshape(TT * BB, Ep)                        # bf16
        gi0_all = jnp.dot(x_chunk, wi0_ref[...],
                          preferred_element_type=jnp.float32) + bi0_ref[...]
        gi0_ref[...] = gi0_all.reshape(TT, BB, 3 * Hp).astype(gi0_ref.dtype)

        lens = len_ref[...]                      # (BB, 1) int32
        wh0 = wh0_ref[...]                       # (Hp, 3Hp) bf16
        w1 = w1_ref[...]                         # (2Hp, 4Hp) bf16
        bh0n = bh0n_ref[...]
        b1 = b1_ref[...]
        bh1n = bh1n_ref[...]

        def step_fn(s, carry):
            h0, h1, acc = carry

            # ---- layer 0 (input projection precomputed): 1 MXU issue ----
            gi0 = gi0_ref[s]                                             # (BB, 3Hp) bf16
            gh0 = jnp.dot(h0.astype(jnp.bfloat16), wh0,
                          preferred_element_type=jnp.float32)
            r0 = jax.nn.sigmoid(gi0[:, :Hp] + gh0[:, :Hp])
            z0 = jax.nn.sigmoid(gi0[:, Hp:2 * Hp] + gh0[:, Hp:2 * Hp])
            n0 = jnp.tanh(gi0[:, 2 * Hp:] + r0 * (gh0[:, 2 * Hp:] + bh0n))
            h0 = (1.0 - z0) * n0 + z0 * h0

            # ---- layer 1 (dropout=0 between layers): 1 fused MXU issue ----
            # columns of w1: [r | z | n_in | n_hid]; LHS = [h0_new, h1_old]
            lhs1 = jnp.concatenate([h0, h1], axis=-1).astype(jnp.bfloat16)
            g1 = jnp.dot(lhs1, w1, preferred_element_type=jnp.float32) + b1
            r1 = jax.nn.sigmoid(g1[:, :Hp])
            z1 = jax.nn.sigmoid(g1[:, Hp:2 * Hp])
            n1 = jnp.tanh(g1[:, 2 * Hp:3 * Hp] + r1 * (g1[:, 3 * Hp:] + bh1n))
            h1 = (1.0 - z1) * n1 + z1 * h1

            # pack_padded_sequence semantics: only valid timesteps contribute.
            mask = ((c * TT + s) < lens).astype(jnp.float32)             # (BB, 1)
            acc = acc + mask * h1
            return (h0, h1, acc)

        # Full unroll for short chunks; partial unroll for long ones to keep
        # live (BB, 3Hp) intermediates inside the 64-vreg file.
        unroll = True if TT <= 8 else 4
        h0, h1, acc = lax.fori_loop(
            0, TT, step_fn,
            (h0_ref[...], h1_ref[...], jnp.zeros((BB, Hp), jnp.float32)),
            unroll=unroll)
        h0_ref[...] = h0
        h1_ref[...] = h1
        out_ref[...] += acc


# ---------------------------------------------------------------------------
# Host-side parameter preparation (fused + lane-padded + bf16)
# ---------------------------------------------------------------------------
def _prepare_params(raw, E, H, Ep, Hp, compute_dtype=jnp.bfloat16):
    """Fold nn.GRU-layout weights (gate order r,z,n) into the kernel layout."""
    f32 = jnp.float32

    def gates_t(w):                              # (3H, in) -> three (in, H)
        return w[:H].T, w[H:2 * H].T, w[2 * H:].T

    def pad2(w, rows):
        return jnp.pad(w, ((0, rows - w.shape[0]), (0, Hp - w.shape[1])))

    def pad1(b):
        return jnp.pad(b, (0, Hp - b.shape[0]))

    # ---- layer 0: Wi (Ep, 3Hp), Wh (Hp, 3Hp), gate columns [r|z|n] ---------
    ir, iz, inn = gates_t(raw["w_ih0"])                                  # (E, H)
    wi0 = jnp.concatenate([pad2(ir, Ep), pad2(iz, Ep), pad2(inn, Ep)], axis=1)
    hr, hz, hnn = gates_t(raw["w_hh0"])                                  # (H, H)
    wh0 = jnp.concatenate([pad2(hr, Hp), pad2(hz, Hp), pad2(hnn, Hp)], axis=1)
    bi, bh = raw["b_ih0"], raw["b_hh0"]
    bi0 = jnp.concatenate([pad1(bi[:H] + bh[:H]),
                           pad1(bi[H:2 * H] + bh[H:2 * H]),
                           pad1(bi[2 * H:])]).reshape(1, 3 * Hp)
    bh0n = pad1(bh[2 * H:]).reshape(1, Hp)

    # ---- layer 1: one fused (2Hp, 4Hp) weight, columns [r | z | n_in | n_hid]
    # LHS is concat([h0_new, h1]); r/z columns sum input+hidden projections;
    # the n gate keeps its input- and hidden-side projections in separate
    # column blocks so n = tanh(gin + r*(ghn + bhn)) stays exact.
    ir, iz, inn = gates_t(raw["w_ih1"])                                  # (H, H)
    hr, hz, hnn = gates_t(raw["w_hh1"])
    zero = jnp.zeros((Hp, Hp), raw["w_ih1"].dtype)
    top = jnp.concatenate([pad2(ir, Hp), pad2(iz, Hp), pad2(inn, Hp), zero], axis=1)
    bot = jnp.concatenate([pad2(hr, Hp), pad2(hz, Hp), zero, pad2(hnn, Hp)], axis=1)
    w1 = jnp.concatenate([top, bot], axis=0)                             # (2Hp, 4Hp)
    bi, bh = raw["b_ih1"], raw["b_hh1"]
    b1 = jnp.concatenate([pad1(bi[:H] + bh[:H]),
                          pad1(bi[H:2 * H] + bh[H:2 * H]),
                          pad1(bi[2 * H:]),
                          jnp.zeros((Hp,), f32)]).reshape(1, 4 * Hp)
    bh1n = pad1(bh[2 * H:]).reshape(1, Hp)

    return dict(wi0=wi0.astype(compute_dtype), wh0=wh0.astype(compute_dtype),
                bi0=bi0.astype(f32), bh0n=bh0n.astype(f32),
                w1=w1.astype(compute_dtype), b1=b1.astype(f32),
                bh1n=bh1n.astype(f32))


def _vmem_limit_bytes(Ep, Hp, TT, BB):
    bf16, f32 = 2, 4
    weights = (bf16 * (Ep * 3 * Hp + Hp * 3 * Hp + 2 * Hp * 4 * Hp)
               + f32 * (3 * Hp + Hp + 4 * Hp + Hp))
    streamed = bf16 * TT * BB * Ep + f32 * (BB + BB * Hp)      # x chunk, lens, out
    scratch = f32 * 2 * BB * Hp + bf16 * TT * BB * 3 * Hp      # h0, h1, gi0
    need = 2 * (weights + streamed) + scratch + (4 << 20)      # double-buffer + headroom
    try:                                                       # generation-aware cap
        cap = int(getattr(pltpu.get_tpu_info(), "vmem_capacity_bytes", 64 << 20))
    except Exception:
        cap = 64 << 20
    cap = max(cap - (16 << 20), 32 << 20)                      # compiler headroom
    if need > cap:
        raise ValueError(
            f"VMEM need {need >> 20} MiB exceeds budget {cap >> 20} MiB; "
            "reduce time_chunk / batch_block.")
    return int(min(max(need, 32 << 20), cap))


# ---------------------------------------------------------------------------
# Wrapper
# ---------------------------------------------------------------------------
def rnn_encoder_forward(batch, lengths, raw_params, *, time_chunk=32, batch_block=None):
    """batch: (B, T, E) float32 (batch_first); lengths: (B,) int.  Returns (B, 1, H//2)."""
    B, T, E = batch.shape
    H = raw_params["w_hh0"].shape[1]
    assert H % 2 == 0, "MaxPool1d(2,2) needs an even hidden size"
    Ep = _round_up(E, 128)     # lane-align embedding dim
    Hp = _round_up(H, 128)     # lane-align hidden dim (padded lanes stay exactly 0)

    TT = int(min(time_chunk, T))
    if batch_block is None:
        # sublane multiple of 8, capped at 128 MXU LHS rows.
        # TODO(synk): on v7x prefer BB <= ceil(B/2) (rounded to 8) so both TCs get work.
        BB = min(_round_up(B, 8), 128)
    else:
        BB = _round_up(int(batch_block), 8)

    n_b = pl.cdiv(B, BB)
    n_c = pl.cdiv(T, TT)
    B_pad = n_b * BB
    T_pad = n_c * TT

    params = _prepare_params(raw_params, E, H, Ep, Hp)

    # Time-major bf16 input, zero-padded to (T_pad, B_pad, Ep).
    x_tm = jnp.transpose(batch, (1, 0, 2))
    x_tm = jnp.pad(x_tm, ((0, T_pad - T), (0, B_pad - B), (0, Ep - E)))
    x_tm = x_tm.astype(jnp.bfloat16)

    lengths = lengths.astype(jnp.int32)
    lens2d = jnp.pad(lengths, (0, B_pad - B)).reshape(B_pad, 1)
    max_len = jnp.max(lengths)
    last_chunk = jnp.maximum((max_len + TT - 1) // TT - 1, 0)
    sched = jnp.stack([max_len, last_chunk]).astype(jnp.int32)   # scalar prefetch

    def const_spec(shape):
        n = len(shape)
        return pl.BlockSpec(shape, lambda *_: (0,) * n)

    def x_index_map(b, c, sched_ref):
        # Clamp dead tail chunks to the last valid chunk -> their DMA is skipped
        # (unchanged block index is not re-fetched).
        return (jnp.minimum(c, sched_ref[1]), b, 0)

    acc = pl.pallas_call(
        rnn_encoder_kernel,
        out_shape=jax.ShapeDtypeStruct((B_pad, Hp), jnp.float32),
        grid_spec=pltpu.PrefetchScalarGridSpec(
            num_scalar_prefetch=1,
            grid=(n_b, n_c),
            in_specs=[
                pl.BlockSpec((BB, 1), lambda b, c, s: (b, 0)),      # lengths
                pl.BlockSpec((TT, BB, Ep), x_index_map),            # x chunk (bf16)
                const_spec((Ep, 3 * Hp)),                           # L0 Wi  (bf16)
                const_spec((Hp, 3 * Hp)),                           # L0 Wh  (bf16)
                const_spec((1, 3 * Hp)),                            # L0 bias [r|z|n]
                const_spec((1, Hp)),                                # L0 hidden n bias
                const_spec((2 * Hp, 4 * Hp)),                       # L1 fused W (bf16)
                const_spec((1, 4 * Hp)),                            # L1 bias
                const_spec((1, Hp)),                                # L1 hidden n bias
            ],
            out_specs=pl.BlockSpec((BB, Hp), lambda b, c, s: (b, 0)),
            scratch_shapes=[
                pltpu.VMEM((BB, Hp), jnp.float32),                  # h0
                pltpu.VMEM((BB, Hp), jnp.float32),                  # h1
                pltpu.VMEM((TT, BB, 3 * Hp), jnp.bfloat16),         # hoisted x@Wi0
            ],
        ),
        compiler_params=pltpu.CompilerParams(
            dimension_semantics=("parallel", "arbitrary"),          # batch ||, time serial
            vmem_limit_bytes=_vmem_limit_bytes(Ep, Hp, TT, BB)),
    )(sched, lens2d, x_tm,
      params["wi0"], params["wh0"], params["bi0"], params["bh0n"],
      params["w1"], params["b1"], params["bh1n"])

    # Epilogue (cheap, lane-friendly in XLA): masked mean + MaxPool1d(2, 2).
    acc = acc[:B, :H]
    denom = jnp.maximum(lengths, 1).astype(jnp.float32)[:, None]   # guard len==0
    mean = acc / denom
    pooled = mean.reshape(B, H // 2, 2).max(axis=-1)               # MaxPool1d(2,2)
    return pooled[:, None, :]                                      # (B, 1, H//2)


# ---------------------------------------------------------------------------
# Deterministic parameter init (nn.GRU layout: weight_ih_l{k} (3H, in),
# weight_hh_l{k} (3H, H), biases (3H,), gate order r, z, n).
# ---------------------------------------------------------------------------
def init_params(key, E, H):
    bound = 1.0 / np.sqrt(H)
    keys = jax.random.split(key, 8)

    def u(k, shape):
        return jax.random.uniform(k, shape, jnp.float32, -bound, bound)

    return dict(
        w_ih0=u(keys[0], (3 * H, E)), w_hh0=u(keys[1], (3 * H, H)),
        b_ih0=u(keys[2], (3 * H,)), b_hh0=u(keys[3], (3 * H,)),
        w_ih1=u(keys[4], (3 * H, H)), w_hh1=u(keys[5], (3 * H, H)),
        b_ih1=u(keys[6], (3 * H,)), b_hh1=u(keys[7], (3 * H,)),
    )


# ---------------------------------------------------------------------------
# Pure-JAX reference (same bf16-weight math, unfused) for correctness checks.
# ---------------------------------------------------------------------------
def ref_forward(batch, lengths, raw, compute_dtype=jnp.bfloat16):
    B, T, E = batch.shape
    H = raw["w_hh0"].shape[1]

    wi0 = raw["w_ih0"].T.astype(compute_dtype)
    wh0 = raw["w_hh0"].T.astype(compute_dtype)
    wi1 = raw["w_ih1"].T.astype(compute_dtype)
    wh1 = raw["w_hh1"].T.astype(compute_dtype)

    def cell(x_t, h, wi, wh, bi, bh):
        gi = jnp.dot(x_t.astype(compute_dtype), wi,
                     preferred_element_type=jnp.float32) + bi
        gh = jnp.dot(h.astype(compute_dtype), wh,
                     preferred_element_type=jnp.float32)
        r = jax.nn.sigmoid(gi[:, :H] + gh[:, :H] + bh[:H])
        z = jax.nn.sigmoid(gi[:, H:2 * H] + gh[:, H:2 * H] + bh[H:2 * H])
        n = jnp.tanh(gi[:, 2 * H:] + r * (gh[:, 2 * H:] + bh[2 * H:]))
        return (1.0 - z) * n + z * h

    def step(carry, inp):
        h0, h1, acc = carry
        x_t, t = inp
        h0 = cell(x_t, h0, wi0, wh0, raw["b_ih0"], raw["b_hh0"])
        h1 = cell(h0, h1, wi1, wh1, raw["b_ih1"], raw["b_hh1"])
        mask = (t < lengths).astype(jnp.float32)[:, None]
        return (h0, h1, acc + mask * h1), None

    init = tuple(jnp.zeros((B, H), jnp.float32) for _ in range(3))
    xs = (jnp.transpose(batch, (1, 0, 2)), jnp.arange(T, dtype=jnp.int32))
    (_, _, acc), _ = lax.scan(step, init, xs)
    mean = acc / jnp.maximum(lengths, 1).astype(jnp.float32)[:, None]
    pooled = mean.reshape(B, H // 2, 2).max(axis=-1)
    return pooled[:, None, :]


if __name__ == "__main__":
    # embedding_dim=E, hidden_size=H, 2 GRU layers, batch_first, query=None path
    B, T, E, H = 4, 8, 16, 32
    key = jax.random.PRNGKey(0)
    k_x, k_p = jax.random.split(key)

    batch = jax.random.normal(k_x, (B, T, E), dtype=jnp.float32)
    lengths = jnp.array([8, 5, 3, 6], dtype=jnp.int32)
    raw_params = init_params(k_p, E, H)

    out = rnn_encoder_forward(batch, lengths, raw_params, time_chunk=4)
    out = jax.block_until_ready(out)
    assert out.shape == (B, 1, H // 2), out.shape

    ref = jax.block_until_ready(ref_forward(batch, lengths, raw_params))
    # bf16 MXU math in both paths; only the bf16 gi0 staging differs.
    np.testing.assert_allclose(np.asarray(out), np.asarray(ref), rtol=2e-2, atol=2e-3)

    print("KERNEL_OK")
</pallas_src>

<mosaic_0001>
module attributes {stable_mosaic.version = 11 : i64} {
  func.func @rnn_encoder_kernel(%arg0: i32, %arg1: i32, %arg2: memref<2xi32, #tpu.memory_space<smem>>, %arg3: memref<8x1xi32, #tpu.memory_space<vmem>>, %arg4: memref<4x8x128xbf16, #tpu.memory_space<vmem>>, %arg5: memref<128x384xbf16, #tpu.memory_space<vmem>>, %arg6: memref<128x384xbf16, #tpu.memory_space<vmem>>, %arg7: memref<1x384xf32, #tpu.memory_space<vmem>>, %arg8: memref<1x128xf32, #tpu.memory_space<vmem>>, %arg9: memref<256x512xbf16, #tpu.memory_space<vmem>>, %arg10: memref<1x512xf32, #tpu.memory_space<vmem>>, %arg11: memref<1x128xf32, #tpu.memory_space<vmem>>, %arg12: memref<8x128xf32, #tpu.memory_space<vmem>>, %arg13: memref<8x128xf32, #tpu.memory_space<vmem>>, %arg14: memref<8x128xf32, #tpu.memory_space<vmem>>, %arg15: memref<4x8x384xbf16, #tpu.memory_space<vmem>>) attributes {dimension_semantics = [#tpu.dimension_semantics<parallel>, #tpu.dimension_semantics<arbitrary>], iteration_bounds = array<i64: 1, 2>, scalar_prefetch = 1 : i64, scratch_operands = 3 : i64, tpu.core_type = #tpu.core_type<tc>, window_params = [{transform_indices = @transform_0, window_bounds = array<i64: 8, 1>}, {transform_indices = @transform_1, window_bounds = array<i64: 4, 8, 128>}, {pipeline_mode = #tpu.pipeline_mode<synchronous>, transform_indices = @transform_2, window_bounds = array<i64: 128, 384>}, {pipeline_mode = #tpu.pipeline_mode<synchronous>, transform_indices = @transform_3, window_bounds = array<i64: 128, 384>}, {pipeline_mode = #tpu.pipeline_mode<synchronous>, transform_indices = @transform_4, window_bounds = array<i64: 1, 384>}, {pipeline_mode = #tpu.pipeline_mode<synchronous>, transform_indices = @transform_5, window_bounds = array<i64: 1, 128>}, {pipeline_mode = #tpu.pipeline_mode<synchronous>, transform_indices = @transform_6, window_bounds = array<i64: 256, 512>}, {pipeline_mode = #tpu.pipeline_mode<synchronous>, transform_indices = @transform_7, window_bounds = array<i64: 1, 512>}, {pipeline_mode = #tpu.pipeline_mode<synchronous>, transform_indices = @transform_8, window_bounds = array<i64: 1, 128>}, {transform_indices = @transform_9, window_bounds = array<i64: 8, 128>}]} {
    %c0_i32 = arith.constant 0 : i32
    %0 = arith.cmpi eq, %arg1, %c0_i32 : i32
    %1 = arith.extui %0 : i1 to i32
    %c0_i32_0 = arith.constant 0 : i32
    %2 = arith.cmpi ne, %1, %c0_i32_0 : i32
    scf.if %2 {
      %cst = arith.constant 0.000000e+00 : f32
      %8 = vector.broadcast %cst : f32 to vector<8x128xf32>
      %c0_2 = arith.constant 0 : index
      %c0_3 = arith.constant 0 : index
      %9 = vector.load %arg13[%c0_2, %c0_3] : memref<8x128xf32, #tpu.memory_space<vmem>>, vector<8x128xf32>
      tpu.vector_store %arg13[%c0_2, %c0_3], %8 {strides = array<i32>} : memref<8x128xf32, #tpu.memory_space<vmem>>, vector<8x128xf32>,
      %cst_4 = arith.constant 0.000000e+00 : f32
      %10 = vector.broadcast %cst_4 : f32 to vector<8x128xf32>
      %c0_5 = arith.constant 0 : index
      %c0_6 = arith.constant 0 : index
      %11 = vector.load %arg14[%c0_5, %c0_6] : memref<8x128xf32, #tpu.memory_space<vmem>>, vector<8x128xf32>
      tpu.vector_store %arg14[%c0_5, %c0_6], %10 {strides = array<i32>} : memref<8x128xf32, #tpu.memory_space<vmem>>, vector<8x128xf32>,
      %cst_7 = arith.constant 0.000000e+00 : f32
      %12 = vector.broadcast %cst_7 : f32 to vector<8x128xf32>
      %c0_8 = arith.constant 0 : index
      %c0_9 = arith.constant 0 : index
      %13 = vector.load %arg12[%c0_8, %c0_9] : memref<8x128xf32, #tpu.memory_space<vmem>>, vector<8x128xf32>
      tpu.vector_store %arg12[%c0_8, %c0_9], %12 {strides = array<i32>} : memref<8x128xf32, #tpu.memory_space<vmem>>, vector<8x128xf32>,
    } else {
    }
    %c4_i32 = arith.constant 4 : i32
    %3 = arith.muli %arg1, %c4_i32 : i32
    %c0 = arith.constant 0 : index
    %4 = memref.load %arg2[%c0] : memref<2xi32, #tpu.memory_space<smem>>
    %5 = arith.cmpi slt, %3, %4 : i32
    %6 = arith.extui %5 : i1 to i32
    %c0_i32_1 = arith.constant 0 : i32
    %7 = arith.cmpi ne, %6, %c0_i32_1 : i32
    scf.if %7 {
      %c0_2 = arith.constant 0 : index
      %c0_3 = arith.constant 0 : index
      %c0_4 = arith.constant 0 : index
      %8 = vector.load %arg4[%c0_2, %c0_3, %c0_4] : memref<4x8x128xbf16, #tpu.memory_space<vmem>>, vector<4x8x128xbf16>
      %9 = vector.shape_cast %8 : vector<4x8x128xbf16> to vector<32x128xbf16>
      %c0_5 = arith.constant 0 : index
      %c0_6 = arith.constant 0 : index
      %10 = vector.load %arg5[%c0_5, %c0_6] : memref<128x384xbf16, #tpu.memory_space<vmem>>, vector<128x384xbf16>
      %cst = arith.constant dense<0.000000e+00> : vector<32x384xf32>
      %11 = tpu.matmul %9, %10, %cst {dimension_numbers = #tpu.dot_dimension_numbers<[1], [0], [0], [1], [0, 0, 1, 1], [], []>} : vector<32x128xbf16>, vector<128x384xbf16>, vector<32x384xf32> -> vector<32x384xf32>
      %c0_7 = arith.constant 0 : index
      %c0_8 = arith.constant 0 : index
      %12 = vector.load %arg7[%c0_7, %c0_8] : memref<1x384xf32, #tpu.memory_space<vmem>>, vector<1x384xf32>
      %13 = vector.broadcast %12 : vector<1x384xf32> to vector<32x384xf32>
      %14 = arith.addf %11, %13 : vector<32x384xf32>
      %15 = vector.shape_cast %14 : vector<32x384xf32> to vector<4x8x384xf32>
      %16 = arith.truncf %15 : vector<4x8x384xf32> to vector<4x8x384xbf16>
      %c0_9 = arith.constant 0 : index
      %c0_10 = arith.constant 0 : index
      %c0_11 = arith.constant 0 : index
      %17 = vector.load %arg15[%c0_9, %c0_10, %c0_11] : memref<4x8x384xbf16, #tpu.memory_space<vmem>>, vector<4x8x384xbf16>
      tpu.vector_store %arg15[%c0_9, %c0_10, %c0_11], %16 {strides = array<i32>} : memref<4x8x384xbf16, #tpu.memory_space<vmem>>, vector<4x8x384xbf16>,
      %c0_12 = arith.constant 0 : index
      %c0_13 = arith.constant 0 : index
      %18 = vector.load %arg3[%c0_12, %c0_13] : memref<8x1xi32, #tpu.memory_space<vmem>>, vector<8x1xi32>
      %c0_14 = arith.constant 0 : index
      %c0_15 = arith.constant 0 : index
      %19 = vector.load %arg6[%c0_14, %c0_15] : memref<128x384xbf16, #tpu.memory_space<vmem>>, vector<128x384xbf16>
      %c0_16 = arith.constant 0 : index
      %c0_17 = arith.constant 0 : index
      %20 = vector.load %arg9[%c0_16, %c0_17] : memref<256x512xbf16, #tpu.memory_space<vmem>>, vector<256x512xbf16>
      %c0_18 = arith.constant 0 : index
      %c0_19 = arith.constant 0 : index
      %21 = vector.load %arg8[%c0_18, %c0_19] : memref<1x128xf32, #tpu.memory_space<vmem>>, vector<1x128xf32>
      %c0_20 = arith.constant 0 : index
      %c0_21 = arith.constant 0 : index
      %22 = vector.load %arg10[%c0_20, %c0_21] : memref<1x512xf32, #tpu.memory_space<vmem>>, vector<1x512xf32>
      %c0_22 = arith.constant 0 : index
      %c0_23 = arith.constant 0 : index
      %23 = vector.load %arg11[%c0_22, %c0_23] : memref<1x128xf32, #tpu.memory_space<vmem>>, vector<1x128xf32>
      %c0_24 = arith.constant 0 : index
      %c0_25 = arith.constant 0 : index
      %24 = vector.load %arg13[%c0_24, %c0_25] : memref<8x128xf32, #tpu.memory_space<vmem>>, vector<8x128xf32>
      %c0_26 = arith.constant 0 : index
      %c0_27 = arith.constant 0 : index
      %25 = vector.load %arg14[%c0_26, %c0_27] : memref<8x128xf32, #tpu.memory_space<vmem>>, vector<8x128xf32>
      %cst_28 = arith.constant 0.000000e+00 : f32
      %26 = vector.broadcast %cst_28 : f32 to vector<8x128xf32>
      %c0_i32_29 = arith.constant 0 : i32
      %27 = arith.index_cast %c0_i32_29 : i32 to index
      %c0_30 = arith.constant 0 : index
      %c0_31 = arith.constant 0 : index
      %28 = vector.load %arg15[%27, %c0_30, %c0_31] : memref<4x8x384xbf16, #tpu.memory_space<vmem>>, vector<1x8x384xbf16>
      %29 = vector.shape_cast %28 : vector<1x8x384xbf16> to vector<8x384xbf16>
      %30 = arith.truncf %24 : vector<8x128xf32> to vector<8x128xbf16>
      %cst_32 = arith.constant dense<0.000000e+00> : vector<8x384xf32>
      %31 = tpu.matmul %30, %19, %cst_32 {dimension_numbers = #tpu.dot_dimension_numbers<[1], [0], [0], [1], [0, 0, 1, 1], [], []>} : vector<8x128xbf16>, vector<128x384xbf16>, vector<8x384xf32> -> vector<8x384xf32>
      %32 = vector.extract_strided_slice %29 {offsets = [0, 0], sizes = [8, 128], strides = [1, 1]} : vector<8x384xbf16> to vector<8x128xbf16>
      %33 = vector.extract_strided_slice %31 {offsets = [0, 0], sizes = [8, 128], strides = [1, 1]} : vector<8x384xf32> to vector<8x128xf32>
      %34 = arith.extf %32 : vector<8x128xbf16> to vector<8x128xf32>
      %35 = arith.addf %34, %33 : vector<8x128xf32>
      %36 = arith.negf %35 : vector<8x128xf32>
      %37 = math.exp %36 : vector<8x128xf32>
      %cst_33 = arith.constant 1.000000e+00 : f32
      %38 = vector.broadcast %cst_33 : f32 to vector<8x128xf32>
      %39 = arith.addf %38, %37 : vector<8x128xf32>
      %40 = arith.divf %38, %39 : vector<8x128xf32>
      %41 = vector.extract_strided_slice %29 {offsets = [0, 128], sizes = [8, 128], strides = [1, 1]} : vector<8x384xbf16> to vector<8x128xbf16>
      %42 = vector.extract_strided_slice %31 {offsets = [0, 128], sizes = [8, 128], strides = [1, 1]} : vector<8x384xf32> to vector<8x128xf32>
      %43 = arith.extf %41 : vector<8x128xbf16> to vector<8x128xf32>
      %44 = arith.addf %43, %42 : vector<8x128xf32>
      %45 = arith.negf %44 : vector<8x128xf32>
      %46 = math.exp %45 : vector<8x128xf32>
      %cst_34 = arith.constant 1.000000e+00 : f32
      %47 = vector.broadcast %cst_34 : f32 to vector<8x128xf32>
      %48 = arith.addf %47, %46 : vector<8x128xf32>
      %49 = arith.divf %47, %48 : vector<8x128xf32>
      %50 = vector.extract_strided_slice %29 {offsets = [0, 256], sizes = [8, 128], strides = [1, 1]} : vector<8x384xbf16> to vector<8x128xbf16>
      %51 = vector.extract_strided_slice %31 {offsets = [0, 256], sizes = [8, 128], strides = [1, 1]} : vector<8x384xf32> to vector<8x128xf32>
      %52 = vector.broadcast %21 : vector<1x128xf32> to vector<8x128xf32>
      %53 = arith.addf %51, %52 : vector<8x128xf32>
      %54 = arith.mulf %40, %53 : vector<8x128xf32>
      %55 = arith.extf %50 : vector<8x128xbf16> to vector<8x128xf32>
      %56 = arith.addf %55, %54 : vector<8x128xf32>
      %57 = math.tanh %56 : vector<8x128xf32>
      %cst_35 = arith.constant 1.000000e+00 : f32
      %58 = vector.broadcast %cst_35 : f32 to vector<8x128xf32>
      %59 = arith.subf %58, %49 : vector<8x128xf32>
      %60 = arith.mulf %59, %57 : vector<8x128xf32>
      %61 = arith.mulf %49, %24 : vector<8x128xf32>
      %62 = arith.addf %60, %61 : vector<8x128xf32>
      %63 = tpu.concatenate %62, %25 in 1 : vector<8x128xf32>, vector<8x128xf32> -> vector<8x256xf32>
      %64 = arith.truncf %63 : vector<8x256xf32> to vector<8x256xbf16>
      %cst_36 = arith.constant dense<0.000000e+00> : vector<8x512xf32>
      %65 = tpu.matmul %64, %20, %cst_36 {dimension_numbers = #tpu.dot_dimension_numbers<[1], [0], [0], [1], [0, 0, 1, 1], [], []>} : vector<8x256xbf16>, vector<256x512xbf16>, vector<8x512xf32> -> vector<8x512xf32>
      %66 = vector.broadcast %22 : vector<1x512xf32> to vector<8x512xf32>
      %67 = arith.addf %65, %66 : vector<8x512xf32>
      %68 = vector.extract_strided_slice %67 {offsets = [0, 0], sizes = [8, 128], strides = [1, 1]} : vector<8x512xf32> to vector<8x128xf32>
      %69 = arith.negf %68 : vector<8x128xf32>
      %70 = math.exp %69 : vector<8x128xf32>
      %cst_37 = arith.constant 1.000000e+00 : f32
      %71 = vector.broadcast %cst_37 : f32 to vector<8x128xf32>
      %72 = arith.addf %71, %70 : vector<8x128xf32>
      %73 = arith.divf %71, %72 : vector<8x128xf32>
      %74 = vector.extract_strided_slice %67 {offsets = [0, 128], sizes = [8, 128], strides = [1, 1]} : vector<8x512xf32> to vector<8x128xf32>
      %75 = arith.negf %74 : vector<8x128xf32>
      %76 = math.exp %75 : vector<8x128xf32>
      %cst_38 = arith.constant 1.000000e+00 : f32
      %77 = vector.broadcast %cst_38 : f32 to vector<8x128xf32>
      %78 = arith.addf %77, %76 : vector<8x128xf32>
      %79 = arith.divf %77, %78 : vector<8x128xf32>
      %80 = vector.extract_strided_slice %67 {offsets = [0, 256], sizes = [8, 128], strides = [1, 1]} : vector<8x512xf32> to vector<8x128xf32>
      %81 = vector.extract_strided_slice %67 {offsets = [0, 384], sizes = [8, 128], strides = [1, 1]} : vector<8x512xf32> to vector<8x128xf32>
      %82 = vector.broadcast %23 : vector<1x128xf32> to vector<8x128xf32>
      %83 = arith.addf %81, %82 : vector<8x128xf32>
      %84 = arith.mulf %73, %83 : vector<8x128xf32>
      %85 = arith.addf %80, %84 : vector<8x128xf32>
      %86 = math.tanh %85 : vector<8x128xf32>
      %cst_39 = arith.constant 1.000000e+00 : f32
      %87 = vector.broadcast %cst_39 : f32 to vector<8x128xf32>
      %88 = arith.subf %87, %79 : vector<8x128xf32>
      %89 = arith.mulf %88, %86 : vector<8x128xf32>
      %90 = arith.mulf %79, %25 : vector<8x128xf32>
      %91 = arith.addf %89, %90 : vector<8x128xf32>
      %c4_i32_40 = arith.constant 4 : i32
      %92 = arith.muli %arg1, %c4_i32_40 : i32
      %93 = arith.addi %92, %c0_i32_29 : i32
      %94 = vector.broadcast %93 : i32 to vector<8x1xi32>
      %95 = arith.cmpi slt, %94, %18 : vector<8x1xi32>
      %96 = arith.extui %95 : vector<8x1xi1> to vector<8x1xi32>
      %97 = arith.sitofp %96 : vector<8x1xi32> to vector<8x1xf32>
      %98 = vector.broadcast %97 : vector<8x1xf32> to vector<8x128xf32>
      %99 = arith.mulf %98, %91 : vector<8x128xf32>
      %100 = arith.addf %26, %99 : vector<8x128xf32>
      %c1_i32 = arith.constant 1 : i32
      %101 = arith.index_cast %c1_i32 : i32 to index
      %c0_41 = arith.constant 0 : index
      %c0_42 = arith.constant 0 : index
      %102 = vector.load %arg15[%101, %c0_41, %c0_42] : memref<4x8x384xbf16, #tpu.memory_space<vmem>>, vector<1x8x384xbf16>
      %103 = vector.shape_cast %102 : vector<1x8x384xbf16> to vector<8x384xbf16>
      %104 = arith.truncf %62 : vector<8x128xf32> to vector<8x128xbf16>
      %cst_43 = arith.constant dense<0.000000e+00> : vector<8x384xf32>
      %105 = tpu.matmul %104, %19, %cst_43 {dimension_numbers = #tpu.dot_dimension_numbers<[1], [0], [0], [1], [0, 0, 1, 1], [], []>} : vector<8x128xbf16>, vector<128x384xbf16>, vector<8x384xf32> -> vector<8x384xf32>
      %106 = vector.extract_strided_slice %103 {offsets = [0, 0], sizes = [8, 128], strides = [1, 1]} : vector<8x384xbf16> to vector<8x128xbf16>
      %107 = vector.extract_strided_slice %105 {offsets = [0, 0], sizes = [8, 128], strides = [1, 1]} : vector<8x384xf32> to vector<8x128xf32>
      %108 = arith.extf %106 : vector<8x128xbf16> to vector<8x128xf32>
      %109 = arith.addf %108, %107 : vector<8x128xf32>
      %110 = arith.negf %109 : vector<8x128xf32>
      %111 = math.exp %110 : vector<8x128xf32>
      %cst_44 = arith.constant 1.000000e+00 : f32
      %112 = vector.broadcast %cst_44 : f32 to vector<8x128xf32>
      %113 = arith.addf %112, %111 : vector<8x128xf32>
      %114 = arith.divf %112, %113 : vector<8x128xf32>
      %115 = vector.extract_strided_slice %103 {offsets = [0, 128], sizes = [8, 128], strides = [1, 1]} : vector<8x384xbf16> to vector<8x128xbf16>
      %116 = vector.extract_strided_slice %105 {offsets = [0, 128], sizes = [8, 128], strides = [1, 1]} : vector<8x384xf32> to vector<8x128xf32>
      %117 = arith.extf %115 : vector<8x128xbf16> to vector<8x128xf32>
      %118 = arith.addf %117, %116 : vector<8x128xf32>
      %119 = arith.negf %118 : vector<8x128xf32>
      %120 = math.exp %119 : vector<8x128xf32>
      %cst_45 = arith.constant 1.000000e+00 : f32
      %121 = vector.broadcast %cst_45 : f32 to vector<8x128xf32>
      %122 = arith.addf %121, %120 : vector<8x128xf32>
      %123 = arith.divf %121, %122 : vector<8x128xf32>
      %124 = vector.extract_strided_slice %103 {offsets = [0, 256], sizes = [8, 128], strides = [1, 1]} : vector<8x384xbf16> to vector<8x128xbf16>
      %125 = vector.extract_strided_slice %105 {offsets = [0, 256], sizes = [8, 128], strides = [1, 1]} : vector<8x384xf32> to vector<8x128xf32>
      %126 = vector.broadcast %21 : vector<1x128xf32> to vector<8x128xf32>
      %127 = arith.addf %125, %126 : vector<8x128xf32>
      %128 = arith.mulf %114, %127 : vector<8x128xf32>
      %129 = arith.extf %124 : vector<8x128xbf16> to vector<8x128xf32>
      %130 = arith.addf %129, %128 : vector<8x128xf32>
      %131 = math.tanh %130 : vector<8x128xf32>
      %cst_46 = arith.constant 1.000000e+00 : f32
      %132 = vector.broadcast %cst_46 : f32 to vector<8x128xf32>
      %133 = arith.subf %132, %123 : vector<8x128xf32>
      %134 = arith.mulf %133, %131 : vector<8x128xf32>
      %135 = arith.mulf %123, %62 : vector<8x128xf32>
      %136 = arith.addf %134, %135 : vector<8x128xf32>
      %137 = tpu.concatenate %136, %91 in 1 : vector<8x128xf32>, vector<8x128xf32> -> vector<8x256xf32>
      %138 = arith.truncf %137 : vector<8x256xf32> to vector<8x256xbf16>
      %cst_47 = arith.constant dense<0.000000e+00> : vector<8x512xf32>
      %139 = tpu.matmul %138, %20, %cst_47 {dimension_numbers = #tpu.dot_dimension_numbers<[1], [0], [0], [1], [0, 0, 1, 1], [], []>} : vector<8x256xbf16>, vector<256x512xbf16>, vector<8x512xf32> -> vector<8x512xf32>
      %140 = vector.broadcast %22 : vector<1x512xf32> to vector<8x512xf32>
      %141 = arith.addf %139, %140 : vector<8x512xf32>
      %142 = vector.extract_strided_slice %141 {offsets = [0, 0], sizes = [8, 128], strides = [1, 1]} : vector<8x512xf32> to vector<8x128xf32>
      %143 = arith.negf %142 : vector<8x128xf32>
      %144 = math.exp %143 : vector<8x128xf32>
      %cst_48 = arith.constant 1.000000e+00 : f32
      %145 = vector.broadcast %cst_48 : f32 to vector<8x128xf32>
      %146 = arith.addf %145, %144 : vector<8x128xf32>
      %147 = arith.divf %145, %146 : vector<8x128xf32>
      %148 = vector.extract_strided_slice %141 {offsets = [0, 128], sizes = [8, 128], strides = [1, 1]} : vector<8x512xf32> to vector<8x128xf32>
      %149 = arith.negf %148 : vector<8x128xf32>
      %150 = math.exp %149 : vector<8x128xf32>
      %cst_49 = arith.constant 1.000000e+00 : f32
      %151 = vector.broadcast %cst_49 : f32 to vector<8x128xf32>
      %152 = arith.addf %151, %150 : vector<8x128xf32>
      %153 = arith.divf %151, %152 : vector<8x128xf32>
      %154 = vector.extract_strided_slice %141 {offsets = [0, 256], sizes = [8, 128], strides = [1, 1]} : vector<8x512xf32> to vector<8x128xf32>
      %155 = vector.extract_strided_slice %141 {offsets = [0, 384], sizes = [8, 128], strides = [1, 1]} : vector<8x512xf32> to vector<8x128xf32>
      %156 = vector.broadcast %23 : vector<1x128xf32> to vector<8x128xf32>
      %157 = arith.addf %155, %156 : vector<8x128xf32>
      %158 = arith.mulf %147, %157 : vector<8x128xf32>
      %159 = arith.addf %154, %158 : vector<8x128xf32>
      %160 = math.tanh %159 : vector<8x128xf32>
      %cst_50 = arith.constant 1.000000e+00 : f32
      %161 = vector.broadcast %cst_50 : f32 to vector<8x128xf32>
      %162 = arith.subf %161, %153 : vector<8x128xf32>
      %163 = arith.mulf %162, %160 : vector<8x128xf32>
      %164 = arith.mulf %153, %91 : vector<8x128xf32>
      %165 = arith.addf %163, %164 : vector<8x128xf32>
      %c4_i32_51 = arith.constant 4 : i32
      %166 = arith.muli %arg1, %c4_i32_51 : i32
      %167 = arith.addi %166, %c1_i32 : i32
      %168 = vector.broadcast %167 : i32 to vector<8x1xi32>
      %169 = arith.cmpi slt, %168, %18 : vector<8x1xi32>
      %170 = arith.extui %169 : vector<8x1xi1> to vector<8x1xi32>
      %171 = arith.sitofp %170 : vector<8x1xi32> to vector<8x1xf32>
      %172 = vector.broadcast %171 : vector<8x1xf32> to vector<8x128xf32>
      %173 = arith.mulf %172, %165 : vector<8x128xf32>
      %174 = arith.addf %100, %173 : vector<8x128xf32>
      %c2_i32 = arith.constant 2 : i32
      %175 = arith.index_cast %c2_i32 : i32 to index
      %c0_52 = arith.constant 0 : index
      %c0_53 = arith.constant 0 : index
      %176 = vector.load %arg15[%175, %c0_52, %c0_53] : memref<4x8x384xbf16, #tpu.memory_space<vmem>>, vector<1x8x384xbf16>
      %177 = vector.shape_cast %176 : vector<1x8x384xbf16> to vector<8x384xbf16>
      %178 = arith.truncf %136 : vector<8x128xf32> to vector<8x128xbf16>
      %cst_54 = arith.constant dense<0.000000e+00> : vector<8x384xf32>
      %179 = tpu.matmul %178, %19, %cst_54 {dimension_numbers = #tpu.dot_dimension_numbers<[1], [0], [0], [1], [0, 0, 1, 1], [], []>} : vector<8x128xbf16>, vector<128x384xbf16>, vector<8x384xf32> -> vector<8x384xf32>
      %180 = vector.extract_strided_slice %177 {offsets = [0, 0], sizes = [8, 128], strides = [1, 1]} : vector<8x384xbf16> to vector<8x128xbf16>
      %181 = vector.extract_strided_slice %179 {offsets = [0, 0], sizes = [8, 128], strides = [1, 1]} : vector<8x384xf32> to vector<8x128xf32>
      %182 = arith.extf %180 : vector<8x128xbf16> to vector<8x128xf32>
      %183 = arith.addf %182, %181 : vector<8x128xf32>
      %184 = arith.negf %183 : vector<8x128xf32>
      %185 = math.exp %184 : vector<8x128xf32>
      %cst_55 = arith.constant 1.000000e+00 : f32
      %186 = vector.broadcast %cst_55 : f32 to vector<8x128xf32>
      %187 = arith.addf %186, %185 : vector<8x128xf32>
      %188 = arith.divf %186, %187 : vector<8x128xf32>
      %189 = vector.extract_strided_slice %177 {offsets = [0, 128], sizes = [8, 128], strides = [1, 1]} : vector<8x384xbf16> to vector<8x128xbf16>
      %190 = vector.extract_strided_slice %179 {offsets = [0, 128], sizes = [8, 128], strides = [1, 1]} : vector<8x384xf32> to vector<8x128xf32>
      %191 = arith.extf %189 : vector<8x128xbf16> to vector<8x128xf32>
      %192 = arith.addf %191, %190 : vector<8x128xf32>
      %193 = arith.negf %192 : vector<8x128xf32>
      %194 = math.exp %193 : vector<8x128xf32>
      %cst_56 = arith.constant 1.000000e+00 : f32
      %195 = vector.broadcast %cst_56 : f32 to vector<8x128xf32>
      %196 = arith.addf %195, %194 : vector<8x128xf32>
      %197 = arith.divf %195, %196 : vector<8x128xf32>
      %198 = vector.extract_strided_slice %177 {offsets = [0, 256], sizes = [8, 128], strides = [1, 1]} : vector<8x384xbf16> to vector<8x128xbf16>
      %199 = vector.extract_strided_slice %179 {offsets = [0, 256], sizes = [8, 128], strides = [1, 1]} : vector<8x384xf32> to vector<8x128xf32>
      %200 = vector.broadcast %21 : vector<1x128xf32> to vector<8x128xf32>
      %201 = arith.addf %199, %200 : vector<8x128xf32>
      %202 = arith.mulf %188, %201 : vector<8x128xf32>
      %203 = arith.extf %198 : vector<8x128xbf16> to vector<8x128xf32>
      %204 = arith.addf %203, %202 : vector<8x128xf32>
      %205 = math.tanh %204 : vector<8x128xf32>
      %cst_57 = arith.constant 1.000000e+00 : f32
      %206 = vector.broadcast %cst_57 : f32 to vector<8x128xf32>
      %207 = arith.subf %206, %197 : vector<8x128xf32>
      %208 = arith.mulf %207, %205 : vector<8x128xf32>
      %209 = arith.mulf %197, %136 : vector<8x128xf32>
      %210 = arith.addf %208, %209 : vector<8x128xf32>
      %211 = tpu.concatenate %210, %165 in 1 : vector<8x128xf32>, vector<8x128xf32> -> vector<8x256xf32>
      %212 = arith.truncf %211 : vector<8x256xf32> to vector<8x256xbf16>
      %cst_58 = arith.constant dense<0.000000e+00> : vector<8x512xf32>
      %213 = tpu.matmul %212, %20, %cst_58 {dimension_numbers = #tpu.dot_dimension_numbers<[1], [0], [0], [1], [0, 0, 1, 1], [], []>} : vector<8x256xbf16>, vector<256x512xbf16>, vector<8x512xf32> -> vector<8x512xf32>
      %214 = vector.broadcast %22 : vector<1x512xf32> to vector<8x512xf32>
      %215 = arith.addf %213, %214 : vector<8x512xf32>
      %216 = vector.extract_strided_slice %215 {offsets = [0, 0], sizes = [8, 128], strides = [1, 1]} : vector<8x512xf32> to vector<8x128xf32>
      %217 = arith.negf %216 : vector<8x128xf32>
      %218 = math.exp %217 : vector<8x128xf32>
      %cst_59 = arith.constant 1.000000e+00 : f32
      %219 = vector.broadcast %cst_59 : f32 to vector<8x128xf32>
      %220 = arith.addf %219, %218 : vector<8x128xf32>
      %221 = arith.divf %219, %220 : vector<8x128xf32>
      %222 = vector.extract_strided_slice %215 {offsets = [0, 128], sizes = [8, 128], strides = [1, 1]} : vector<8x512xf32> to vector<8x128xf32>
      %223 = arith.negf %222 : vector<8x128xf32>
      %224 = math.exp %223 : vector<8x128xf32>
      %cst_60 = arith.constant 1.000000e+00 : f32
      %225 = vector.broadcast %cst_60 : f32 to vector<8x128xf32>
      %226 = arith.addf %225, %224 : vector<8x128xf32>
      %227 = arith.divf %225, %226 : vector<8x128xf32>
      %228 = vector.extract_strided_slice %215 {offsets = [0, 256], sizes = [8, 128], strides = [1, 1]} : vector<8x512xf32> to vector<8x128xf32>
      %229 = vector.extract_strided_slice %215 {offsets = [0, 384], sizes = [8, 128], strides = [1, 1]} : vector<8x512xf32> to vector<8x128xf32>
      %230 = vector.broadcast %23 : vector<1x128xf32> to vector<8x128xf32>
      %231 = arith.addf %229, %230 : vector<8x128xf32>
      %232 = arith.mulf %221, %231 : vector<8x128xf32>
      %233 = arith.addf %228, %232 : vector<8x128xf32>
      %234 = math.tanh %233 : vector<8x128xf32>
      %cst_61 = arith.constant 1.000000e+00 : f32
      %235 = vector.broadcast %cst_61 : f32 to vector<8x128xf32>
      %236 = arith.subf %235, %227 : vector<8x128xf32>
      %237 = arith.mulf %236, %234 : vector<8x128xf32>
      %238 = arith.mulf %227, %165 : vector<8x128xf32>
      %239 = arith.addf %237, %238 : vector<8x128xf32>
      %c4_i32_62 = arith.constant 4 : i32
      %240 = arith.muli %arg1, %c4_i32_62 : i32
      %241 = arith.addi %240, %c2_i32 : i32
      %242 = vector.broadcast %241 : i32 to vector<8x1xi32>
      %243 = arith.cmpi slt, %242, %18 : vector<8x1xi32>
      %244 = arith.extui %243 : vector<8x1xi1> to vector<8x1xi32>
      %245 = arith.sitofp %244 : vector<8x1xi32> to vector<8x1xf32>
      %246 = vector.broadcast %245 : vector<8x1xf32> to vector<8x128xf32>
      %247 = arith.mulf %246, %239 : vector<8x128xf32>
      %248 = arith.addf %174, %247 : vector<8x128xf32>
      %c3_i32 = arith.constant 3 : i32
      %249 = arith.index_cast %c3_i32 : i32 to index
      %c0_63 = arith.constant 0 : index
      %c0_64 = arith.constant 0 : index
      %250 = vector.load %arg15[%249, %c0_63, %c0_64] : memref<4x8x384xbf16, #tpu.memory_space<vmem>>, vector<1x8x384xbf16>
      %251 = vector.shape_cast %250 : vector<1x8x384xbf16> to vector<8x384xbf16>
      %252 = arith.truncf %210 : vector<8x128xf32> to vector<8x128xbf16>
      %cst_65 = arith.constant dense<0.000000e+00> : vector<8x384xf32>
      %253 = tpu.matmul %252, %19, %cst_65 {dimension_numbers = #tpu.dot_dimension_numbers<[1], [0], [0], [1], [0, 0, 1, 1], [], []>} : vector<8x128xbf16>, vector<128x384xbf16>, vector<8x384xf32> -> vector<8x384xf32>
      %254 = vector.extract_strided_slice %251 {offsets = [0, 0], sizes = [8, 128], strides = [1, 1]} : vector<8x384xbf16> to vector<8x128xbf16>
      %255 = vector.extract_strided_slice %253 {offsets = [0, 0], sizes = [8, 128], strides = [1, 1]} : vector<8x384xf32> to vector<8x128xf32>
      %256 = arith.extf %254 : vector<8x128xbf16> to vector<8x128xf32>
      %257 = arith.addf %256, %255 : vector<8x128xf32>
      %258 = arith.negf %257 : vector<8x128xf32>
      %259 = math.exp %258 : vector<8x128xf32>
      %cst_66 = arith.constant 1.000000e+00 : f32
      %260 = vector.broadcast %cst_66 : f32 to vector<8x128xf32>
      %261 = arith.addf %260, %259 : vector<8x128xf32>
      %262 = arith.divf %260, %261 : vector<8x128xf32>
      %263 = vector.extract_strided_slice %251 {offsets = [0, 128], sizes = [8, 128], strides = [1, 1]} : vector<8x384xbf16> to vector<8x128xbf16>
      %264 = vector.extract_strided_slice %253 {offsets = [0, 128], sizes = [8, 128], strides = [1, 1]} : vector<8x384xf32> to vector<8x128xf32>
      %265 = arith.extf %263 : vector<8x128xbf16> to vector<8x128xf32>
      %266 = arith.addf %265, %264 : vector<8x128xf32>
      %267 = arith.negf %266 : vector<8x128xf32>
      %268 = math.exp %267 : vector<8x128xf32>
      %cst_67 = arith.constant 1.000000e+00 : f32
      %269 = vector.broadcast %cst_67 : f32 to vector<8x128xf32>
      %270 = arith.addf %269, %268 : vector<8x128xf32>
      %271 = arith.divf %269, %270 : vector<8x128xf32>
      %272 = vector.extract_strided_slice %251 {offsets = [0, 256], sizes = [8, 128], strides = [1, 1]} : vector<8x384xbf16> to vector<8x128xbf16>
      %273 = vector.extract_strided_slice %253 {offsets = [0, 256], sizes = [8, 128], strides = [1, 1]} : vector<8x384xf32> to vector<8x128xf32>
      %274 = vector.broadcast %21 : vector<1x128xf32> to vector<8x128xf32>
      %275 = arith.addf %273, %274 : vector<8x128xf32>
      %276 = arith.mulf %262, %275 : vector<8x128xf32>
      %277 = arith.extf %272 : vector<8x128xbf16> to vector<8x128xf32>
      %278 = arith.addf %277, %276 : vector<8x128xf32>
      %279 = math.tanh %278 : vector<8x128xf32>
      %cst_68 = arith.constant 1.000000e+00 : f32
      %280 = vector.broadcast %cst_68 : f32 to vector<8x128xf32>
      %281 = arith.subf %280, %271 : vector<8x128xf32>
      %282 = arith.mulf %281, %279 : vector<8x128xf32>
      %283 = arith.mulf %271, %210 : vector<8x128xf32>
      %284 = arith.addf %282, %283 : vector<8x128xf32>
      %285 = tpu.concatenate %284, %239 in 1 : vector<8x128xf32>, vector<8x128xf32> -> vector<8x256xf32>
      %286 = arith.truncf %285 : vector<8x256xf32> to vector<8x256xbf16>
      %cst_69 = arith.constant dense<0.000000e+00> : vector<8x512xf32>
      %287 = tpu.matmul %286, %20, %cst_69 {dimension_numbers = #tpu.dot_dimension_numbers<[1], [0], [0], [1], [0, 0, 1, 1], [], []>} : vector<8x256xbf16>, vector<256x512xbf16>, vector<8x512xf32> -> vector<8x512xf32>
      %288 = vector.broadcast %22 : vector<1x512xf32> to vector<8x512xf32>
      %289 = arith.addf %287, %288 : vector<8x512xf32>
      %290 = vector.extract_strided_slice %289 {offsets = [0, 0], sizes = [8, 128], strides = [1, 1]} : vector<8x512xf32> to vector<8x128xf32>
      %291 = arith.negf %290 : vector<8x128xf32>
      %292 = math.exp %291 : vector<8x128xf32>
      %cst_70 = arith.constant 1.000000e+00 : f32
      %293 = vector.broadcast %cst_70 : f32 to vector<8x128xf32>
      %294 = arith.addf %293, %292 : vector<8x128xf32>
      %295 = arith.divf %293, %294 : vector<8x128xf32>
      %296 = vector.extract_strided_slice %289 {offsets = [0, 128], sizes = [8, 128], strides = [1, 1]} : vector<8x512xf32> to vector<8x128xf32>
      %297 = arith.negf %296 : vector<8x128xf32>
      %298 = math.exp %297 : vector<8x128xf32>
      %cst_71 = arith.constant 1.000000e+00 : f32
      %299 = vector.broadcast %cst_71 : f32 to vector<8x128xf32>
      %300 = arith.addf %299, %298 : vector<8x128xf32>
      %301 = arith.divf %299, %300 : vector<8x128xf32>
      %302 = vector.extract_strided_slice %289 {offsets = [0, 256], sizes = [8, 128], strides = [1, 1]} : vector<8x512xf32> to vector<8x128xf32>
      %303 = vector.extract_strided_slice %289 {offsets = [0, 384], sizes = [8, 128], strides = [1, 1]} : vector<8x512xf32> to vector<8x128xf32>
      %304 = vector.broadcast %23 : vector<1x128xf32> to vector<8x128xf32>
      %305 = arith.addf %303, %304 : vector<8x128xf32>
      %306 = arith.mulf %295, %305 : vector<8x128xf32>
      %307 = arith.addf %302, %306 : vector<8x128xf32>
      %308 = math.tanh %307 : vector<8x128xf32>
      %cst_72 = arith.constant 1.000000e+00 : f32
      %309 = vector.broadcast %cst_72 : f32 to vector<8x128xf32>
      %310 = arith.subf %309, %301 : vector<8x128xf32>
      %311 = arith.mulf %310, %308 : vector<8x128xf32>
      %312 = arith.mulf %301, %239 : vector<8x128xf32>
      %313 = arith.addf %311, %312 : vector<8x128xf32>
      %c4_i32_73 = arith.constant 4 : i32
      %314 = arith.muli %arg1, %c4_i32_73 : i32
      %315 = arith.addi %314, %c3_i32 : i32
      %316 = vector.broadcast %315 : i32 to vector<8x1xi32>
      %317 = arith.cmpi slt, %316, %18 : vector<8x1xi32>
      %318 = arith.extui %317 : vector<8x1xi1> to vector<8x1xi32>
      %319 = arith.sitofp %318 : vector<8x1xi32> to vector<8x1xf32>
      %320 = vector.broadcast %319 : vector<8x1xf32> to vector<8x128xf32>
      %321 = arith.mulf %320, %313 : vector<8x128xf32>
      %322 = arith.addf %248, %321 : vector<8x128xf32>
      %c4_i32_74 = arith.constant 4 : i32
      %c0_75 = arith.constant 0 : index
      %c0_76 = arith.constant 0 : index
      %323 = vector.load %arg13[%c0_75, %c0_76] : memref<8x128xf32, #tpu.memory_space<vmem>>, vector<8x128xf32>
      tpu.vector_store %arg13[%c0_75, %c0_76], %284 {strides = array<i32>} : memref<8x128xf32, #tpu.memory_space<vmem>>, vector<8x128xf32>,
      %c0_77 = arith.constant 0 : index
      %c0_78 = arith.constant 0 : index
      %324 = vector.load %arg14[%c0_77, %c0_78] : memref<8x128xf32, #tpu.memory_space<vmem>>, vector<8x128xf32>
      tpu.vector_store %arg14[%c0_77, %c0_78], %313 {strides = array<i32>} : memref<8x128xf32, #tpu.memory_space<vmem>>, vector<8x128xf32>,
      %c0_79 = arith.constant 0 : index
      %c0_80 = arith.constant 0 : index
      %325 = vector.load %arg12[%c0_79, %c0_80] : memref<8x128xf32, #tpu.memory_space<vmem>>, vector<8x128xf32>
      %326 = arith.addf %325, %322 : vector<8x128xf32>
      %c0_81 = arith.constant 0 : index
      %c0_82 = arith.constant 0 : index
      %327 = vector.load %arg12[%c0_81, %c0_82] : memref<8x128xf32, #tpu.memory_space<vmem>>, vector<8x128xf32>
      tpu.vector_store %arg12[%c0_81, %c0_82], %326 {strides = array<i32>} : memref<8x128xf32, #tpu.memory_space<vmem>>, vector<8x128xf32>,
    } else {
    }
    return
  }
  func.func @transform_0(%arg0: i32, %arg1: i32, %arg2: memref<2xi32, #tpu.memory_space<smem>>) -> (i32, i32) {
    %c0_i32 = arith.constant 0 : i32
    %c0_i32_0 = arith.constant 0 : i32
    return %arg0, %c0_i32 : i32, i32
  }
  func.func @transform_1(%arg0: i32, %arg1: i32, %arg2: memref<2xi32, #tpu.memory_space<smem>>) -> (i32, i32, i32) {
    %c1 = arith.constant 1 : index
    %0 = memref.load %arg2[%c1] : memref<2xi32, #tpu.memory_space<smem>>
    %1 = arith.minsi %arg1, %0 : i32
    %c0_i32 = arith.constant 0 : i32
    %c0_i32_0 = arith.constant 0 : i32
    return %1, %arg0, %c0_i32 : i32, i32, i32
  }
  func.func @transform_2(%arg0: i32, %arg1: i32, %arg2: memref<2xi32, #tpu.memory_space<smem>>) -> (i32, i32) {
    %c0_i32 = arith.constant 0 : i32
    %c0_i32_0 = arith.constant 0 : i32
    %c0_i32_1 = arith.constant 0 : i32
    return %c0_i32, %c0_i32_0 : i32, i32
  }
  func.func @transform_3(%arg0: i32, %arg1: i32, %arg2: memref<2xi32, #tpu.memory_space<smem>>) -> (i32, i32) {
    %c0_i32 = arith.constant 0 : i32
    %c0_i32_0 = arith.constant 0 : i32
    %c0_i32_1 = arith.constant 0 : i32
    return %c0_i32, %c0_i32_0 : i32, i32
  }
  func.func @transform_4(%arg0: i32, %arg1: i32, %arg2: memref<2xi32, #tpu.memory_space<smem>>) -> (i32, i32) {
    %c0_i32 = arith.constant 0 : i32
    %c0_i32_0 = arith.constant 0 : i32
    %c0_i32_1 = arith.constant 0 : i32
    return %c0_i32, %c0_i32_0 : i32, i32
  }
  func.func @transform_5(%arg0: i32, %arg1: i32, %arg2: memref<2xi32, #tpu.memory_space<smem>>) -> (i32, i32) {
    %c0_i32 = arith.constant 0 : i32
    %c0_i32_0 = arith.constant 0 : i32
    %c0_i32_1 = arith.constant 0 : i32
    return %c0_i32, %c0_i32_0 : i32, i32
  }
  func.func @transform_6(%arg0: i32, %arg1: i32, %arg2: memref<2xi32, #tpu.memory_space<smem>>) -> (i32, i32) {
    %c0_i32 = arith.constant 0 : i32
    %c0_i32_0 = arith.constant 0 : i32
    %c0_i32_1 = arith.constant 0 : i32
    return %c0_i32, %c0_i32_0 : i32, i32
  }
  func.func @transform_7(%arg0: i32, %arg1: i32, %arg2: memref<2xi32, #tpu.memory_space<smem>>) -> (i32, i32) {
    %c0_i32 = arith.constant 0 : i32
    %c0_i32_0 = arith.constant 0 : i32
    %c0_i32_1 = arith.constant 0 : i32
    return %c0_i32, %c0_i32_0 : i32, i32
  }
  func.func @transform_8(%arg0: i32, %arg1: i32, %arg2: memref<2xi32, #tpu.memory_space<smem>>) -> (i32, i32) {
    %c0_i32 = arith.constant 0 : i32
    %c0_i32_0 = arith.constant 0 : i32
    %c0_i32_1 = arith.constant 0 : i32
    return %c0_i32, %c0_i32_0 : i32, i32
  }
  func.func @transform_9(%arg0: i32, %arg1: i32, %arg2: memref<2xi32, #tpu.memory_space<smem>>) -> (i32, i32) {
    %c0_i32 = arith.constant 0 : i32
    %c0_i32_0 = arith.constant 0 : i32
    return %arg0, %c0_i32 : i32, i32
  }
}

</mosaic_0001>

<bundles_post_ra>
// kernel: tpu_custom_call.1
= control target key start
LH: loop header
LB: loop body
LE: loop exit
PB: predicated region body
PF: predicated region fallthrough
CT: control target
= control target key end

     0   :  { %s3487_s16 = smov [#allocation6]   ;;  %s4449_s0 = inlined_call_operand.vmem [shape: s32[2], index: 0, kind: input, shape index: {}]   ;;  %s4450_s1 = inlined_call_operand.vmem [shape: s32[8,1], index: 1, kind: input, shape index: {}]   ;;  %s4451_s2 = inlined_call_operand.hbm [shape: bf16[8,8,128], index: 2, kind: input, shape index: {}]   ;;  %s4452_s3 = inlined_call_operand.hbm [shape: bf16[128,384], index: 3, kind: input, shape index: {}]   ;;  %s4453_s4 = inlined_call_operand.hbm [shape: bf16[128,384], index: 4, kind: input, shape index: {}]   ;;  %s4454_s5 = inlined_call_operand.vmem [shape: f32[1,384], index: 5, kind: input, shape index: {}]   ;;  %s4455_s6 = inlined_call_operand.vmem [shape: f32[1,128], index: 6, kind: input, shape index: {}]   ;;  %s4456_s7 = inlined_call_operand.hbm [shape: bf16[256,512], index: 7, kind: input, shape index: {}]   ;;  %s4457_s8 = inlined_call_operand.vmem [shape: f32[1,512], index: 8, kind: input, shape index: {}]   ;;  %s4458_s9 = inlined_call_operand.vmem [shape: f32[1,128], index: 9, kind: input, shape index: {}]   ;;  %s4459_s10 = inlined_call_operand.hbm [shape: f32[8,128], index: 10, kind: output, shape index: {}]  }
   0x1   :  { %4600 = sst [smem:[#allocation92_spill]] %s4452_s3  ;;  %s16_s15 = sshll.u32 %s4449_s0, 4  ;;  %s17_s15 = int_to_ptr.vmem [resolvable:$true] %s16_s15 }
   0x2   :  { %4601 = sst [smem:[#allocation93_spill]] %s4453_s4 }
   0x3   :  { %4602 = sst [smem:[#allocation94_spill]] %s4456_s7 }
   0x4   :  { %4603 = sst [smem:[#allocation95_spill]] %s4458_s9 }
   0x5   :  { %4604 = sst [smem:[#allocation96_spill]] %s4459_s10 }
   0x6   :  { %19 = dma.vmem_to_smem %s17_s15, 16, %s3487_s16, [#allocation5] }
   0x7   :  { %3445 = dma.done.wait [#allocation5], 16 }
   0x8   :  { %3446 = vsyncadd [#allocation5], 4294967280 }
   0x9   :  { %22 = sfence }
   0xa   :  { %23 = vsyncpa [#allocation8], 0 }
   0xb   :  { %25 = vsyncpa [#allocation8 + $0x1], 0 }
   0xc   :  { %26 = vsyncpa [#allocation11], 0 }
   0xd   :  { %27 = vsyncpa [#allocation14], 0 }
   0xe   :  { %28 = vsyncpa [#allocation9], 0  ;;  %s3559_s17 = smov 0   ;;  %s3561_s18 = smov 0  }
   0xf   :  { %s3563_s19 = smov 0   ;;  %s3565_s20 = smov 0  }
  0x10   :  { %s3567_s0 = smov 0   ;;  %s3569_s21 = smov 0  }
  0x11 LB: > { %s4460_s22 = sadd.s32 4294967295, %s3485_s21   ;;  %p100_p0 = scmp.ne.s32.totalorder %s3469_s18, %s3465_s17  ;;  %s3485_s21 = sphi %s3569_s21, %s34_s21   ;;  %s3481_s0 = sphi %s3567_s0, %s4849_s0   ;;  %s3477_s20 = sphi %s3565_s20, %s4848_s20   ;;  %s3473_s19 = sphi %s3563_s19, %s4847_s19   ;;  %s3469_s18 = sphi %s3561_s18, %s4846_s18   ;;  %s3465_s17 = sphi %s3559_s17, %s4845_s17  }
  0x12   : > { %p3591_p1 = scmp.eq.s32.totalorder %s4460_s22, 0  ;;  %p2450_p2 = scmp.ge.s32.totalorder %s3485_s21, 1 }
  0x13   : > { %p284_p3 = scmp.lt.s32.totalorder %s3485_s21, 3  ;;  %s4607_s3 = sld [smem:[#allocation92_spill]] }
  0x14   : > { %p3599_p4 = por %p3591_p1, %p100_p0  ;;  %s3488_s29 = smov [#allocation10]  }
  0x15   : > { %p3606_p5 = pnand %p2450_p2, %p284_p3  ;;  %s304_s30 = sshll.u32 %s3488_s29, 4  ;;  %s305_s30 = int_to_ptr.vmem [resolvable:$true] %s304_s30 }
  0x16   : > { %s4610_s4 = sld [smem:[#allocation93_spill]]  ;;  %s3489_s15 = smov 192  }
  0x17   : > { %p3081_p6 = pneg %p3606_p5  ;;  %s3490_s16 = smov 12  }
  0x18   : > { %s3491_s17 = smov [#allocation12]   ;;  %s4611_s7 = sld [smem:[#allocation94_spill]] }
  0x19   : > { %s302_s27 = sshll.u32 %s4607_s3, 4  ;;  %p3614_p7 = pnand %p3081_p6, %p3591_p1  ;;  %s303_s27 = int_to_ptr.hbm [resolvable:$true] %s302_s27 }
  0x1a   : > { %s318_s25 = sshll.u32 %s3491_s17, 4  ;;  %s3492_s13 = smov [#allocation13]   ;;  %s319_s25 = int_to_ptr.vmem [resolvable:$true] %s318_s25 }
  0x1b   : > { %3084 = dma.hbm_to_vmem [thread:$0]  (!%p3614_p7), %s303_s27, 3072, %s305_s30, [#allocation11], %s3489_s15, %s3489_s15, %s3490_s16  }
  0x1c   : > { %s316_s14 = sshll.u32 %s4610_s4, 4  ;;  %s338_s22 = sshll.u32 %s3492_s13, 4  ;;  %s317_s14 = int_to_ptr.hbm [resolvable:$true] %s316_s14  ;;  %s339_s22 = int_to_ptr.vmem [resolvable:$true] %s338_s22 }
  0x1d   : > { %3087 = dma.hbm_to_vmem [thread:$0]  (!%p3614_p7), %s317_s14, 3072, %s319_s25, [#allocation11], %s3489_s15, %s3489_s15, %s3490_s16  }
  0x1e   : > { %s336_s12 = sshll.u32 %s4611_s7, 4  ;;  %s3493_s27 = smov 256   ;;  %s337_s12 = int_to_ptr.hbm [resolvable:$true] %s336_s12 }
  0x1f   : > { %s3494_s30 = smov 16   ;;  %s2448_s17 = sld [smem:[#allocation6 + $0x1]] }
  0x20   : > { %3090 = dma.hbm_to_vmem [thread:$0]  (!%p3614_p7), %s337_s12, 8192, %s339_s22, [#allocation14], %s3493_s27, %s3493_s27, %s3494_s30  }
  0x21   : > { %s43_s3 = sadd.s32 1, %s3481_s0  ;;  %s87_s26 = sadd.s32 1, %s3473_s19 }
  0x22   : > { %p44_p8 = scmp.ge.s32.totalorder %s43_s3, 2  ;;  %p94_p9 = scmp.ne.s32.totalorder %s3473_s19, %s3469_s18 }
  0x23   : > { %p95_p10 = scmp.eq.s32.totalorder %s3485_s21, 0  ;;  %p3098_p11 = scmp.lt.s32.totalorder %s3485_s21, 2 }
  0x24   : > { %s4851_s3 = smov (%p44_p8, %s43_s3), 0  ;;  %s358_s15 = sand.u32 1, %s3473_s19  }
  0x25   : > { %p3638_p12 = por %p95_p10, %p94_p9  ;;  %p77_p13 = scmp.lt.s32.totalorder %s3481_s0, %s2448_s17 }
  0x26   : > { %p80_p0 = scmp.lt.s32.totalorder %s4851_s3, %s2448_s17  ;;  %s2456_s22 = sshll.u32 %s358_s15, 4 }
  0x27   : > { %s78_s11 = scalar_select %p77_p13, %s3481_s0, %s2448_s17 }
  0x28   : > { %s81_s16 = scalar_select %p80_p0, %s4851_s3, %s2448_s17 }
  0x29   : > { %s2948_s25 = sshll.u32 %s78_s11, 4  ;;  %s362_s4 = scalar_lea.vmem [#allocation7], %s2456_s22 }
  0x2a   : > { %s82_s29 = ssub.s32 %s78_s11, %s81_s16  ;;  %s371_s27 = scalar_lea.hbm %s4451_s2, %s2948_s25 }
  0x2b   : > { %p85_p2 = scmp.eq.s32.totalorder %s82_s29, 0  ;;  %s372_s30 = sshll.u32 %s371_s27, 4  ;;  %s373_s30 = int_to_ptr.hbm [resolvable:$true] %s372_s30 }
  0x2c   : > { %s374_s7 = sshll.u32 %s362_s4, 4  ;;  %p3657_p3 = pnand %p3098_p11, %p3638_p12  ;;  %s375_s7 = int_to_ptr.vmem [resolvable:$true] %s374_s7 }
  0x2d   : > { %s3651_s10 = scalar_select %p85_p2, %s3473_s19, %s87_s26  }
  0x2e   : > { %s359_s17 = scalar_lea.sflag [#allocation8], %s358_s15  ;;  %s3363_s11 = sshra.s32 %s373_s30, 4  ;;  %s3364_s11 = int_to_ptr.hbm [resolvable:$true] %s3363_s11 }
  0x2f   : > { %s3365_s16 = scalar_lea.hbm %s3364_s11, 16  ;;  %p3367_p7 = pneg %p3657_p3 }
  0x30   : > { %p3366_p6 = scmp.ne.s32.totalorder %s3364_s11, %s3365_s16  ;;  %s3370_s22 = scalar_lea.hbm %s4451_s2, 32 }
  0x31   : > { %p3371_p10 = scmp.lt.s32.totalorder %s3364_s11, %s4451_s2  ;;  %p3372_p11 = scmp.lt.s32.totalorder %s3370_s22, %s3365_s16 }
  0x32   : > { %p3368_p8 = pnand %p3367_p7, %p3366_p6 }
  0x33   : > { %p3373_p12 = por %p3372_p11, %p3371_p10 }
  0x34   : > { %p3369_p9 = pneg %p3368_p8 }
  0x36   : > { %p3374_p13 = pnand %p3373_p12, %p3369_p9 }
  0x38   : > { %3377 = shalt.err (!%p3374_p13)
}
  0x39   : > { %s3495_s15 = smov 64   ;;  %s3496_s29 = smov 4  }
  0x3a   : > { %3094 = dma.hbm_to_vmem [thread:$0]  (!%p3657_p3), %s373_s30, 256, %s375_s7, %s359_s17, %s3495_s15, %s3495_s15, %s3496_s29  }
  0x3b   : > { %386 = sbr.rel (%p3606_p5) target bundleno = 1143 (0x477), region = 56  ;;  %s388_s12 = sand.u32 (!%p3606_p5), 1, %s3469_s18  }
  0x3c   : > { %s3674_s13 = sshll.u32 (!%p3606_p5), %s388_s12, 4  ;;  %s389_s27 = scalar_lea.sflag (!%p3606_p5), [#allocation8], %s388_s12 }
  0x3d   : > { %s392_s11 = scalar_lea.vmem (!%p3606_p5), [#allocation7], %s3674_s13 }
  0x40   : > { %3448 = dma.done.wait (%p3599_p4), %s389_s27, 256  }
  0x41   : > { %3450 = vsyncadd (%p3599_p4), %s389_s27, 4294967040 }
  0x42   : > { %3452 = dma.done.wait (%p3591_p1), [#allocation11], 6144  }
  0x43   : > { %3454 = vsyncadd (%p3591_p1), [#allocation11], 4294961152 }
  0x44   : > { %3456 = dma.done.wait (%p3591_p1), [#allocation14], 8192  }
  0x45   : > { %3458 = vsyncadd (%p3591_p1), [#allocation14], 4294959104  ;;  %p2465_p5 = scmp.ne.s32.totalorder %s3477_s20, 0 }
  0x47   : > { %453 = sbr.rel (%p2465_p5) target bundleno = 80 (0x50), region = 76 }
  0x4c   : > { %v3497_v0 = vmov 0.0  }
  0x4d   : > { %454 = vst [vmem:[#allocation2] sm:$0xff] %v3497_v0 }
  0x4e   : > { %455 = vst [vmem:[#allocation3] sm:$0xff] %v3497_v0 }
  0x4f   : > { %456 = vst [vmem:[#allocation15] sm:$0xff] %v3497_v0 }
  0x50 PF: > { %s3691_s7 = sshll.u32 %s3477_s20, 2  ;;  %s458_s9 = sld [smem:[#allocation6]] }
  0x56   : > { %p2467_p4 = scmp.ge.s32.totalorder %s3691_s7, %s458_s9 }
  0x58   : > { %462 = sbr.rel (%p2467_p4) target bundleno = 1133 (0x46d), region = 80 }
  0x5d   : > { %v2562_v1 = vld [vmem:[#allocation10 + $0xa8] sm:$0xf]  ;;  %v2973_v2 = vld [vmem:[#allocation10 + $0xb0] sm:$0xf0]  ;;  %v2972_v3 = vld [vmem:[#allocation10 + $0xac] sm:$0xf] }
  0x5e   : > { %v2563_v4 = vor.u32 %v2973_v2, %v2562_v1  ;;  %v2564_v5 = vld [vmem:[#allocation10 + $0xb4] sm:$0xf0]  ;;  %v2550_v6 = vld [vmem:[#allocation10 + $0x90] sm:$0xf]  ;;  %v2970_v7 = vld [vmem:[#allocation10 + $0x98] sm:$0xf0] }
  0x5f   : > { %v2567_v8 = vor.u32 %v2972_v3, %v2564_v5  ;;  %v2969_v9 = vld [vmem:[#allocation10 + $0x94] sm:$0xf]  ;;  %v2552_v10 = vld [vmem:[#allocation10 + $0x9c] sm:$0xf0]  ;;  %v2551_v11 = vor.u32 %v2970_v7, %v2550_v6  ;;  %v2538_v12 = vld [vmem:[#allocation10 + $0x78] sm:$0xf] }
  0x60   : > { %647 = vmatpush.bf16.msra.mxu0 %v2563_v4  ;;  %v2555_v13 = vor.u32 %v2969_v9, %v2552_v10  ;;  %v2967_v14 = vld [vmem:[#allocation10 + $0x80] sm:$0xf0]  ;;  %v2658_v15 = vld [vmem:[#allocation12 + $0xa8] sm:$0xf]  ;;  %v2997_v16 = vld [vmem:[#allocation12 + $0xb0] sm:$0xf0] }
  0x61   : > { %666 = vmatpush.bf16.msra.mxu1 %v2567_v8  ;;  %v2966_v17 = vld [vmem:[#allocation10 + $0x7c] sm:$0xf]  ;;  %v2540_v18 = vld [vmem:[#allocation10 + $0x84] sm:$0xf0]  ;;  %v3694_v19 = vor.u32 %v2997_v16, %v2658_v15  ;;  %v2646_v20 = vld [vmem:[#allocation12 + $0x90] sm:$0xf]  ;;  %v2539_v22 = vor.u32 %v2967_v14, %v2538_v12 }
  0x62   : > { %v2994_v21 = vld [vmem:[#allocation12 + $0x98] sm:$0xf0]  ;;  %v2526_v23 = vld [vmem:[#allocation10 + $0x60] sm:$0xf]  ;;  %v2543_v25 = vor.u32 %v2966_v17, %v2540_v18  ;;  %v2964_v26 = vld [vmem:[#allocation10 + $0x68] sm:$0xf0] }
  0x63   : > { %953 = vmatpush.bf16.msra.mxu3 %v3694_v19  ;;  %v3697_v24 = vor.u32 %v2994_v21, %v2646_v20  ;;  %v2634_v27 = vld [vmem:[#allocation12 + $0x78] sm:$0xf]  ;;  %v2991_v28 = vld [vmem:[#allocation12 + $0x80] sm:$0xf0]  ;;  %v2528_v30 = vld [vmem:[#allocation10 + $0x6c] sm:$0xf0]  ;;  %v2527_v31 = vor.u32 %v2964_v26, %v2526_v23 }
  0x64   : > { %648 = vmatpush.bf16.msra.mxu0 %v2551_v11  ;;  %v2963_v29 = vld [vmem:[#allocation10 + $0x64] sm:$0xf]  ;;  %v2514_v32 = vld [vmem:[#allocation10 + $0x48] sm:$0xf]  ;;  %v2961_v33 = vld [vmem:[#allocation10 + $0x50] sm:$0xf0]  ;;  %v3700_v34 = vor.u32 %v2991_v28, %v2634_v27 }
  0x65   : > { %667 = vmatpush.bf16.msra.mxu1 %v2555_v13  ;;  %v2531_v35 = vor.u32 %v2963_v29, %v2528_v30  ;;  %v2622_v36 = vld [vmem:[#allocation12 + $0x60] sm:$0xf]  ;;  %v2988_v37 = vld [vmem:[#allocation12 + $0x68] sm:$0xf0]  ;;  %v2570_v38 = vld [vmem:[#allocation10 + $0xb0] sm:$0xf]  ;;  %v2515_v43 = vor.u32 %v2961_v33, %v2514_v32 }
  0x66   : > { %v2960_v39 = vld [vmem:[#allocation10 + $0x4c] sm:$0xf]  ;;  %v2516_v40 = vld [vmem:[#allocation10 + $0x54] sm:$0xf0]  ;;  %v2974_v41 = vld [vmem:[#allocation10 + $0xb8] sm:$0xf0]  ;;  %v3703_v45 = vor.u32 %v2988_v37, %v2622_v36 }
  0x67   : > { %954 = vmatpush.bf16.msra.mxu3 %v3697_v24  ;;  %v2571_v42 = vor.u32 %v2974_v41, %v2570_v38  ;;  %v2502_v44 = vld [vmem:[#allocation10 + $0x30] sm:$0xf]  ;;  %v2558_v46 = vld [vmem:[#allocation10 + $0x98] sm:$0xf]  ;;  %v2971_v47 = vld [vmem:[#allocation10 + $0xa0] sm:$0xf0]  ;;  %v2519_v48 = vor.u32 %v2960_v39, %v2516_v40 }
  0x68   : > { %649 = vmatpush.bf16.msra.mxu0 %v2539_v22  ;;  %v2958_v49 = vld [vmem:[#allocation10 + $0x38] sm:$0xf0]  ;;  %v2610_v50 = vld [vmem:[#allocation12 + $0x48] sm:$0xf]  ;;  %v2985_v51 = vld [vmem:[#allocation12 + $0x50] sm:$0xf0]  ;;  %v2559_v52 = vor.u32 %v2971_v47, %v2558_v46 }
  0x69   : > { %668 = vmatpush.bf16.msra.mxu1 %v2543_v25  ;;  %685 = vmatpush.bf16.msra.mxu2 %v2571_v42  ;;  %v2957_v53 = vld [vmem:[#allocation10 + $0x34] sm:$0xf]  ;;  %v2504_v54 = vld [vmem:[#allocation10 + $0x3c] sm:$0xf0]  ;;  %v2968_v56 = vld [vmem:[#allocation10 + $0x88] sm:$0xf0]  ;;  %v2503_v57 = vor.u32 %v2958_v49, %v2502_v44  ;;  %v3706_v60 = vor.u32 %v2985_v51, %v2610_v50 }
  0x6a   : > { %v2546_v55 = vld [vmem:[#allocation10 + $0x80] sm:$0xf]  ;;  %v2490_v58 = vld [vmem:[#allocation10 + $0x18] sm:$0xf]  ;;  %v2955_v59 = vld [vmem:[#allocation10 + $0x20] sm:$0xf0]  ;;  %v2507_v61 = vor.u32 %v2957_v53, %v2504_v54 }
  0x6b   : > { %955 = vmatpush.bf16.msra.mxu3 %v3700_v34  ;;  %4614 = vst [vmem:[#allocation21_spill] sm:$0xff] %v3706_v60  ;;  %v2954_v62 = vld [vmem:[#allocation10 + $0x1c] sm:$0xf]  ;;  %v2598_v63 = vld [vmem:[#allocation12 + $0x30] sm:$0xf]  ;;  %v2547_v1 = vor.u32 %v2968_v56, %v2546_v55  ;;  %v2491_v5 = vor.u32 %v2955_v59, %v2490_v58  ;;  %v3725_v40 = vld [vmem:[#allocation2] sm:$0xff] }
  0x6c   : > { %650 = vmatpush.bf16.msra.mxu0 %v2527_v31  ;;  %v2982_v0 = vld [vmem:[#allocation12 + $0x38] sm:$0xf0]  ;;  %v2492_v2 = vld [vmem:[#allocation10 + $0x24] sm:$0xf0]  ;;  %v2965_v4 = vld [vmem:[#allocation10 + $0x70] sm:$0xf0] }
  0x6d   : > { %669 = vmatpush.bf16.msra.mxu1 %v2531_v35  ;;  %686 = vmatpush.bf16.msra.mxu2 %v2559_v52  ;;  %v2534_v3 = vld [vmem:[#allocation10 + $0x68] sm:$0xf]  ;;  %v2478_v6 = vld [vmem:[#allocation10] sm:$0xf]  ;;  %v2952_v7 = vld [vmem:[#allocation10 + $0x8] sm:$0xf0]  ;;  %v3709_v9 = vor.u32 %v2982_v0, %v2598_v63  ;;  %v2495_v10 = vor.u32 %v2954_v62, %v2492_v2 }
  0x6e   : > { %v2951_v8 = vld [vmem:[#allocation10 + $0x4] sm:$0xf]  ;;  %v2480_v11 = vld [vmem:[#allocation10 + $0xc] sm:$0xf0]  ;;  %v2586_v12 = vld [vmem:[#allocation12 + $0x18] sm:$0xf]  ;;  %v2535_v14 = vor.u32 %v2965_v4, %v2534_v3  ;;  %v2479_v22 = vor.u32 %v2952_v7, %v2478_v6 }
  0x6f   : > { %956 = vmatpush.bf16.msra.mxu3 %v3703_v45  ;;  %4615 = vst [vmem:[#allocation22_spill] sm:$0xff] %v3709_v9  ;;  %v2979_v13 = vld [vmem:[#allocation12 + $0x20] sm:$0xf0]  ;;  %v2996_v15 = vld [vmem:[#allocation12 + $0xac] sm:$0xf]  ;;  %v2483_v25 = vor.u32 %v2951_v8, %v2480_v11  ;;  %s1792_s30 = sadd.s32 1, %s3691_s7 }
  0x70   : > { %651 = vmatpush.bf16.msra.mxu0 %v2515_v43  ;;  %v2660_v16 = vld [vmem:[#allocation12 + $0xb4] sm:$0xf0]  ;;  %v2522_v17 = vld [vmem:[#allocation10 + $0x50] sm:$0xf]  ;;  %v2962_v18 = vld [vmem:[#allocation10 + $0x58] sm:$0xf0]  ;;  %v3712_v23 = vor.u32 %v2979_v13, %v2586_v12 }
  0x71   : > { %670 = vmatpush.bf16.msra.mxu1 %v2519_v48  ;;  %687 = vmatpush.bf16.msra.mxu2 %v2547_v1  ;;  %v2666_v20 = vld [vmem:[#allocation12 + $0xb0] sm:$0xf]  ;;  %v2998_v21 = vld [vmem:[#allocation12 + $0xb8] sm:$0xf0]  ;;  %v3718_v27 = vor.u32 %v2996_v15, %v2660_v16  ;;  %v2574_v28 = vld [vmem:[#allocation12] sm:$0xf]  ;;  %v2523_v32 = vor.u32 %v2962_v18, %v2522_v17  ;;  %v3736_v48 = vpack.c.bf16 %v3725_v40, %v3725_v40 }
  0x72   : > { %4616 = vst [vmem:[#allocation23_spill] sm:$0xff] %v3712_v23  ;;  %v3716_v26 = vld [vmem:[%s392_s11] sm:$0xff]  ;;  %v2976_v29 = vld [vmem:[#allocation12 + $0x8] sm:$0xf0]  ;;  %v3720_v33 = vor.u32 %v2998_v21, %v2666_v20  ;;  %v2510_v35 = vld [vmem:[#allocation10 + $0x38] sm:$0xf] }
  0x73   : > { %957 = vmatpush.bf16.msra.mxu3 %v3706_v60  ;;  %4617 = vst [vmem:[#allocation24_spill] sm:$0xff] %v3718_v27  ;;  %v2993_v30 = vld [vmem:[#allocation12 + $0x94] sm:$0xf]  ;;  %v2648_v31 = vld [vmem:[#allocation12 + $0x9c] sm:$0xf0]  ;;  %v3723_v39 = vor.u32 %v2976_v29, %v2574_v28  ;;  %s4724_s25 = sld [smem:[#allocation95_spill]] }
  0x74   : > { %652 = vmatpush.bf16.msra.mxu0 %v2503_v57  ;;  %v2959_v36 = vld [vmem:[#allocation10 + $0x40] sm:$0xf0]  ;;  %v2654_v37 = vld [vmem:[#allocation12 + $0x98] sm:$0xf]  ;;  %v3728_v41 = vor.u32 %v2993_v30, %v2648_v31  ;;  %v2990_v42 = vld [vmem:[#allocation12 + $0x7c] sm:$0xf] }
  0x75   : > { %671 = vmatpush.bf16.msra.mxu1 %v2507_v61  ;;  %688 = vmatpush.bf16.msra.mxu2 %v2535_v14  ;;  %v2995_v38 = vld [vmem:[#allocation12 + $0xa0] sm:$0xf0]  ;;  %4618 = vst [vmem:[#allocation25_spill] sm:$0xff] %v3723_v39  ;;  %v2636_v43 = vld [vmem:[#allocation12 + $0x84] sm:$0xf0]  ;;  %v2511_v44 = vor.u32 %v2959_v36, %v2510_v35  ;;  %s2052_s12 = sadd.s32 2, %s3691_s7 }
  0x76   : > { %4619 = vst [vmem:[#allocation26_spill] sm:$0xff] %v3728_v41  ;;  %v3731_v46 = vor.u32 %v2995_v38, %v2654_v37  ;;  %v2498_v47 = vld [vmem:[#allocation10 + $0x20] sm:$0xf]  ;;  %v2956_v49 = vld [vmem:[#allocation10 + $0x28] sm:$0xf0]  ;;  %v3741_v54 = vor.u32 %v2990_v42, %v2636_v43  ;;  %s2312_s13 = sadd.s32 3, %s3691_s7 }
  0x77   : > { %958 = vmatpush.bf16.msra.mxu3 %v3709_v9  ;;  %v2642_v50 = vld [vmem:[#allocation12 + $0x80] sm:$0xf]  ;;  %v2992_v51 = vld [vmem:[#allocation12 + $0x88] sm:$0xf0]  ;;  %v3061_v53 = vld [vmem:[#allocation13 + $0x1ec] sm:$0xf0]  ;;  %v2499_v61 = vor.u32 %v2956_v49, %v2498_v47 }
  0x78   : > { %653 = vmatpush.bf16.msra.mxu0 %v2491_v5  ;;  %v2912_v52 = vld [vmem:[#allocation13 + $0x1e0] sm:$0xf]  ;;  %4620 = vst [vmem:[#allocation27_spill] sm:$0xff] %v3741_v54  ;;  %v3057_v57 = vld [vmem:[#allocation13 + $0x1cc] sm:$0xf0]  ;;  %v3746_v62 = vor.u32 %v2992_v51, %v2642_v50 }
  0x79   : > { %672 = vmatpush.bf16.msra.mxu1 %v2495_v10  ;;  %689 = vmatpush.bf16.msra.mxu2 %v2523_v32  ;;  %v3743_v55 = vor.u32 %v3061_v53, %v2912_v52  ;;  %v2896_v56 = vld [vmem:[#allocation13 + $0x1c0] sm:$0xf]  ;;  %v2987_v58 = vld [vmem:[#allocation12 + $0x64] sm:$0xf]  ;;  %v2624_v59 = vld [vmem:[#allocation12 + $0x6c] sm:$0xf0] }
  0x7a   : > { %v2486_v63 = vld [vmem:[#allocation10 + $0x8] sm:$0xf]  ;;  %v2953_v0 = vld [vmem:[#allocation10 + $0x10] sm:$0xf0]  ;;  %v3750_v3 = vor.u32 %v3057_v57, %v2896_v56  ;;  %v3753_v4 = vor.u32 %v2987_v58, %v2624_v59  ;;  %v2880_v5 = vld [vmem:[#allocation13 + $0x1a0] sm:$0xf] }
  0x7b   : > { %959 = vmatpush.bf16.msra.mxu3 %v3712_v23  ;;  %4621 = vst [vmem:[#allocation28_spill] sm:$0xff] %v3743_v55  ;;  %v2630_v1 = vld [vmem:[#allocation12 + $0x68] sm:$0xf]  ;;  %v2989_v2 = vld [vmem:[#allocation12 + $0x70] sm:$0xf0]  ;;  %v2487_v10 = vor.u32 %v2953_v0, %v2486_v63 }
  0x7c   : > { %654 = vmatpush.bf16.msra.mxu0 %v2479_v22  ;;  %4622 = vst [vmem:[#allocation29_spill] sm:$0xff] %v3750_v3  ;;  %v3053_v6 = vld [vmem:[#allocation13 + $0x1ac] sm:$0xf0]  ;;  %v2984_v7 = vld [vmem:[#allocation12 + $0x4c] sm:$0xf]  ;;  %v3756_v11 = vor.u32 %v2989_v2, %v2630_v1 }
  0x7d   : > { %673 = vmatpush.bf16.msra.mxu1 %v2483_v25  ;;  %690 = vmatpush.bf16.msra.mxu2 %v2511_v44  ;;  %4623 = vst [vmem:[#allocation30_spill] sm:$0xff] %v3753_v4  ;;  %v2612_v8 = vld [vmem:[#allocation12 + $0x54] sm:$0xf0]  ;;  %v2618_v12 = vld [vmem:[#allocation12 + $0x50] sm:$0xf]  ;;  %v3759_v14 = vor.u32 %v3053_v6, %v2880_v5 }
  0x7e   : > { %v2986_v13 = vld [vmem:[#allocation12 + $0x58] sm:$0xf0]  ;;  %v3762_v15 = vor.u32 %v2984_v7, %v2612_v8  ;;  %v2864_v16 = vld [vmem:[#allocation13 + $0x180] sm:$0xf]  ;;  %v3049_v17 = vld [vmem:[#allocation13 + $0x18c] sm:$0xf0] }
  0x7f   : > { %655 = vmatmul.bf16.vlgmr.msra.gmra.mxu0 %v3716_v26  ;;  %960 = vmatpush.bf16.msra.mxu3 %v3723_v39  ;;  %4624 = vst [vmem:[#allocation31_spill] sm:$0xff] %v3759_v14  ;;  %v2981_v18 = vld [vmem:[#allocation12 + $0x34] sm:$0xf]  ;;  %v2600_v20 = vld [vmem:[#allocation12 + $0x3c] sm:$0xf0]  ;;  %v3765_v21 = vor.u32 %v2986_v13, %v2618_v12  ;;  %v2950_v22 = vld [vmem:[%s392_s11 + $0x8] sm:$0xff]  ;;  %v3770_v29 = vor.u32 %v3049_v17, %v2864_v16 }
  0x80   : > { %966 = vmatpush.bf16.msrb.mxu0 %v3718_v27  ;;  %674 = vmatmul.bf16.vlgmr.msra.gmra.mxu1 %v3716_v26  ;;  %4625 = vst [vmem:[#allocation32_spill] sm:$0xff] %v3762_v15  ;;  %v2606_v25 = vld [vmem:[#allocation12 + $0x38] sm:$0xf]  ;;  %v2983_v28 = vld [vmem:[#allocation12 + $0x40] sm:$0xf0]  ;;  %v3773_v30 = vor.u32 %v2981_v18, %v2600_v20 }
  0x81   : > { %979 = vmatpush.bf16.msrb.mxu1 %v3720_v33  ;;  %691 = vmatpush.bf16.msra.mxu2 %v2499_v61  ;;  %4626 = vst [vmem:[#allocation33_spill] sm:$0xff] %v3765_v21  ;;  %v2848_v31 = vld [vmem:[#allocation13 + $0x160] sm:$0xf]  ;;  %v3045_v32 = vld [vmem:[#allocation13 + $0x16c] sm:$0xf0]  ;;  %v3777_v37 = vor.u32 %v2983_v28, %v2606_v25 }
  0x82   : > { %961 = vmatmul.bf16.vlgmr.msra.gmra.mxu3 %v3736_v48  ;;  %4627 = vst [vmem:[#allocation34_spill] sm:$0xff] %v3770_v29  ;;  %v2978_v35 = vld [vmem:[#allocation12 + $0x1c] sm:$0xf]  ;;  %v2588_v36 = vld [vmem:[#allocation12 + $0x24] sm:$0xf0]  ;;  %v3780_v43 = vor.u32 %v3045_v32, %v2848_v31 }
  0x83   : > { %1393 = vmatpush.bf16.msrb.mxu3 %v3743_v55  ;;  %4628 = vst [vmem:[#allocation35_spill] sm:$0xff] %v3773_v30  ;;  %v2594_v38 = vld [vmem:[#allocation12 + $0x20] sm:$0xf]  ;;  %v2980_v42 = vld [vmem:[#allocation12 + $0x28] sm:$0xf0]  ;;  %v3783_v44 = vor.u32 %v2978_v35, %v2588_v36 }
  0x84   : > { %967 = vmatpush.bf16.msrb.mxu0 %v3728_v41  ;;  %4629 = vst [vmem:[#allocation36_spill] sm:$0xff] %v3777_v37  ;;  %v2576_v47 = vld [vmem:[#allocation12 + $0xc] sm:$0xf0]  ;;  %v3786_v49 = vor.u32 %v2980_v42, %v2594_v38  ;;  %v2582_v50 = vld [vmem:[#allocation12 + $0x8] sm:$0xf] }
  0x85   : > { %980 = vmatpush.bf16.msrb.mxu1 %v3731_v46  ;;  %692 = vmatpush.bf16.msra.mxu2 %v2487_v10  ;;  %4630 = vst [vmem:[#allocation37_spill] sm:$0xff] %v3780_v43  ;;  %v2977_v51 = vld [vmem:[#allocation12 + $0x10] sm:$0xf0]  ;;  %v2832_v56 = vld [vmem:[#allocation13 + $0x140] sm:$0xf] }
  0x86   : > { %4631 = vst [vmem:[#allocation38_spill] sm:$0xff] %v3783_v44  ;;  %v3793_v53 = vor.u32 %v2977_v51, %v2582_v50  ;;  %v3041_v57 = vld [vmem:[#allocation13 + $0x14c] sm:$0xf0]  ;;  %v2816_v59 = vld [vmem:[#allocation13 + $0x120] sm:$0xf] }
  0x87   : > { %1394 = vmatpush.bf16.msrb.mxu3 %v3750_v3  ;;  %4632 = vst [vmem:[#allocation39_spill] sm:$0xff] %v3786_v49  ;;  %v3799_v58 = vor.u32 %v3041_v57, %v2832_v56  ;;  %v3037_v61 = vld [vmem:[#allocation13 + $0x12c] sm:$0xf0]  ;;  %v2800_v0 = vld [vmem:[#allocation13 + $0x100] sm:$0xf] }
  0x88   : > { %968 = vmatpush.bf16.msrb.mxu0 %v3741_v54  ;;  %693 = vmatmul.bf16.vlgmr.msra.gmra.mxu2 %v3716_v26  ;;  %v2975_v26 = vld [vmem:[#allocation12 + $0x4] sm:$0xf]  ;;  %4634 = vst [vmem:[#allocation41_spill] sm:$0xff] %v3793_v53  ;;  %v3802_v63 = vor.u32 %v3037_v61, %v2816_v59  ;;  %v3033_v1 = vld [vmem:[#allocation13 + $0x10c] sm:$0xf0] }
  0x89   : > { %981 = vmatpush.bf16.msrb.mxu1 %v3746_v62  ;;  %v3790_v52 = vor.u32 %v2975_v26, %v2576_v47  ;;  %4635 = vst [vmem:[#allocation42_spill] sm:$0xff] %v3799_v58  ;;  %v3805_v2 = vor.u32 %v3033_v1, %v2800_v0  ;;  %v2920_v5 = vld [vmem:[#allocation13 + $0x1e8] sm:$0xf]  ;;  %v3062_v6 = vld [vmem:[#allocation13 + $0x1f4] sm:$0xf0] }
  0x8a   : > { %4636 = vst [vmem:[#allocation43_spill] sm:$0xff] %v3802_v63  ;;  %v3807_v7 = vor.u32 %v3062_v6, %v2920_v5  ;;  %v3029_v8 = vld [vmem:[#allocation13 + $0xec] sm:$0xf0]  ;;  %v3027_v10 = vld [vmem:[#allocation13 + $0xe4] sm:$0xf] }
  0x8b   : > { %1395 = vmatpush.bf16.msrb.mxu3 %v3759_v14  ;;  %4633 = vst [vmem:[#allocation40_spill] sm:$0xff] %v3790_v52  ;;  %v2786_v13 = vld [vmem:[#allocation13 + $0xf0] sm:$0xf0]  ;;  %v2904_v16 = vld [vmem:[#allocation13 + $0x1c8] sm:$0xf] }
  0x8c   : > { %969 = vmatpush.bf16.msrb.mxu0 %v3753_v4  ;;  %4637 = vst [vmem:[#allocation44_spill] sm:$0xff] %v3805_v2  ;;  %v3058_v17 = vld [vmem:[#allocation13 + $0x1d4] sm:$0xf0]  ;;  %v3813_v18 = vor.u32 %v3027_v10, %v2786_v13  ;;  %v3025_v25 = vld [vmem:[#allocation13 + $0xcc] sm:$0xf0] }
  0x8d   : > { %982 = vmatpush.bf16.msrb.mxu1 %v3756_v11  ;;  %4638 = vst [vmem:[#allocation45_spill] sm:$0xff] %v3807_v7  ;;  %v3815_v20 = vor.u32 %v3058_v17, %v2904_v16  ;;  %v3023_v28 = vld [vmem:[#allocation13 + $0xc4] sm:$0xf]  ;;  %v2770_v32 = vld [vmem:[#allocation13 + $0xd0] sm:$0xf0] }
  0x8e   : > { %4639 = vst [vmem:[#allocation46_spill] sm:$0xff] %v3813_v18  ;;  %v2888_v35 = vld [vmem:[#allocation13 + $0x1a8] sm:$0xf]  ;;  %v3054_v36 = vld [vmem:[#allocation13 + $0x1b4] sm:$0xf0]  ;;  %v3822_v38 = vor.u32 %v3023_v28, %v2770_v32 }
  0x8f   : > { %660 = vmatmul.bf16.gmra.mxu0 %v2950_v22  ;;  %1396 = vmatpush.bf16.msrb.mxu3 %v3770_v29  ;;  %4640 = vst [vmem:[#allocation47_spill] sm:$0xff] %v3815_v20  ;;  %v3824_v42 = vor.u32 %v3054_v36, %v2888_v35  ;;  %v2752_v26 = vld [vmem:[#allocation13 + $0xa0] sm:$0xf]  ;;  %v3021_v47 = vld [vmem:[#allocation13 + $0xac] sm:$0xf0] }
  0x90   : > { %970 = vmatpush.bf16.msrb.mxu0 %v3762_v15  ;;  %679 = vmatmul.bf16.gmra.mxu1 %v2950_v22  ;;  %4641 = vst [vmem:[#allocation48_spill] sm:$0xff] %v3822_v38  ;;  %v3019_v50 = vld [vmem:[#allocation13 + $0xa4] sm:$0xf]  ;;  %v3829_v51 = vor.u32 %v3021_v47, %v2752_v26  ;;  %v2754_v56 = vld [vmem:[#allocation13 + $0xb0] sm:$0xf0] }
  0x91   : > { %983 = vmatpush.bf16.msrb.mxu1 %v3765_v21  ;;  %4642 = vst [vmem:[#allocation49_spill] sm:$0xff] %v3824_v42  ;;  %v2872_v57 = vld [vmem:[#allocation13 + $0x188] sm:$0xf]  ;;  %v3050_v59 = vld [vmem:[#allocation13 + $0x194] sm:$0xf0]  ;;  %v3831_v61 = vor.u32 %v3019_v50, %v2754_v56 }
  0x92   : > { %v3833_v0 = vor.u32 %v3050_v59, %v2872_v57  ;;  %v3838_v1 = vld [vmem:[%s4454_s5] sm:$0x7]  ;;  %v3017_v6 = vld [vmem:[#allocation13 + $0x8c] sm:$0xf0]  ;;  %v2738_v10 = vld [vmem:[#allocation13 + $0x90] sm:$0xf0] }
  0x93   : > { %1397 = vmatpush.bf16.msrb.mxu3 %v3780_v43  ;;  %v2736_v5 = vld [vmem:[#allocation13 + $0x80] sm:$0xf]  ;;  %v2856_v13 = vld [vmem:[#allocation13 + $0x168] sm:$0xf]  ;;  %v3046_v16 = vld [vmem:[#allocation13 + $0x174] sm:$0xf0] }
  0x94   : > { %971 = vmatpush.bf16.msrb.mxu0 %v3773_v30  ;;  %4643 = vst [vmem:[#allocation50_spill] sm:$0xff] %v3833_v0  ;;  %v3846_v17 = vperm.slane %v3838_v1, 0  ;;  %v3853_v28 = vor.u32 %v3046_v16, %v2856_v13  ;;  %v3059_v32 = vld [vmem:[#allocation13 + $0x1e4] sm:$0xf]  ;;  %v2914_v35 = vld [vmem:[#allocation13 + $0x1f0] sm:$0xf0] }
  0x95   : > { %984 = vmatpush.bf16.msrb.mxu1 %v3777_v37  ;;  %v2720_v36 = vld [vmem:[#allocation13 + $0x60] sm:$0xf]  ;;  %v3858_v26 = vor.u32 %v3059_v32, %v2914_v35  ;;  %v3013_v47 = vld [vmem:[#allocation13 + $0x6c] sm:$0xf0]  ;;  %v3011_v50 = vld [vmem:[#allocation13 + $0x64] sm:$0xf] }
  0x96   : > { %4644 = vst [vmem:[#allocation51_spill] sm:$0xff] %v3853_v28  ;;  %v2722_v56 = vld [vmem:[#allocation13 + $0x70] sm:$0xf0]  ;;  %v3860_v59 = vor.u32 %v3013_v47, %v2720_v36  ;;  %v3055_v35 = vld [vmem:[#allocation13 + $0x1c4] sm:$0xf] }
  0x97   : > { %1398 = vmatpush.bf16.msrb.mxu3 %v3799_v58  ;;  %4645 = vst [vmem:[#allocation52_spill] sm:$0xff] %v3858_v26  ;;  %v2704_v47 = vld [vmem:[#allocation13 + $0x40] sm:$0xf]  ;;  %v3047_v43 = vld [vmem:[#allocation13 + $0x184] sm:$0xf] }
  0x98   : > { %972 = vmatpush.bf16.msrb.mxu0 %v3783_v44  ;;  %698 = vmatmul.bf16.gmra.mxu2 %v2950_v22  ;;  %v2768_v22 = vld [vmem:[#allocation13 + $0xc0] sm:$0xf]  ;;  %v2866_v29 = vld [vmem:[#allocation13 + $0x190] sm:$0xf0] }
  0x99   : > { %985 = vmatpush.bf16.msrb.mxu1 %v3786_v49  ;;  %v3820_v31 = vor.u32 %v3025_v25, %v2768_v22  ;;  %v3849_v22 = vperm.slane %v3838_v1, 1 }
  0x9b   : > { %1399 = vmatpush.bf16.msrb.mxu3 %v3802_v63 }
  0x9c   : > { %973 = vmatpush.bf16.msrb.mxu0 %v3790_v52 }
  0x9d   : > { %986 = vmatpush.bf16.msrb.mxu1 %v3793_v53 }
  0x9f   : > { %974 = vmatmul.bf16.vlgmr.msrb.gmra.mxu0 %v3736_v48  ;;  %1400 = vmatpush.bf16.msrb.mxu3 %v3805_v2 }
  0xa0   : > { %987 = vmatmul.bf16.vlgmr.msrb.gmra.mxu1 %v3736_v48  ;;  %v2784_v48 = vld [vmem:[#allocation13 + $0xe0] sm:$0xf]  ;;  %1406 = vmatpush.bf16.msra.mxu0 %v3813_v18 }
  0xa1   : > { %v3811_v12 = vor.u32 %v3029_v8, %v2784_v48  ;;  %v3015_v48 = vld [vmem:[#allocation13 + $0x84] sm:$0xf]  ;;  %v3843_v8 = vor.u32 %v3017_v6, %v2736_v5  ;;  %v3862_v5 = vor.u32 %v3011_v50, %v2722_v56  ;;  %v2840_v6 = vld [vmem:[#allocation13 + $0x148] sm:$0xf]  ;;  %1419 = vmatpush.bf16.msra.mxu1 %v3858_v26  ;;  %v3009_v50 = vld [vmem:[#allocation13 + $0x4c] sm:$0xf0] }
  0xa2   : > { %v3851_v25 = vor.u32 %v3015_v48, %v2738_v10  ;;  %v3042_v48 = vld [vmem:[#allocation13 + $0x154] sm:$0xf0]  ;;  %v3007_v56 = vld [vmem:[#allocation13 + $0x44] sm:$0xf] }
  0xa3   : > { %1445 = vmatpush.bf16.msra.mxu3 %v3807_v7  ;;  %1380 = vmatpush.bf16.msrb.mxu2 %v3811_v12  ;;  %v3866_v16 = vor.u32 %v3042_v48, %v2840_v6  ;;  %v2706_v6 = vld [vmem:[#allocation13 + $0x50] sm:$0xf0]  ;;  %v2824_v48 = vld [vmem:[#allocation13 + $0x128] sm:$0xf] }
  0xa4   : > { %1407 = vmatpush.bf16.msra.mxu0 %v3822_v38 }
  0xa5   : > { %4646 = vst [vmem:[#allocation53_spill] sm:$0xff] %v3866_v16 }
  0xa7   : > { %1446 = vmatpush.bf16.msra.mxu3 %v3815_v20  ;;  %1381 = vmatpush.bf16.msrb.mxu2 %v3820_v31 }
  0xa8   : > { %1408 = vmatpush.bf16.msra.mxu0 %v3831_v61 }
  0xab   : > { %1447 = vmatpush.bf16.msra.mxu3 %v3824_v42  ;;  %1382 = vmatpush.bf16.msrb.mxu2 %v3829_v51  ;;  %v3879_v42 = vor.u32 %v3007_v56, %v2706_v6  ;;  %v2690_v6 = vld [vmem:[#allocation13 + $0x30] sm:$0xf0] }
  0xac   : > { %1409 = vmatpush.bf16.msra.mxu0 %v3851_v25 }
  0xad   : > { %4648 = vst [vmem:[#allocation55_spill] sm:$0xff] %v3879_v42 }
  0xaf   : > { %1448 = vmatpush.bf16.msra.mxu3 %v3833_v0  ;;  %1383 = vmatpush.bf16.msrb.mxu2 %v3843_v8  ;;  %v3876_v0 = vor.u32 %v3009_v50, %v2704_v47  ;;  %v3005_v47 = vld [vmem:[#allocation13 + $0x2c] sm:$0xf0]  ;;  %v3003_v50 = vld [vmem:[#allocation13 + $0x24] sm:$0xf] }
  0xb0   : > { %1410 = vmatpush.bf16.msra.mxu0 %v3862_v5  ;;  %v3895_v58 = vor.u32 %v3003_v50, %v2690_v6  ;;  %v3907_v50 = vor.u32 %v3047_v43, %v2866_v29  ;;  %v2672_v6 = vld [vmem:[#allocation13] sm:$0xf]  ;;  %v3028_v43 = vld [vmem:[#allocation13 + $0xec] sm:$0xf] }
  0xb2   : > { %4652 = vst [vmem:[#allocation59_spill] sm:$0xff] %v3895_v58 }
  0xb3   : > { %1449 = vmatpush.bf16.msra.mxu3 %v3853_v28  ;;  %1384 = vmatpush.bf16.msrb.mxu2 %v3860_v59  ;;  %v2898_v28 = vld [vmem:[#allocation13 + $0x1d0] sm:$0xf0]  ;;  %4654 = vst [vmem:[#allocation61_spill] sm:$0xff] %v3907_v50 }
  0xb4   : > { %v3872_v36 = vor.u32 %v3055_v35, %v2898_v28  ;;  %v3051_v28 = vld [vmem:[#allocation13 + $0x1a4] sm:$0xf]  ;;  %v2882_v35 = vld [vmem:[#allocation13 + $0x1b0] sm:$0xf0]  ;;  %1411 = vmatpush.bf16.msra.mxu0 %v3879_v42 }
  0xb6   : > { %4647 = vst [vmem:[#allocation54_spill] sm:$0xff] %v3872_v36  ;;  %1420 = vmatpush.bf16.msra.mxu1 %v3872_v36  ;;  %v3030_v36 = vld [vmem:[#allocation13 + $0xf4] sm:$0xf0] }
  0xb7   : > { %1450 = vmatpush.bf16.msra.mxu3 %v3866_v16  ;;  %1385 = vmatpush.bf16.msrb.mxu2 %v3876_v0 }
  0xb8   : > { %1412 = vmatpush.bf16.msra.mxu0 %v3895_v58 }
  0xfc   : > { %v656_v57 = vpop.f32.mrf.mxu0 }
  0xfd   : > { %v657_v10 = vadd.f32 %v656_v57, %v3846_v17  ;;  %v675_v13 = vpop.f32.mrf.mxu1 }
  0xfe   : > { %v676_v32 = vadd.f32 %v675_v13, %v3849_v22  ;;  %v3038_v13 = vld [vmem:[#allocation13 + $0x134] sm:$0xf0] }
  0xff   : > { %v3881_v20 = vor.u32 %v3038_v13, %v2824_v48  ;;  %v3891_v48 = vld [vmem:[#allocation3] sm:$0xff] }
 0x100   : > { %v3874_v57 = vpack.c.bf16 %v676_v32, %v657_v10  ;;  %v3887_v10 = vor.u32 %v3051_v28, %v2882_v35  ;;  %v2688_v32 = vld [vmem:[#allocation13 + $0x20] sm:$0xf]  ;;  %4651 = vst [vmem:[#allocation58_spill] sm:$0xff] %v3891_v48  ;;  %v2808_v13 = vld [vmem:[#allocation13 + $0x108] sm:$0xf]  ;;  %v3899_v28 = vpack.c.bf16 %v3891_v48, %v3891_v48 }
 0x101   : > { %4649 = vst [vmem:[#allocation56_spill] sm:$0xff] %v3881_v20  ;;  %1451 = vmatpush.bf16.msra.mxu3 %v3881_v20  ;;  %v3889_v56 = vor.u32 %v3005_v47, %v2688_v32  ;;  %v3034_v35 = vld [vmem:[#allocation13 + $0x114] sm:$0xf0]  ;;  %v3001_v48 = vld [vmem:[#allocation13 + $0xc] sm:$0xf0] }
 0x102   : > { %v992_v16 = vunpack.c.l.bf16 %v3874_v57  ;;  %4650 = vst [vmem:[#allocation57_spill] sm:$0xff] %v3887_v10  ;;  %1421 = vmatpush.bf16.msra.mxu1 %v3887_v10  ;;  %v3903_v47 = vor.u32 %v3034_v35, %v2808_v13  ;;  %1401 = vmatmul.bf16.vlgmr.msrb.gmra.mxu3 %v3899_v28  ;;  %v2999_v10 = vld [vmem:[#allocation13 + $0x4] sm:$0xf]  ;;  %v2674_v13 = vld [vmem:[#allocation13 + $0x10] sm:$0xf0] }
 0x103   : > { %1386 = vmatpush.bf16.msrb.mxu2 %v3889_v56  ;;  %v2792_v35 = vld [vmem:[#allocation13 + $0xe8] sm:$0xf] }
 0x104   : > { %v658_v7 = vpop.f32.mrf.mxu0  ;;  %4653 = vst [vmem:[#allocation60_spill] sm:$0xff] %v3903_v47  ;;  %v3918_v29 = vor.u32 %v3030_v36, %v2792_v35  ;;  %v2776_v36 = vld [vmem:[#allocation13 + $0xc8] sm:$0xf] }
 0x105   : > { %v659_v2 = vadd.f32 %v658_v7, %v3846_v17  ;;  %v677_v63 = vpop.f32.mrf.mxu1  ;;  %v962_v32 = vpop.f32.mrf.mxu3  ;;  %1452 = vmatpush.bf16.msra.mxu3 %v3903_v47  ;;  %v3039_v47 = vld [vmem:[#allocation13 + $0x144] sm:$0xf] }
 0x106   : > { %v678_v20 = vadd.f32 %v677_v63, %v3849_v22  ;;  %v993_v7 = vadd.f32 %v992_v16, %v962_v32  ;;  %v3912_v63 = vor.u32 %v3001_v48, %v2672_v6  ;;  %1422 = vmatpush.bf16.msra.mxu1 %v3907_v50  ;;  %v3916_v16 = vor.u32 %v2999_v10, %v2674_v13  ;;  %v2794_v32 = vld [vmem:[#allocation13 + $0xf8] sm:$0xf0]  ;;  %v2850_v48 = vld [vmem:[#allocation13 + $0x170] sm:$0xf0]  ;;  %v3026_v10 = vld [vmem:[#allocation13 + $0xd4] sm:$0xf0] }
 0x107   : > { %v3024_v13 = vld [vmem:[#allocation13 + $0xcc] sm:$0xf]  ;;  %v2834_v50 = vld [vmem:[#allocation13 + $0x150] sm:$0xf0] }
 0x108   : > { %v3909_v14 = vpack.c.bf16 %v678_v20, %v659_v2  ;;  %v2668_v3 = vmul.f32 -1.442695, %v993_v7  ;;  %4656 = vst [vmem:[#allocation63_spill] sm:$0xff] %v3916_v16  ;;  %1387 = vmatpush.bf16.msrb.mxu2 %v3912_v63  ;;  %v3921_v2 = vor.u32 %v3028_v43, %v2794_v32  ;;  %v3043_v20 = vld [vmem:[#allocation13 + $0x164] sm:$0xf]  ;;  %1413 = vmatpush.bf16.msra.mxu0 %v3916_v16  ;;  %v3930_v43 = vperm.slane %v3838_v1, 2 }
 0x109   : > { %1560 = vmatpush.bf16.msrb.mxu3 %v3718_v27  ;;  %v3925_v7 = vor.u32 %v3043_v20, %v2850_v48  ;;  %v2778_v32 = vld [vmem:[#allocation13 + $0xd8] sm:$0xf0] }
 0x10a   : > { %4655 = vst [vmem:[#allocation62_spill] sm:$0xff] %v3909_v14  ;;  %3179 = vpow2.f32 %v2668_v3  ;;  %v3934_v3 = vor.u32 %v3026_v10, %v2776_v36  ;;  %v3937_v14 = vor.u32 %v3024_v13, %v2778_v32  ;;  %v3020_v36 = vld [vmem:[#allocation13 + $0xac] sm:$0xf]  ;;  %v2762_v13 = vld [vmem:[#allocation13 + $0xb8] sm:$0xf0] }
 0x10b   : > { %4657 = vst [vmem:[#allocation64_spill] sm:$0xff] %v3921_v2  ;;  %1423 = vmatpush.bf16.msra.mxu1 %v3925_v7  ;;  %v694_v26 = vpop.f32.mrf.mxu2 }
 0x10c   : > { %1432 = vmatpush.bf16.msra.mxu2 %v3918_v29  ;;  %4658 = vst [vmem:[#allocation65_spill] sm:$0xff] %v3925_v7  ;;  %v661_v6 = vpop.f32.mrf.mxu0  ;;  %1458 = vmatpush.bf16.msrb.mxu0 %v3921_v2  ;;  %v3022_v7 = vld [vmem:[#allocation13 + $0xb4] sm:$0xf0]  ;;  %v695_v55 = vadd.f32 %v694_v26, %v3930_v43 }
 0x10d   : > { %v662_v35 = vadd.f32 %v661_v6, %v3846_v17  ;;  %v680_v27 = vpop.f32.mrf.mxu1  ;;  %4659 = vst [vmem:[#allocation66_spill] sm:$0xff] %v3930_v43  ;;  %1561 = vmatpush.bf16.msrb.mxu3 %v3728_v41  ;;  %v964_v48 = vpop.f32.mrf.mxu3  ;;  %v3940_v6 = vor.u32 %v3039_v47, %v2834_v50  ;;  %v2760_v41 = vld [vmem:[#allocation13 + $0xa8] sm:$0xf]  ;;  %v3950_v47 = vor.u32 %v3020_v36, %v2762_v13  ;;  %v3035_v50 = vld [vmem:[#allocation13 + $0x124] sm:$0xf]  ;;  %v1014_v13 = vrot.slane %v3874_v57, 4 }
 0x10e   : > { %v681_v20 = vadd.f32 %v680_v27, %v3849_v22  ;;  %4660 = vst [vmem:[#allocation67_spill] sm:$0xff] %v3937_v14  ;;  %v3946_v27 = vor.u32 %v3022_v7, %v2760_v41  ;;  %v2744_v41 = vld [vmem:[#allocation13 + $0x88] sm:$0xf] }
 0x10f   : > { %4661 = vst [vmem:[#allocation68_spill] sm:$0xff] %v3940_v6  ;;  %1424 = vmatpush.bf16.msra.mxu1 %v3940_v6  ;;  %v2728_v57 = vld [vmem:[#allocation13 + $0x68] sm:$0xf] }
 0x110   : > { %1433 = vmatpush.bf16.msra.mxu2 %v3934_v3  ;;  %v708_v1 = vpack.c.bf16 %v681_v20, %v662_v35  ;;  %1459 = vmatpush.bf16.msrb.mxu0 %v3937_v14  ;;  %v3180_v10 = vpop.eup %3179  ;;  %4662 = vst [vmem:[#allocation69_spill] sm:$0xff] %v3950_v47  ;;  %v2818_v35 = vld [vmem:[#allocation13 + $0x130] sm:$0xf0]  ;;  %v705_v20 = vpack.c.bf16 %v695_v55, %v695_v55  ;;  %v3016_v55 = vld [vmem:[#allocation13 + $0x8c] sm:$0xf] }
 0x111   : > { %1562 = vmatpush.bf16.msrb.mxu3 %v3741_v54  ;;  %v3948_v32 = vadd.f32 1.0, %v3180_v10  ;;  %v3953_v48 = vor.u32 %v3035_v50, %v2818_v35  ;;  %v2746_v35 = vld [vmem:[#allocation13 + $0x98] sm:$0xf0]  ;;  %v3031_v54 = vld [vmem:[#allocation13 + $0x104] sm:$0xf] }
 0x112   : > { %716 = vst [vmem:[#allocation4 + $0x18] sm:$0xff] %v708_v1  ;;  %v3018_v1 = vld [vmem:[#allocation13 + $0x94] sm:$0xf0]  ;;  %1453 = vmatmul.bf16.vlgmr.msra.gmra.mxu3 %v3899_v28  ;;  %v3965_v6 = vor.u32 %v3016_v55, %v2746_v35  ;;  %v2730_v35 = vld [vmem:[#allocation13 + $0x78] sm:$0xf0] }
 0x113   : > { %4663 = vst [vmem:[#allocation70_spill] sm:$0xff] %v3953_v48  ;;  %3181 = vrcp.f32 %v3948_v32  ;;  %1425 = vmatpush.bf16.msra.mxu1 %v3953_v48  ;;  %v3962_v50 = vor.u32 %v3018_v1, %v2744_v41  ;;  %v696_v53 = vpop.f32.mrf.mxu2  ;;  %v3014_v41 = vld [vmem:[#allocation13 + $0x74] sm:$0xf0]  ;;  %vm1003_vm1 = vweird.f32 %v3948_v32 }
 0x114   : > { %1434 = vmatpush.bf16.msra.mxu2 %v3946_v27  ;;  %v663_v26 = vpop.f32.mrf.mxu0  ;;  %1460 = vmatpush.bf16.msrb.mxu0 %v3950_v47  ;;  %713 = vst [vmem:[#allocation4 + $0x8] sm:$0xf] %v705_v20  ;;  %v3060_v20 = vld [vmem:[#allocation13 + $0x1ec] sm:$0xf]  ;;  %v697_v1 = vadd.f32 %v696_v53, %v3930_v43  ;;  %v3975_v55 = vor.u32 %v3014_v41, %v2728_v57  ;;  %v2712_v41 = vld [vmem:[#allocation13 + $0x48] sm:$0xf] }
 0x115   : > { %v664_v7 = vadd.f32 %v663_v26, %v3846_v17  ;;  %v682_v10 = vpop.f32.mrf.mxu1  ;;  %1563 = vmatpush.bf16.msrb.mxu3 %v3753_v4  ;;  %4664 = vst [vmem:[#allocation71_spill] sm:$0xff] %v3965_v6  ;;  %v2802_v17 = vld [vmem:[#allocation13 + $0x110] sm:$0xf0]  ;;  %v2922_v26 = vld [vmem:[#allocation13 + $0x1f8] sm:$0xf0] }
 0x116   : > { %v683_v36 = vadd.f32 %v682_v10, %v3849_v22  ;;  %v3968_v48 = vor.u32 %v3031_v54, %v2802_v17  ;;  %v3970_v22 = vor.u32 %v3060_v20, %v2922_v26  ;;  %v3012_v10 = vld [vmem:[#allocation13 + $0x6c] sm:$0xf]  ;;  %4667 = vst [vmem:[#allocation74_spill] sm:$0xff] %v3975_v55  ;;  %v707_v17 = vpack.c.bf16 %v697_v1, %v697_v1  ;;  %v2906_v26 = vld [vmem:[#allocation13 + $0x1d8] sm:$0xf0] }
 0x117   : > { %v3980_v54 = vor.u32 %v3012_v10, %v2730_v35  ;;  %v3056_v53 = vld [vmem:[#allocation13 + $0x1cc] sm:$0xf] }
 0x118   : > { %v710_v4 = vpack.c.bf16 %v683_v36, %v664_v7  ;;  %1435 = vmatpush.bf16.msra.mxu2 %v3962_v50  ;;  %4665 = vst [vmem:[#allocation72_spill] sm:$0xff] %v3968_v48  ;;  %1461 = vmatpush.bf16.msrb.mxu0 %v3965_v6  ;;  %v1016_v36 = vunpack.c.l.bf16 %v1014_v13  ;;  %v3986_v57 = vor.u32 %v3056_v53, %v2906_v26  ;;  %v3010_v13 = vld [vmem:[#allocation13 + $0x54] sm:$0xf0]  ;;  %v3008_v35 = vld [vmem:[#allocation13 + $0x4c] sm:$0xf] }
 0x119   : > { %4666 = vst [vmem:[#allocation73_spill] sm:$0xff] %v3970_v22  ;;  %1564 = vmatpush.bf16.msrb.mxu3 %v3762_v15  ;;  %v3977_v7 = vpop.eup %3181  ;;  %1426 = vmatpush.bf16.msra.mxu1 %v3968_v48  ;;  %v3992_v1 = vor.u32 %v3010_v13, %v2712_v41  ;;  %v2696_v26 = vld [vmem:[#allocation13 + $0x28] sm:$0xf]  ;;  %v3006_v41 = vld [vmem:[#allocation13 + $0x34] sm:$0xf0] }
 0x11a   : > { %718 = vst [vmem:[#allocation4 + $0x24] sm:$0xff] %v710_v4  ;;  %v999_v20 = vmul.f32 %v3977_v7, %v3948_v32  ;;  %v3004_v13 = vld [vmem:[#allocation13 + $0x2c] sm:$0xf]  ;;  %vm1004_vm0 = vweird.f32 %v3977_v7 }
 0x11b   : > { %4668 = vst [vmem:[#allocation75_spill] sm:$0xff] %v3980_v54  ;;  %vm4031_vm2 = vmor %vm1003_vm1, %vm1004_vm0 }
 0x11c   : > { %v975_v15 = vpop.f32.mrf.mxu0  ;;  %1436 = vmatpush.bf16.msra.mxu2 %v3975_v55  ;;  %4669 = vst [vmem:[#allocation76_spill] sm:$0xff] %v3986_v57  ;;  %v1000_v10 = vsub.f32 1.0, %v999_v20  ;;  %1462 = vmatpush.bf16.msrb.mxu0 %v3980_v54 }
 0x11d   : > { %1471 = vmatpush.bf16.msrb.mxu1 %v3970_v22  ;;  %v1017_v4 = vadd.f32 %v1016_v36, %v975_v15  ;;  %715 = vst [vmem:[#allocation4 + $0x14] sm:$0xf] %v707_v17  ;;  %v3988_v48 = vpop.f32.mrf.mxu1  ;;  %1565 = vmatpush.bf16.msrb.mxu3 %v3773_v30  ;;  %v2714_v22 = vld [vmem:[#allocation13 + $0x58] sm:$0xf0]  ;;  %v3052_v15 = vld [vmem:[#allocation13 + $0x1ac] sm:$0xf] }
 0x11e   : > { %4670 = vst [vmem:[#allocation77_spill] sm:$0xff] %v3992_v1  ;;  %1427 = vmatmul.bf16.vlgmr.msra.gmra.mxu1 %v3899_v28  ;;  %v3996_v53 = vor.u32 %v3008_v35, %v2714_v22  ;;  %v2890_v36 = vld [vmem:[#allocation13 + $0x1b8] sm:$0xf0]  ;;  %v1001_v17 = vmul.f32 %v3977_v7, %v1000_v10  ;;  %v3048_v35 = vld [vmem:[#allocation13 + $0x18c] sm:$0xf] }
 0x11f   : > { %v2669_v43 = vmul.f32 -1.442695, %v1017_v4  ;;  %v4000_v20 = vor.u32 %v3052_v15, %v2890_v36  ;;  %v4004_v4 = vor.u32 %v3006_v41, %v2696_v26  ;;  %v2698_v22 = vld [vmem:[#allocation13 + $0x38] sm:$0xf0]  ;;  %v2680_v15 = vld [vmem:[#allocation13 + $0x8] sm:$0xf] }
 0x120   : > { %4671 = vst [vmem:[#allocation78_spill] sm:$0xff] %v3996_v53  ;;  %1437 = vmatpush.bf16.msra.mxu2 %v3992_v1  ;;  %1463 = vmatpush.bf16.msrb.mxu0 %v3996_v53  ;;  %v2874_v30 = vld [vmem:[#allocation13 + $0x198] sm:$0xf0]  ;;  %v3002_v36 = vld [vmem:[#allocation13 + $0x14] sm:$0xf0] }
 0x121   : > { %1472 = vmatpush.bf16.msrb.mxu1 %v3986_v57  ;;  %4672 = vst [vmem:[#allocation79_spill] sm:$0xff] %v4000_v20  ;;  %3183 = vpow2.f32 %v2669_v43  ;;  %1566 = vmatpush.bf16.msrb.mxu3 %v3783_v44  ;;  %v4006_v57 = vor.u32 %v3004_v13, %v2698_v22  ;;  %v4009_v10 = vor.u32 %v3048_v35, %v2874_v30  ;;  %v3000_v1 = vld [vmem:[#allocation13 + $0xc] sm:$0xf]  ;;  %v2682_v41 = vld [vmem:[#allocation13 + $0x18] sm:$0xf0]  ;;  %v1009_v13 = vand.u32 2147483648, %v3948_v32 }
 0x122   : > { %4673 = vst [vmem:[#allocation80_spill] sm:$0xff] %v4004_v4  ;;  %v1002_v43 = vadd.f32 %v3977_v7, %v1001_v17  ;;  %v4014_v26 = vor.u32 %v3002_v36, %v2680_v15  ;;  %v4019_v30 = vor.u32 %v3000_v1, %v2682_v41  ;;  %v3044_v35 = vld [vmem:[#allocation13 + $0x16c] sm:$0xf]  ;;  %v1007_v17 = vand.u32 2147483647, %v3948_v32 }
 0x123   : > { %4674 = vst [vmem:[#allocation81_spill] sm:$0xff] %v4006_v57  ;;  %v4026_v15 = vld [vmem:[%s4455_s6] ss:$0 sm:$0xff]  ;;  %v2842_v44 = vld [vmem:[#allocation13 + $0x158] sm:$0xf0] }
 0x124   : > { %4675 = vst [vmem:[#allocation82_spill] sm:$0xff] %v4009_v10  ;;  %v977_v55 = vpop.f32.mrf.mxu0  ;;  %1438 = vmatpush.bf16.msra.mxu2 %v4004_v4  ;;  %1464 = vmatpush.bf16.msrb.mxu0 %v4006_v57  ;;  %v1006_v32 = vsel %vm4031_vm2, %v3977_v7, %v1002_v43  ;;  %vm1008_vm3 = vcmp.eq.f32.partialorder %v1007_v17, 8.507059e+37  ;;  %v3036_v7 = vld [vmem:[#allocation13 + $0x12c] sm:$0xf]  ;;  %v2826_v43 = vld [vmem:[#allocation13 + $0x138] sm:$0xf0] }
 0x125   : > { %1473 = vmatpush.bf16.msrb.mxu1 %v4000_v20  ;;  %4676 = vst [vmem:[#allocation83_spill] sm:$0xff] %v4014_v26  ;;  %v990_v22 = vpop.f32.mrf.mxu1  ;;  %1567 = vmatpush.bf16.msrb.mxu3 %v3790_v52  ;;  %v2858_v55 = vld [vmem:[#allocation13 + $0x178] sm:$0xf0]  ;;  %v1010_v52 = vor.u32 1.1754944e-38, %v1009_v13  ;;  %v1040_v20 = vadd.f32 %v4026_v15, %v3988_v48  ;;  %v4051_v17 = vor.u32 %v3036_v7, %v2826_v43 }
 0x126   : > { %4677 = vst [vmem:[#allocation84_spill] sm:$0xff] %v4019_v30  ;;  %v4036_v1 = vor.u32 %v3044_v35, %v2858_v55  ;;  %v823_v35 = vld [vmem:[#allocation4 + $0x8] sm:$0xf] }
 0x127   : > { %4678 = vst [vmem:[#allocation85_spill] sm:$0xff] %v4026_v15  ;;  %v3184_v36 = vpop.eup %3183  ;;  %v1011_v55 = vsel %vm1008_vm3, %v1010_v52, %v1006_v32  ;;  %v1042_v22 = vunpack.c.l.bf16 %v823_v35  ;;  %v3032_v15 = vld [vmem:[#allocation13 + $0x10c] sm:$0xf] }
 0x128   : > { %4681 = vst [vmem:[#allocation86_spill] sm:$0xff] %v4036_v1  ;;  %v1021_v41 = vadd.f32 1.0, %v3184_v36  ;;  %1439 = vmatpush.bf16.msra.mxu2 %v4014_v26  ;;  %1465 = vmatpush.bf16.msrb.mxu0 %v4019_v30  ;;  %v1041_v13 = vmul.f32 %v1040_v20, %v1011_v55 }
 0x129   : > { %1668 = vmatpush.bf16.msra.mxu3 %v3813_v18  ;;  %1474 = vmatpush.bf16.msrb.mxu1 %v4009_v10  ;;  %v3040_v18 = vld [vmem:[#allocation13 + $0x14c] sm:$0xf]  ;;  %4683 = vst [vmem:[#allocation88_spill] sm:$0xff] %v4051_v17 }
 0x12a   : > { %3185 = vrcp.f32 %v1021_v41  ;;  %v4047_v36 = vor.u32 %v3040_v18, %v2842_v44  ;;  %v1043_v26 = vadd.f32 %v1042_v22, %v1041_v13  ;;  %v1033_v18 = vand.u32 2147483648, %v1021_v41 }
 0x12b   : > { %v1031_v32 = vand.u32 2147483647, %v1021_v41  ;;  %vm1027_vm5 = vweird.f32 %v1021_v41  ;;  %v1793_v22 = vstv %s1792_s30 }
 0x12c   : > { %4682 = vst [vmem:[#allocation87_spill] sm:$0xff] %v4047_v36  ;;  %3187 = vtanh.f32 %v1043_v26  ;;  %v1034_v55 = vor.u32 1.1754944e-38, %v1033_v18 }
 0x12d   : > { %1669 = vmatpush.bf16.msra.mxu3 %v3822_v38  ;;  %1475 = vmatpush.bf16.msrb.mxu1 %v4036_v1  ;;  %v2810_v38 = vld [vmem:[#allocation13 + $0x118] sm:$0xf0]  ;;  %vm1032_vm7 = vcmp.eq.f32.partialorder %v1031_v32, 8.507059e+37 }
 0x12e   : > { %v4055_v44 = vor.u32 %v3032_v15, %v2810_v38 }
 0x130   : > { %v3186_v10 = vpop.eup %3185  ;;  %4684 = vst [vmem:[#allocation89_spill] sm:$0xff] %v4055_v44 }
 0x131   : > { %1670 = vmatpush.bf16.msra.mxu3 %v3831_v61  ;;  %1476 = vmatpush.bf16.msrb.mxu1 %v4047_v36  ;;  %v1023_v48 = vmul.f32 %v3186_v10, %v1021_v41  ;;  %vm1028_vm4 = vweird.f32 %v3186_v10 }
 0x132   : > { %vm1029_vm6 = vmor %vm1027_vm5, %vm1028_vm4  ;;  %v3188_v26 = vpop.eup %3187 }
 0x133   : > { %v1024_v52 = vsub.f32 1.0, %v1023_v48  ;;  %v3498_v48 = vmov 0  }
 0x134   : > { %3166 = vset.pattern.permute.xlu0 %v3498_v48 }
 0x135   : > { %1671 = vmatpush.bf16.msra.mxu3 %v3851_v25  ;;  %1477 = vmatpush.bf16.msrb.mxu1 %v4051_v17  ;;  %v1025_v20 = vmul.f32 %v3186_v10, %v1024_v52  ;;  %v4551_v52 = vmov 0.0  }
 0x137   : > { %v1026_v35 = vadd.f32 %v3186_v10, %v1025_v20 }
 0x139   : > { %1672 = vmatpush.bf16.msra.mxu3 %v3862_v5  ;;  %1478 = vmatpush.bf16.msrb.mxu1 %v4055_v44  ;;  %v1030_v7 = vsel %vm1029_vm6, %v3186_v10, %v1026_v35  ;;  %v4686_v35 = vld [vmem:[#allocation41_spill] sm:$0xff] }
 0x13a   : > { %v1035_v38 = vsel %vm1032_vm7, %v1034_v55, %v1030_v7  ;;  %v4687_v55 = vld [vmem:[#allocation28_spill] sm:$0xff] }
 0x13b   : > { %v1045_v15 = vsub.f32 1.0, %v1035_v38  ;;  %v1047_v43 = vmul.f32 %v1035_v38, %v3725_v40  ;;  %v4076_v40 = vld [vmem:[%s4450_s1] sm:$0xff]  ;;  %v4689_v38 = vld [vmem:[#allocation29_spill] sm:$0xff] }
 0x13c   : > { %1479 = vmatmul.bf16.vlgmr.msrb.gmra.mxu1 %v3899_v28  ;;  %4685 = vst [vmem:[#allocation90_spill] sm:$0xff] %v4076_v40  ;;  %v1533_v28 = vstv %s3691_s7  ;;  %vm1794_vm9 = vcmp.lt.s32.totalorder %v1793_v22, %v4076_v40  ;;  %v4688_v7 = vld [vmem:[#allocation52_spill] sm:$0xff]  ;;  %v4694_v22 = vld [vmem:[#allocation66_spill] sm:$0xff] }
 0x13d   : > { %1642 = vmatpush.bf16.msra.mxu1 %v3811_v12  ;;  %1673 = vmatpush.bf16.msra.mxu3 %v3879_v42  ;;  %v1046_v41 = vmul.f32 %v3188_v26, %v1045_v15  ;;  %vm1534_vm8 = vcmp.lt.s32.totalorder %v1533_v28, %v4076_v40  ;;  %v2933_v20 = vsel %vm1794_vm9, 1.0, %v4551_v52  ;;  %v4690_v15 = vld [vmem:[#allocation54_spill] sm:$0xff]  ;;  %v4693_v28 = vld [vmem:[#allocation57_spill] sm:$0xff] }
 0x13e   : > { %v2928_v18 = vsel %vm1534_vm8, 1.0, %v4551_v52  ;;  %v4691_v26 = vld [vmem:[#allocation74_spill] sm:$0xff]  ;;  %v4697_v52 = vld [vmem:[#allocation61_spill] sm:$0xff] }
 0x13f   : > { %v4065_v13 = vadd.f32 %v1047_v43, %v1046_v41  ;;  %v3167_v32 = vpack.i.bf16 %v2933_v20, %v2928_v18  ;;  %v4692_v41 = vld [vmem:[#allocation31_spill] sm:$0xff]  ;;  %v699_v43 = vpop.f32.mrf.mxu2  ;;  %v4695_v18 = vld [vmem:[#allocation77_spill] sm:$0xff] }
 0x140   : > { %v700_v48 = vadd.f32 %v699_v43, %v4694_v22 }
 0x141   : > { %1643 = vmatpush.bf16.msra.mxu1 %v3820_v31  ;;  %1674 = vmatpush.bf16.msra.mxu3 %v3895_v58  ;;  %v1049_v10 = vpack.c.bf16 %v4065_v13, %v4065_v13 }
 0x142   : > { %3168 = vperm.xlu0 %3166, %v3167_v32   ;;  %v709_v20 = vpack.c.bf16 %v700_v48, %v700_v48  ;;  %v4696_v32 = vld [vmem:[#allocation34_spill] sm:$0xff]  ;;  %v4702_v48 = vld [vmem:[#allocation68_spill] sm:$0xff] }
 0x143   : > { %1388 = vmatmul.bf16.vlgmr.msrb.gmra.mxu2 %v1049_v10  ;;  %1414 = vmatmul.bf16.vlgmr.msra.gmra.mxu0 %v1049_v10 }
 0x144   : > { %1568 = vmatmul.bf16.vlgmr.msrb.gmra.mxu3 %v1049_v10  ;;  %1547 = vmatpush.bf16.msrb.mxu2 %v3694_v19  ;;  %717 = vst [vmem:[#allocation4 + $0x20] sm:$0xf] %v709_v20  ;;  %v4704_v20 = vld [vmem:[#allocation70_spill] sm:$0xff] }
 0x145   : > { %1644 = vmatpush.bf16.msra.mxu1 %v3829_v51  ;;  %1675 = vmatpush.bf16.msra.mxu3 %v3916_v16 }
 0x146   : > { %1573 = vmatpush.bf16.msra.mxu0 %v3720_v33 }
 0x147   : > { %v701_v40 = vpop.f32.mrf.mxu2 }
 0x148   : > { %1548 = vmatpush.bf16.msrb.mxu2 %v3697_v24 }
 0x149   : > { %1645 = vmatpush.bf16.msra.mxu1 %v3843_v8  ;;  %1720 = vmatpush.bf16.msrb.mxu3 %v3921_v2 }
 0x14a   : > { %1574 = vmatpush.bf16.msra.mxu0 %v3731_v46 }
 0x14c   : > { %1549 = vmatpush.bf16.msrb.mxu2 %v3700_v34 }
 0x14d   : > { %1646 = vmatpush.bf16.msra.mxu1 %v3860_v59  ;;  %1721 = vmatpush.bf16.msrb.mxu3 %v3937_v14 }
 0x14e   : > { %1575 = vmatpush.bf16.msra.mxu0 %v3746_v62 }
 0x150   : > { %1550 = vmatpush.bf16.msrb.mxu2 %v3703_v45 }
 0x151   : > { %1647 = vmatpush.bf16.msra.mxu1 %v3876_v0  ;;  %1722 = vmatpush.bf16.msrb.mxu3 %v3950_v47 }
 0x152   : > { %1576 = vmatpush.bf16.msra.mxu0 %v3756_v11 }
 0x153   : > { %1440 = vmatmul.bf16.vlgmr.msra.gmra.mxu2 %v1049_v10  ;;  %1466 = vmatmul.bf16.vlgmr.msrb.gmra.mxu0 %v1049_v10 }
 0x154   : > { %1551 = vmatpush.bf16.msrb.mxu2 %v3706_v60 }
 0x155   : > { %1648 = vmatpush.bf16.msra.mxu1 %v3889_v56  ;;  %1723 = vmatpush.bf16.msrb.mxu3 %v3965_v6  ;;  %v4707_v6 = vld [vmem:[#allocation72_spill] sm:$0xff] }
 0x156   : > { %1577 = vmatpush.bf16.msra.mxu0 %v3765_v21 }
 0x158   : > { %1552 = vmatpush.bf16.msrb.mxu2 %v3709_v9 }
 0x159   : > { %1649 = vmatpush.bf16.msra.mxu1 %v3912_v63  ;;  %1724 = vmatpush.bf16.msrb.mxu3 %v3980_v54  ;;  %v4701_v54 = vld [vmem:[#allocation42_spill] sm:$0xff] }
 0x15a   : > { %1578 = vmatpush.bf16.msra.mxu0 %v3777_v37 }
 0x15c   : > { %1553 = vmatpush.bf16.msrb.mxu2 %v3712_v23 }
 0x15d   : > { %1694 = vmatpush.bf16.msrb.mxu1 %v3918_v29  ;;  %1725 = vmatpush.bf16.msrb.mxu3 %v3996_v53  ;;  %v4700_v53 = vld [vmem:[#allocation83_spill] sm:$0xff] }
 0x15e   : > { %1579 = vmatpush.bf16.msra.mxu0 %v3786_v49 }
 0x160   : > { %1554 = vmatpush.bf16.msrb.mxu2 %v3723_v39 }
 0x161   : > { %1695 = vmatpush.bf16.msrb.mxu1 %v3934_v3  ;;  %1726 = vmatpush.bf16.msrb.mxu3 %v4006_v57  ;;  %v702_v57 = vadd.f32 %v701_v40, %v4694_v22  ;;  %v4709_v40 = vld [vmem:[#allocation47_spill] sm:$0xff]  ;;  %v4711_v22 = vld [vmem:[#allocation49_spill] sm:$0xff] }
 0x162   : > { %1580 = vmatpush.bf16.msra.mxu0 %v4686_v35 }
 0x163   : > { %1555 = vmatmul.bf16.vlgmr.msrb.gmra.mxu2 %v1049_v10  ;;  %v711_v43 = vpack.c.bf16 %v702_v57, %v702_v57  ;;  %v4710_v57 = vld [vmem:[#allocation76_spill] sm:$0xff] }
 0x164   : > { %1655 = vmatpush.bf16.msra.mxu2 %v4687_v55 }
 0x165   : > { %1696 = vmatpush.bf16.msrb.mxu1 %v3946_v27  ;;  %1727 = vmatpush.bf16.msrb.mxu3 %v4019_v30  ;;  %v4699_v30 = vld [vmem:[#allocation65_spill] sm:$0xff]  ;;  %719 = vst [vmem:[#allocation4 + $0x2c] sm:$0xf] %v711_v43 }
 0x166   : > { %1681 = vmatpush.bf16.msrb.mxu0 %v4688_v7 }
 0x167   : > { %1581 = vmatmul.bf16.vlgmr.msra.gmra.mxu0 %v1049_v10  ;;  %v4698_v10 = vld [vmem:[#allocation37_spill] sm:$0xff] }
 0x168   : > { %1656 = vmatpush.bf16.msra.mxu2 %v4689_v38 }
 0x169   : > { %1697 = vmatpush.bf16.msrb.mxu1 %v3962_v50 }
 0x16a   : > { %1682 = vmatpush.bf16.msrb.mxu0 %v4690_v15 }
 0x16c   : > { %1657 = vmatpush.bf16.msra.mxu2 %v4692_v41 }
 0x16d   : > { %1698 = vmatpush.bf16.msrb.mxu1 %v4691_v26 }
 0x16e   : > { %1683 = vmatpush.bf16.msrb.mxu0 %v4693_v28 }
 0x170   : > { %1658 = vmatpush.bf16.msra.mxu2 %v4696_v32  ;;  %v4703_v32 = vld [vmem:[#allocation43_spill] sm:$0xff] }
 0x171   : > { %1699 = vmatpush.bf16.msrb.mxu1 %v4695_v18 }
 0x172   : > { %1684 = vmatpush.bf16.msrb.mxu0 %v4697_v52  ;;  %v4705_v52 = vld [vmem:[#allocation44_spill] sm:$0xff] }
 0x174   : > { %1659 = vmatpush.bf16.msra.mxu2 %v4698_v10  ;;  %v4706_v10 = vld [vmem:[#allocation45_spill] sm:$0xff] }
 0x175   : > { %1700 = vmatpush.bf16.msrb.mxu1 %v4004_v4 }
 0x176   : > { %1685 = vmatpush.bf16.msrb.mxu0 %v4699_v30  ;;  %v4708_v30 = vld [vmem:[#allocation73_spill] sm:$0xff] }
 0x178   : > { %1660 = vmatpush.bf16.msra.mxu2 %v4701_v54 }
 0x179   : > { %1701 = vmatpush.bf16.msrb.mxu1 %v4700_v53 }
 0x17a   : > { %1686 = vmatpush.bf16.msrb.mxu0 %v4702_v48  ;;  %v4712_v48 = vld [vmem:[#allocation79_spill] sm:$0xff] }
 0x17c   : > { %1661 = vmatpush.bf16.msra.mxu2 %v4703_v32  ;;  %v4713_v32 = vld [vmem:[#allocation50_spill] sm:$0xff] }
 0x17e   : > { %1687 = vmatpush.bf16.msrb.mxu0 %v4704_v20  ;;  %v4714_v20 = vld [vmem:[#allocation82_spill] sm:$0xff] }
 0x180   : > { %1662 = vmatpush.bf16.msra.mxu2 %v4705_v52  ;;  %v4715_v52 = vld [vmem:[#allocation51_spill] sm:$0xff] }
 0x182   : > { %1688 = vmatpush.bf16.msrb.mxu0 %v4707_v6  ;;  %v4716_v6 = vld [vmem:[#allocation53_spill] sm:$0xff] }
 0x184   : > { %1707 = vmatpush.bf16.msrb.mxu2 %v4706_v10 }
 0x185   : > { %v1402_v43 = vpop.f32.mrf.mxu3 }
 0x186   : > { %1733 = vmatpush.bf16.msra.mxu0 %v4708_v30 }
 0x188   : > { %1708 = vmatpush.bf16.msrb.mxu2 %v4709_v40  ;;  %v4717_v40 = vld [vmem:[#allocation56_spill] sm:$0xff] }
 0x18a   : > { %1734 = vmatpush.bf16.msra.mxu0 %v4710_v57 }
 0x18c   : > { %1709 = vmatpush.bf16.msrb.mxu2 %v4711_v22 }
 0x18d   : > { %v1404_v10 = vpop.f32.mrf.mxu3 }
 0x18e   : > { %1735 = vmatpush.bf16.msra.mxu0 %v4712_v48  ;;  %v4718_v48 = vld [vmem:[#allocation60_spill] sm:$0xff] }
 0x18f   : > { %v818_v10 = vld [vmem:[%s4457_s8] sm:$0xf] }
 0x190   : > { %1710 = vmatpush.bf16.msrb.mxu2 %v4713_v32  ;;  %v4161_v30 = vperm.slane %v818_v10, 0 }
 0x192   : > { %1736 = vmatpush.bf16.msra.mxu0 %v4714_v20  ;;  %4720 = vst [vmem:[#allocation66_spill] sm:$0xff] %v4161_v30 }
 0x194   : > { %1711 = vmatpush.bf16.msrb.mxu2 %v4715_v52 }
 0x195   : > { %v4151_v22 = vpop.f32.mrf.mxu3 }
 0x196   : > { %1737 = vmatpush.bf16.msra.mxu0 %v4036_v1 }
 0x198   : > { %1712 = vmatpush.bf16.msrb.mxu2 %v4716_v6  ;;  %v4158_v6 = vperm.slane %v818_v10, 1 }
 0x19a   : > { %1738 = vmatpush.bf16.msra.mxu0 %v4047_v36  ;;  %4719 = vst [vmem:[#allocation74_spill] sm:$0xff] %v4158_v6 }
 0x19b   : > { %v1428_v20 = vpop.f32.mrf.mxu1 }
 0x19c   : > { %1713 = vmatpush.bf16.msrb.mxu2 %v4717_v40 }
 0x19d   : > { %v1456_v32 = vpop.f32.mrf.mxu3 }
 0x19e   : > { %1739 = vmatpush.bf16.msra.mxu0 %v4051_v17 }
 0x1a0   : > { %1714 = vmatpush.bf16.msrb.mxu2 %v4718_v48 }
 0x1a2   : > { %1740 = vmatpush.bf16.msra.mxu0 %v4055_v44 }
 0x1a3   : > { %v1430_v52 = vpop.f32.mrf.mxu1 }
 0x1b9   : > { %v1480_v57 = vpop.f32.mrf.mxu1 }
 0x1c0   : > { %v1415_v40 = vpop.f32.mrf.mxu0 }
 0x1c1   : > { %v1482_v36 = vpop.f32.mrf.mxu1  ;;  %v1416_v17 = vadd.f32 %v1415_v40, %v4158_v6 }
 0x1c3   : > { %v1429_v1 = vadd.f32 %v1428_v20, %v1416_v17  ;;  %v4721_v20 = vld [vmem:[#allocation62_spill] sm:$0xff] }
 0x1c4   : > { %v1608_v6 = vrot.slane %v4721_v20, 4 }
 0x1c5   : > { %v2927_v48 = vmul.f32 -1.442695, %v1429_v1 }
 0x1c6   : > { %v1389_v54 = vpop.f32.mrf.mxu2 }
 0x1c7   : > { %3189 = vpow2.f32 %v2927_v48  ;;  %v1390_v32 = vadd.f32 %v1389_v54, %v4161_v30  ;;  %v1569_v52 = vpop.f32.mrf.mxu3  ;;  %v1610_v54 = vunpack.c.l.bf16 %v1608_v6  ;;  %v4165_v30 = vperm.slane %v818_v10, 3  ;;  %v4173_v6 = vld [vmem:[%s4724_s25] ss:$0 sm:$0xff] }
 0x1c8   : > { %v1417_v44 = vpop.f32.mrf.mxu0 }
 0x1c9   : > { %v1403_v28 = vadd.f32 %v1402_v43, %v1390_v32  ;;  %4722 = vst [vmem:[#allocation62_spill] sm:$0xff] %v4165_v30 }
 0x1cb   : > { %v2926_v41 = vmul.f32 -1.442695, %v1403_v28  ;;  %v1611_v28 = vadd.f32 %v1610_v54, %v1569_v52 }
 0x1cd   : > { %v3190_v47 = vpop.eup %3189  ;;  %3191 = vpow2.f32 %v2926_v41 }
 0x1ce   : > { %v1506_v15 = vadd.f32 1.0, %v3190_v47  ;;  %v1391_v38 = vpop.f32.mrf.mxu2 }
 0x1cf   : > { %v1571_v36 = vpop.f32.mrf.mxu3 }
 0x1d0   : > { %v1467_v14 = vpop.f32.mrf.mxu0  ;;  %3193 = vrcp.f32 %v1506_v15  ;;  %v2930_v36 = vmul.f32 -1.442695, %v1611_v28  ;;  %vm1512_vm15 = vweird.f32 %v1506_v15 }
 0x1d1   : > { %v1468_v47 = vadd.f32 %v1467_v14, %v4165_v30  ;;  %v1518_v30 = vand.u32 2147483648, %v1506_v15 }
 0x1d3   : > { %v3192_v40 = vpop.eup %3191  ;;  %v1481_v39 = vadd.f32 %v1480_v57, %v1468_v47  ;;  %v1586_v57 = vunpack.c.l.bf16 %v4721_v20 }
 0x1d4   : > { %v1487_v17 = vadd.f32 1.0, %v3192_v40  ;;  %v4168_v40 = vperm.slane %v818_v10, 2 }
 0x1d6   : > { %3195 = vrcp.f32 %v1487_v17  ;;  %v1441_v1 = vpop.f32.mrf.mxu2  ;;  %v3194_v48 = vpop.eup %3193  ;;  %4723 = vst [vmem:[#allocation91_spill] sm:$0xff] %v4168_v40  ;;  %v1499_v35 = vand.u32 2147483648, %v1487_v17  ;;  %vm1493_vm11 = vweird.f32 %v1487_v17 }
 0x1d7   : > { %v1508_v44 = vmul.f32 %v3194_v48, %v1506_v15  ;;  %3197 = vpow2.f32 %v2930_v36  ;;  %vm1513_vm14 = vweird.f32 %v3194_v48 }
 0x1d8   : > { %v1469_v7 = vpop.f32.mrf.mxu0  ;;  %v1500_v10 = vor.u32 1.1754944e-38, %v1499_v35  ;;  %vm1514_vm0 = vmor %vm1512_vm15, %vm1513_vm14 }
 0x1d9   : > { %v1509_v41 = vsub.f32 1.0, %v1508_v44  ;;  %v1497_v7 = vand.u32 2147483647, %v1487_v17  ;;  %v1442_v44 = vadd.f32 %v1441_v1, %v4168_v40 }
 0x1db   : > { %v1510_v14 = vmul.f32 %v3194_v48, %v1509_v41  ;;  %vm1498_vm13 = vcmp.eq.f32.partialorder %v1497_v7, 8.507059e+37  ;;  %v1455_v41 = vadd.f32 %v4151_v22, %v1442_v44 }
 0x1dc   : > { %v3196_v43 = vpop.eup %3195 }
 0x1dd   : > { %v1489_v38 = vmul.f32 %v3196_v43, %v1487_v17  ;;  %vm1494_vm10 = vweird.f32 %v3196_v43  ;;  %v1516_v17 = vand.u32 2147483647, %v1506_v15  ;;  %v3198_v1 = vpop.eup %3197 }
 0x1de   : > { %v1443_v32 = vpop.f32.mrf.mxu2  ;;  %vm1495_vm12 = vmor %vm1493_vm11, %vm1494_vm10  ;;  %v1615_v20 = vadd.f32 1.0, %v3198_v1 }
 0x1df   : > { %v1490_v55 = vsub.f32 1.0, %v1489_v38  ;;  %v1511_v32 = vadd.f32 %v3194_v48, %v1510_v14  ;;  %vm1517_vm1 = vcmp.eq.f32.partialorder %v1516_v17, 8.507059e+37  ;;  %v4727_v17 = vld [vmem:[#allocation26_spill] sm:$0xff] }
 0x1e0   : > { %vm1621_vm7 = vweird.f32 %v1615_v20 }
 0x1e1   : > { %v1491_v2 = vmul.f32 %v3196_v43, %v1490_v55  ;;  %v1525_v55 = vadd.f32 %v4173_v6, %v1481_v39  ;;  %v1515_v7 = vsel %vm1514_vm0, %v3194_v48, %v1511_v32  ;;  %v1519_v39 = vor.u32 1.1754944e-38, %v1518_v30 }
 0x1e3   : > { %v1492_v54 = vadd.f32 %v3196_v43, %v1491_v2  ;;  %v1520_v14 = vsel %vm1517_vm1, %v1519_v39, %v1515_v7  ;;  %v4728_v39 = vld [vmem:[#allocation27_spill] sm:$0xff] }
 0x1e4   : > { %v4175_v52 = vpop.f32.mrf.mxu0 }
 0x1e5   : > { %v1496_v28 = vsel %vm1495_vm12, %v3196_v43, %v1492_v54 }
 0x1e6   : > { %v1501_v47 = vsel %vm1498_vm13, %v1500_v10, %v1496_v28  ;;  %v1556_v38 = vpop.f32.mrf.mxu2  ;;  %v1529_v10 = vsub.f32 1.0, %v1520_v14 }
 0x1e7   : > { %v1526_v53 = vmul.f32 %v1525_v55, %v1501_v47  ;;  %v1587_v2 = vadd.f32 %v1586_v57, %v1556_v38  ;;  %v4725_v55 = vld [vmem:[#allocation58_spill] sm:$0xff]  ;;  %v4726_v38 = vld [vmem:[#allocation24_spill] sm:$0xff] }
 0x1e8   : > { %v1531_v15 = vmul.f32 %v1520_v14, %v4725_v55 }
 0x1e9   : > { %v1527_v36 = vadd.f32 %v1526_v53, %v1455_v41  ;;  %v2929_v35 = vmul.f32 -1.442695, %v1587_v2 }
 0x1eb   : > { %3199 = vtanh.f32 %v1527_v36 }
 0x1ec   : > { %v1584_v43 = vpop.f32.mrf.mxu0  ;;  %3201 = vpow2.f32 %v2929_v35 }
 0x1ed   : > { %3203 = vrcp.f32 %v1615_v20 }
 0x1ee   : > { %v1558_v54 = vpop.f32.mrf.mxu2 }
 0x1ef   : > { %v1546_v54 = vld [vmem:[#allocation4 + $0x14] sm:$0xf] }
 0x1f1   : > { %v3200_v28 = vpop.eup %3199 }
 0x1f2   : > { %v3202_v22 = vpop.eup %3201  ;;  %v1530_v44 = vmul.f32 %v3200_v28, %v1529_v10  ;;  %v4729_v28 = vld [vmem:[#allocation85_spill] sm:$0xff] }
 0x1f3   : > { %v1591_v57 = vadd.f32 1.0, %v3202_v22  ;;  %v3204_v47 = vpop.eup %3203  ;;  %v1631_v22 = vadd.f32 %v4729_v28, %v4175_v52  ;;  %v4731_v52 = vld [vmem:[#allocation32_spill] sm:$0xff] }
 0x1f4   : > { %v4182_v53 = vadd.f32 %v1531_v15, %v1530_v44  ;;  %v1617_v48 = vmul.f32 %v3204_v47, %v1615_v20  ;;  %vm1622_vm6 = vweird.f32 %v3204_v47  ;;  %v4734_v28 = vld [vmem:[#allocation40_spill] sm:$0xff] }
 0x1f5   : > { %3205 = vrcp.f32 %v1591_v57  ;;  %v1603_v36 = vand.u32 2147483648, %v1591_v57  ;;  %v1601_v43 = vand.u32 2147483647, %v1591_v57  ;;  %vm1597_vm3 = vweird.f32 %v1591_v57  ;;  %vm1623_vm8 = vmor %vm1621_vm7, %vm1622_vm6 }
 0x1f6   : > { %v1641_v30 = vpack.c.bf16 %v4182_v53, %v4182_v53  ;;  %v1618_v2 = vsub.f32 1.0, %v1617_v48  ;;  %v4730_v48 = vld [vmem:[#allocation30_spill] sm:$0xff] }
 0x1f7   : > { %v1604_v10 = vor.u32 1.1754944e-38, %v1603_v36  ;;  %vm1602_vm5 = vcmp.eq.f32.partialorder %v1601_v43, 8.507059e+37 }
 0x1f8   : > { %1663 = vmatmul.bf16.vlgmr.msra.gmra.mxu2 %v1641_v30  ;;  %1689 = vmatmul.bf16.vlgmr.msrb.gmra.mxu0 %v1641_v30  ;;  %v1619_v7 = vmul.f32 %v3204_v47, %v1618_v2 }
 0x1f9   : > { %1820 = vmatpush.bf16.msra.mxu2 %v4726_v38  ;;  %1902 = vmatpush.bf16.msrb.mxu0 %v3811_v12 }
 0x1fa   : > { %v1620_v55 = vadd.f32 %v3204_v47, %v1619_v7  ;;  %v4732_v7 = vld [vmem:[#allocation35_spill] sm:$0xff] }
 0x1fb   : > { %v3206_v32 = vpop.eup %3205 }
 0x1fc   : > { %v1593_v41 = vmul.f32 %v3206_v32, %v1591_v57  ;;  %vm1598_vm2 = vweird.f32 %v3206_v32  ;;  %v1625_v57 = vand.u32 2147483647, %v1615_v20  ;;  %v1624_v36 = vsel %vm1623_vm8, %v3204_v47, %v1620_v55  ;;  %v4737_v55 = vld [vmem:[#allocation83_spill] sm:$0xff] }
 0x1fd   : > { %1821 = vmatpush.bf16.msra.mxu2 %v4727_v17  ;;  %1903 = vmatpush.bf16.msrb.mxu0 %v3820_v31  ;;  %vm1599_vm4 = vmor %vm1597_vm3, %vm1598_vm2 }
 0x1fe   : > { %v1594_v1 = vsub.f32 1.0, %v1593_v41  ;;  %v1627_v41 = vand.u32 2147483648, %v1615_v20  ;;  %vm1626_vm9 = vcmp.eq.f32.partialorder %v1625_v57, 8.507059e+37  ;;  %v4742_v57 = vld [vmem:[#allocation52_spill] sm:$0xff] }
 0x200   : > { %v1595_v35 = vmul.f32 %v3206_v32, %v1594_v1  ;;  %v1633_v1 = vunpack.c.l.bf16 %v1546_v54 }
 0x201   : > { %1822 = vmatpush.bf16.msra.mxu2 %v4728_v39  ;;  %1904 = vmatpush.bf16.msrb.mxu0 %v3829_v51 }
 0x202   : > { %v1596_v14 = vadd.f32 %v3206_v32, %v1595_v35 }
 0x204   : > { %v1600_v44 = vsel %vm1599_vm4, %v3206_v32, %v1596_v14  ;;  %v1628_v32 = vor.u32 1.1754944e-38, %v1627_v41  ;;  %v4739_v41 = vld [vmem:[#allocation25_spill] sm:$0xff] }
 0x205   : > { %v1605_v15 = vsel %vm1602_vm5, %v1604_v10, %v1600_v44  ;;  %1823 = vmatpush.bf16.msra.mxu2 %v4730_v48  ;;  %1905 = vmatpush.bf16.msrb.mxu0 %v3843_v8  ;;  %v4733_v10 = vld [vmem:[#allocation38_spill] sm:$0xff] }
 0x206   : > { %v1632_v2 = vmul.f32 %v1631_v22, %v1605_v15  ;;  %v1629_v43 = vsel %vm1626_vm9, %v1628_v32, %v1624_v36  ;;  %v4735_v44 = vld [vmem:[#allocation46_spill] sm:$0xff]  ;;  %v4738_v15 = vld [vmem:[#allocation64_spill] sm:$0xff]  ;;  %v4744_v36 = vld [vmem:[#allocation29_spill] sm:$0xff] }
 0x207   : > { %v1636_v14 = vsub.f32 1.0, %v1629_v43  ;;  %v1638_v20 = vmul.f32 %v1629_v43, %v4065_v13  ;;  %v4736_v13 = vld [vmem:[#allocation48_spill] sm:$0xff]  ;;  %v4745_v32 = vld [vmem:[#allocation54_spill] sm:$0xff]  ;;  %v4746_v43 = vld [vmem:[#allocation69_spill] sm:$0xff] }
 0x208   : > { %v1634_v35 = vadd.f32 %v1633_v1, %v1632_v2  ;;  %1715 = vmatmul.bf16.vlgmr.msrb.gmra.mxu2 %v1641_v30  ;;  %1741 = vmatmul.bf16.vlgmr.msra.gmra.mxu0 %v1641_v30  ;;  %v4740_v2 = vld [vmem:[#allocation41_spill] sm:$0xff]  ;;  %v4741_v1 = vld [vmem:[#allocation28_spill] sm:$0xff] }
 0x209   : > { %1824 = vmatpush.bf16.msra.mxu2 %v4731_v52  ;;  %1906 = vmatpush.bf16.msrb.mxu0 %v3860_v59 }
 0x20a   : > { %3207 = vtanh.f32 %v1634_v35  ;;  %v4743_v35 = vld [vmem:[#allocation67_spill] sm:$0xff] }
 0x20d   : > { %1825 = vmatpush.bf16.msra.mxu2 %v4732_v7  ;;  %1907 = vmatpush.bf16.msrb.mxu0 %v3876_v0 }
 0x210   : > { %v3208_v54 = vpop.eup %3207 }
 0x211   : > { %1826 = vmatpush.bf16.msra.mxu2 %v4733_v10  ;;  %v1637_v30 = vmul.f32 %v3208_v54, %v1636_v14  ;;  %1908 = vmatpush.bf16.msrb.mxu0 %v3889_v56  ;;  %v4747_v14 = vld [vmem:[#allocation31_spill] sm:$0xff]  ;;  %v4748_v54 = vld [vmem:[#allocation57_spill] sm:$0xff] }
 0x213   : > { %v4203_v47 = vadd.f32 %v1638_v20, %v1637_v30  ;;  %v4749_v20 = vld [vmem:[#allocation71_spill] sm:$0xff]  ;;  %v4750_v30 = vld [vmem:[#allocation34_spill] sm:$0xff] }
 0x215   : > { %1827 = vmatpush.bf16.msra.mxu2 %v4734_v28  ;;  %v1640_v22 = vpack.c.bf16 %v4203_v47, %v4203_v47  ;;  %1909 = vmatpush.bf16.msrb.mxu0 %v3912_v63 }
 0x217   : > { %1650 = vmatmul.bf16.vlgmr.msra.gmra.mxu1 %v1640_v22  ;;  %1676 = vmatmul.bf16.vlgmr.msra.gmra.mxu3 %v1640_v22 }
 0x218   : > { %1807 = vmatpush.bf16.msra.mxu1 %v3694_v19  ;;  %1833 = vmatpush.bf16.msra.mxu3 %v3720_v33 }
 0x219   : > { %1928 = vmatpush.bf16.msrb.mxu2 %v4735_v44  ;;  %1954 = vmatpush.bf16.msra.mxu0 %v3918_v29 }
 0x21a   : > { %1828 = vmatmul.bf16.vlgmr.msra.gmra.mxu2 %v1640_v22 }
 0x21c   : > { %1808 = vmatpush.bf16.msra.mxu1 %v3697_v24  ;;  %1834 = vmatpush.bf16.msra.mxu3 %v3731_v46 }
 0x21d   : > { %1929 = vmatpush.bf16.msrb.mxu2 %v4736_v13  ;;  %1955 = vmatpush.bf16.msra.mxu0 %v3934_v3 }
 0x220   : > { %1809 = vmatpush.bf16.msra.mxu1 %v3700_v34  ;;  %1835 = vmatpush.bf16.msra.mxu3 %v3746_v62 }
 0x221   : > { %1930 = vmatpush.bf16.msrb.mxu2 %v3831_v61  ;;  %1956 = vmatpush.bf16.msra.mxu0 %v3946_v27 }
 0x224   : > { %1810 = vmatpush.bf16.msra.mxu1 %v3703_v45  ;;  %1836 = vmatpush.bf16.msra.mxu3 %v3756_v11 }
 0x225   : > { %1931 = vmatpush.bf16.msrb.mxu2 %v3851_v25  ;;  %1957 = vmatpush.bf16.msra.mxu0 %v3962_v50 }
 0x227   : > { %1702 = vmatmul.bf16.vlgmr.msrb.gmra.mxu1 %v1640_v22  ;;  %1728 = vmatmul.bf16.vlgmr.msrb.gmra.mxu3 %v1640_v22 }
 0x228   : > { %1811 = vmatpush.bf16.msra.mxu1 %v3706_v60  ;;  %1837 = vmatpush.bf16.msra.mxu3 %v3765_v21 }
 0x229   : > { %1932 = vmatpush.bf16.msrb.mxu2 %v3862_v5  ;;  %1958 = vmatpush.bf16.msra.mxu0 %v4691_v26 }
 0x22c   : > { %1812 = vmatpush.bf16.msra.mxu1 %v3709_v9  ;;  %1838 = vmatpush.bf16.msra.mxu3 %v3777_v37  ;;  %v1805_v37 = vld [vmem:[#allocation4 + $0x18] sm:$0xff] }
 0x22d   : > { %1933 = vmatpush.bf16.msrb.mxu2 %v3879_v42  ;;  %1959 = vmatpush.bf16.msra.mxu0 %v4695_v18  ;;  %v1846_v60 = vunpack.c.l.bf16 %v1805_v37 }
 0x230   : > { %1813 = vmatpush.bf16.msra.mxu1 %v3712_v23  ;;  %1839 = vmatpush.bf16.msra.mxu3 %v3786_v49 }
 0x231   : > { %1934 = vmatpush.bf16.msrb.mxu2 %v3895_v58  ;;  %1960 = vmatpush.bf16.msra.mxu0 %v4004_v4 }
 0x234   : > { %1814 = vmatpush.bf16.msra.mxu1 %v4739_v41  ;;  %1840 = vmatpush.bf16.msra.mxu3 %v4740_v2 }
 0x235   : > { %1935 = vmatpush.bf16.msrb.mxu2 %v3916_v16  ;;  %1961 = vmatpush.bf16.msra.mxu0 %v4737_v55 }
 0x237   : > { %1815 = vmatmul.bf16.vlgmr.msra.gmra.mxu1 %v1640_v22  ;;  %1841 = vmatmul.bf16.vlgmr.msra.gmra.mxu3 %v1640_v22  ;;  %v4753_v22 = vld [vmem:[#allocation37_spill] sm:$0xff] }
 0x238   : > { %1915 = vmatpush.bf16.msrb.mxu1 %v4741_v1  ;;  %1941 = vmatpush.bf16.msrb.mxu3 %v4742_v57  ;;  %v4751_v1 = vld [vmem:[#allocation61_spill] sm:$0xff]  ;;  %v4752_v57 = vld [vmem:[#allocation75_spill] sm:$0xff] }
 0x239   : > { %1980 = vmatpush.bf16.msra.mxu2 %v4738_v15 }
 0x23c   : > { %1916 = vmatpush.bf16.msrb.mxu1 %v4744_v36  ;;  %1942 = vmatpush.bf16.msrb.mxu3 %v4745_v32  ;;  %v4755_v36 = vld [vmem:[#allocation78_spill] sm:$0xff] }
 0x23d   : > { %1981 = vmatpush.bf16.msra.mxu2 %v4743_v35  ;;  %v4754_v35 = vld [vmem:[#allocation65_spill] sm:$0xff]  ;;  %v4756_v32 = vld [vmem:[#allocation42_spill] sm:$0xff] }
 0x240   : > { %1917 = vmatpush.bf16.msrb.mxu1 %v4747_v14  ;;  %1943 = vmatpush.bf16.msrb.mxu3 %v4748_v54  ;;  %v4758_v14 = vld [vmem:[#allocation81_spill] sm:$0xff]  ;;  %v4759_v54 = vld [vmem:[#allocation43_spill] sm:$0xff] }
 0x241   : > { %1982 = vmatpush.bf16.msra.mxu2 %v4746_v43  ;;  %v4757_v43 = vld [vmem:[#allocation68_spill] sm:$0xff] }
 0x244   : > { %1918 = vmatpush.bf16.msrb.mxu1 %v4750_v30  ;;  %1944 = vmatpush.bf16.msrb.mxu3 %v4751_v1  ;;  %v4761_v30 = vld [vmem:[#allocation84_spill] sm:$0xff] }
 0x245   : > { %1983 = vmatpush.bf16.msra.mxu2 %v4749_v20  ;;  %v4760_v20 = vld [vmem:[#allocation70_spill] sm:$0xff]  ;;  %v4762_v1 = vld [vmem:[#allocation44_spill] sm:$0xff] }
 0x248   : > { %1919 = vmatpush.bf16.msrb.mxu1 %v4753_v22  ;;  %1945 = vmatpush.bf16.msrb.mxu3 %v4754_v35  ;;  %v4764_v22 = vld [vmem:[#allocation45_spill] sm:$0xff] }
 0x249   : > { %1984 = vmatpush.bf16.msra.mxu2 %v4752_v57  ;;  %v4763_v57 = vld [vmem:[#allocation72_spill] sm:$0xff]  ;;  %v4765_v35 = vld [vmem:[#allocation73_spill] sm:$0xff] }
 0x24c   : > { %1920 = vmatpush.bf16.msrb.mxu1 %v4756_v32  ;;  %1946 = vmatpush.bf16.msrb.mxu3 %v4757_v43  ;;  %v4767_v32 = vld [vmem:[#allocation76_spill] sm:$0xff]  ;;  %v4768_v43 = vld [vmem:[#allocation49_spill] sm:$0xff] }
 0x24d   : > { %1985 = vmatpush.bf16.msra.mxu2 %v4755_v36  ;;  %v4766_v36 = vld [vmem:[#allocation47_spill] sm:$0xff] }
 0x250   : > { %1921 = vmatpush.bf16.msrb.mxu1 %v4759_v54  ;;  %1947 = vmatpush.bf16.msrb.mxu3 %v4760_v20  ;;  %v4770_v54 = vld [vmem:[#allocation50_spill] sm:$0xff] }
 0x251   : > { %1986 = vmatpush.bf16.msra.mxu2 %v4758_v14  ;;  %v4769_v14 = vld [vmem:[#allocation79_spill] sm:$0xff]  ;;  %v4771_v20 = vld [vmem:[#allocation82_spill] sm:$0xff] }
 0x254   : > { %1922 = vmatpush.bf16.msrb.mxu1 %v4762_v1  ;;  %1948 = vmatpush.bf16.msrb.mxu3 %v4763_v57  ;;  %v4773_v1 = vld [vmem:[#allocation86_spill] sm:$0xff]  ;;  %v4774_v57 = vld [vmem:[#allocation53_spill] sm:$0xff] }
 0x255   : > { %1987 = vmatpush.bf16.msra.mxu2 %v4761_v30  ;;  %v4772_v30 = vld [vmem:[#allocation51_spill] sm:$0xff] }
 0x258   : > { %1967 = vmatpush.bf16.msra.mxu1 %v4764_v22  ;;  %1993 = vmatpush.bf16.msra.mxu3 %v4765_v35  ;;  %v4775_v22 = vld [vmem:[#allocation87_spill] sm:$0xff]  ;;  %v4776_v35 = vld [vmem:[#allocation56_spill] sm:$0xff] }
 0x25c   : > { %1968 = vmatpush.bf16.msra.mxu1 %v4766_v36  ;;  %1994 = vmatpush.bf16.msra.mxu3 %v4767_v32  ;;  %v4777_v36 = vld [vmem:[#allocation88_spill] sm:$0xff] }
 0x25d   : > { %v4778_v32 = vld [vmem:[#allocation60_spill] sm:$0xff] }
 0x260   : > { %1969 = vmatpush.bf16.msra.mxu1 %v4768_v43  ;;  %1995 = vmatpush.bf16.msra.mxu3 %v4769_v14  ;;  %v4779_v43 = vld [vmem:[#allocation89_spill] sm:$0xff] }
 0x264   : > { %1970 = vmatpush.bf16.msra.mxu1 %v4770_v54  ;;  %1996 = vmatpush.bf16.msra.mxu3 %v4771_v20 }
 0x268   : > { %1971 = vmatpush.bf16.msra.mxu1 %v4772_v30  ;;  %1997 = vmatpush.bf16.msra.mxu3 %v4773_v1 }
 0x26c   : > { %1972 = vmatpush.bf16.msra.mxu1 %v4774_v57  ;;  %1998 = vmatpush.bf16.msra.mxu3 %v4775_v22  ;;  %v4780_v57 = vld [vmem:[#allocation66_spill] sm:$0xff] }
 0x270   : > { %1973 = vmatpush.bf16.msra.mxu1 %v4776_v35  ;;  %1999 = vmatpush.bf16.msra.mxu3 %v4777_v36  ;;  %v4781_v36 = vld [vmem:[#allocation74_spill] sm:$0xff] }
 0x274   : > { %1974 = vmatpush.bf16.msra.mxu1 %v4778_v32  ;;  %2000 = vmatpush.bf16.msra.mxu3 %v4779_v43 }
 0x275   : > { %v1690_v14 = vpop.f32.mrf.mxu0 }
 0x27b   : > { %v1664_v54 = vpop.f32.mrf.mxu2 }
 0x27d   : > { %v1692_v2 = vpop.f32.mrf.mxu0 }
 0x283   : > { %v1666_v20 = vpop.f32.mrf.mxu2 }
 0x285   : > { %v1742_v41 = vpop.f32.mrf.mxu0 }
 0x28b   : > { %v1716_v30 = vpop.f32.mrf.mxu2 }
 0x28d   : > { %v1744_v15 = vpop.f32.mrf.mxu0 }
 0x28e   : > { %v1868_v15 = vrot.slane %v1805_v37, 4 }
 0x293   : > { %v1718_v1 = vpop.f32.mrf.mxu2 }
 0x294   : > { %v1651_v55 = vpop.f32.mrf.mxu1 }
 0x295   : > { %v1652_v16 = vadd.f32 %v1651_v55, %v4780_v57 }
 0x297   : > { %v1665_v22 = vadd.f32 %v1664_v54, %v1652_v16  ;;  %v1870_v16 = vunpack.c.l.bf16 %v1868_v15 }
 0x299   : > { %v2931_v49 = vmul.f32 -1.442695, %v1665_v22 }
 0x29a   : > { %v1677_v35 = vpop.f32.mrf.mxu3 }
 0x29b   : > { %3209 = vpow2.f32 %v2931_v49  ;;  %v1678_v23 = vadd.f32 %v1677_v35, %v4781_v36  ;;  %v4782_v36 = vld [vmem:[#allocation62_spill] sm:$0xff] }
 0x29c   : > { %v1653_v32 = vpop.f32.mrf.mxu1 }
 0x29d   : > { %v1829_v4 = vpop.f32.mrf.mxu2  ;;  %v1691_v43 = vadd.f32 %v1690_v14, %v1678_v23 }
 0x29e   : > { %v1871_v22 = vadd.f32 %v1870_v16, %v1829_v4 }
 0x29f   : > { %v2932_v58 = vmul.f32 -1.442695, %v1691_v43 }
 0x2a0   : > { %v2935_v14 = vmul.f32 -1.442695, %v1871_v22 }
 0x2a1   : > { %v3210_v2 = vpop.eup %3209  ;;  %3211 = vpow2.f32 %v2932_v58 }
 0x2a2   : > { %v1749_v20 = vadd.f32 1.0, %v3210_v2  ;;  %v1679_v9 = vpop.f32.mrf.mxu3 }
 0x2a4   : > { %3213 = vrcp.f32 %v1749_v20  ;;  %v1703_v1 = vpop.f32.mrf.mxu1  ;;  %v1761_v58 = vand.u32 2147483648, %v1749_v20  ;;  %v1759_v42 = vand.u32 2147483647, %v1749_v20  ;;  %vm1755_vm11 = vweird.f32 %v1749_v20 }
 0x2a5   : > { %v1831_v18 = vpop.f32.mrf.mxu2 }
 0x2a6   : > { %v1704_v18 = vadd.f32 %v1703_v1, %v4168_v40  ;;  %vm1760_vm13 = vcmp.eq.f32.partialorder %v1759_v42, 8.507059e+37 }
 0x2a7   : > { %v3212_v55 = vpop.eup %3211 }
 0x2a8   : > { %v1768_v54 = vadd.f32 1.0, %v3212_v55  ;;  %v1762_v55 = vor.u32 1.1754944e-38, %v1761_v58 }
 0x2aa   : > { %v3214_v49 = vpop.eup %3213  ;;  %3215 = vrcp.f32 %v1768_v54  ;;  %v1729_v35 = vpop.f32.mrf.mxu3  ;;  %vm1774_vm15 = vweird.f32 %v1768_v54 }
 0x2ab   : > { %v1751_v32 = vmul.f32 %v3214_v49, %v1749_v20  ;;  %v1730_v23 = vadd.f32 %v1729_v35, %v4782_v36  ;;  %vm1756_vm10 = vweird.f32 %v3214_v49  ;;  %3217 = vpow2.f32 %v2935_v14 }
 0x2ac   : > { %v1705_v43 = vpop.f32.mrf.mxu1  ;;  %vm1757_vm12 = vmor %vm1755_vm11, %vm1756_vm10  ;;  %v1778_v14 = vand.u32 2147483647, %v1768_v54 }
 0x2ad   : > { %v1752_v57 = vsub.f32 1.0, %v1751_v32  ;;  %v1743_v2 = vadd.f32 %v1742_v41, %v1730_v23  ;;  %v1780_v41 = vand.u32 2147483648, %v1768_v54 }
 0x2ae   : > { %vm1779_vm1 = vcmp.eq.f32.partialorder %v1778_v14, 8.507059e+37 }
 0x2af   : > { %v1753_v9 = vmul.f32 %v3214_v49, %v1752_v57  ;;  %v1784_v22 = vadd.f32 %v4173_v6, %v1743_v2  ;;  %v1717_v57 = vadd.f32 %v1716_v30, %v1704_v18  ;;  %v1781_v37 = vor.u32 1.1754944e-38, %v1780_v41 }
 0x2b0   : > { %v3216_v21 = vpop.eup %3215 }
 0x2b1   : > { %v1770_v15 = vmul.f32 %v3216_v21, %v1768_v54  ;;  %v1754_v4 = vadd.f32 %v3214_v49, %v1753_v9  ;;  %vm1775_vm14 = vweird.f32 %v3216_v21  ;;  %v3218_v9 = vpop.eup %3217 }
 0x2b2   : > { %v1731_v16 = vpop.f32.mrf.mxu3  ;;  %vm1776_vm0 = vmor %vm1774_vm15, %vm1775_vm14 }
 0x2b3   : > { %v1771_v35 = vsub.f32 1.0, %v1770_v15  ;;  %v1758_v43 = vsel %vm1757_vm12, %v3214_v49, %v1754_v4  ;;  %v4286_v49 = vadd.f32 1.0, %v3218_v9 }
 0x2b4   : > { %v1763_v32 = vsel %vm1760_vm13, %v1762_v55, %v1758_v43  ;;  %v1816_v23 = vpop.f32.mrf.mxu1 }
 0x2b5   : > { %v1772_v36 = vmul.f32 %v3216_v21, %v1771_v35  ;;  %v1785_v1 = vmul.f32 %v1784_v22, %v1763_v32  ;;  %v1847_v40 = vadd.f32 %v1846_v60, %v1816_v23  ;;  %vm1881_vm7 = vweird.f32 %v4286_v49 }
 0x2b7   : > { %v1786_v20 = vadd.f32 %v1785_v1, %v1717_v57  ;;  %v2934_v58 = vmul.f32 -1.442695, %v1847_v40  ;;  %v1773_v16 = vadd.f32 %v3216_v21, %v1772_v36 }
 0x2b9   : > { %3219 = vtanh.f32 %v1786_v20  ;;  %v1777_v42 = vsel %vm1776_vm0, %v3216_v21, %v1773_v16 }
 0x2ba   : > { %3221 = vpow2.f32 %v2934_v58  ;;  %v1842_v30 = vpop.f32.mrf.mxu3  ;;  %v1782_v2 = vsel %vm1779_vm1, %v1781_v37, %v1777_v42 }
 0x2bb   : > { %3223 = vrcp.f32 %v4286_v49  ;;  %v1788_v60 = vsub.f32 1.0, %v1782_v2  ;;  %v1790_v40 = vmul.f32 %v1782_v2, %v4182_v53 }
 0x2bc   : > { %v1818_v18 = vpop.f32.mrf.mxu1 }
 0x2bd   : > { %v1885_v18 = vand.u32 2147483647, %v4286_v49 }
 0x2bf   : > { %v3220_v15 = vpop.eup %3219  ;;  %vm1886_vm9 = vcmp.eq.f32.partialorder %v1885_v18, 8.507059e+37  ;;  %v4827_v18 = vld [vmem:[#allocation49_spill] sm:$0xff] }
 0x2c0   : > { %v3222_v4 = vpop.eup %3221  ;;  %v1789_v54 = vmul.f32 %v3220_v15, %v1788_v60 }
 0x2c1   : > { %v1851_v36 = vadd.f32 1.0, %v3222_v4  ;;  %v3224_v21 = vpop.eup %3223 }
 0x2c2   : > { %v1844_v55 = vpop.f32.mrf.mxu3  ;;  %v4290_v35 = vadd.f32 %v1790_v40, %v1789_v54  ;;  %v1877_v22 = vmul.f32 %v3224_v21, %v4286_v49  ;;  %vm1882_vm6 = vweird.f32 %v3224_v21  ;;  %v4803_v40 = vld [vmem:[#allocation29_spill] sm:$0xff] }
 0x2c3   : > { %3225 = vrcp.f32 %v1851_v36  ;;  %v1863_v1 = vand.u32 2147483648, %v1851_v36  ;;  %v1861_v9 = vand.u32 2147483647, %v1851_v36  ;;  %vm1857_vm3 = vweird.f32 %v1851_v36  ;;  %vm1883_vm8 = vmor %vm1881_vm7, %vm1882_vm6  ;;  %v4805_v55 = vld [vmem:[#allocation69_spill] sm:$0xff] }
 0x2c4   : > { %v1901_v43 = vpack.c.bf16 %v4290_v35, %v4290_v35  ;;  %v1878_v32 = vsub.f32 1.0, %v1877_v22  ;;  %v4808_v22 = vld [vmem:[#allocation71_spill] sm:$0xff] }
 0x2c5   : > { %v1864_v58 = vor.u32 1.1754944e-38, %v1863_v1  ;;  %vm1862_vm5 = vcmp.eq.f32.partialorder %v1861_v9, 8.507059e+37  ;;  %v4813_v1 = vld [vmem:[#allocation65_spill] sm:$0xff]  ;;  %v4815_v9 = vld [vmem:[#allocation42_spill] sm:$0xff] }
 0x2c6   : > { %1923 = vmatmul.bf16.vlgmr.msrb.gmra.mxu1 %v1901_v43  ;;  %1949 = vmatmul.bf16.vlgmr.msrb.gmra.mxu3 %v1901_v43  ;;  %v1879_v20 = vmul.f32 %v3224_v21, %v1878_v32  ;;  %v4811_v32 = vld [vmem:[#allocation75_spill] sm:$0xff] }
 0x2c7   : > { %2080 = vmatpush.bf16.msrb.mxu1 %v4726_v38  ;;  %2162 = vmatpush.bf16.msrb.mxu3 %v3811_v12  ;;  %v1806_v12 = vld [vmem:[#allocation4 + $0x20] sm:$0xf] }
 0x2c8   : > { %v1880_v37 = vadd.f32 %v3224_v21, %v1879_v20  ;;  %v1893_v2 = vunpack.c.l.bf16 %v1806_v12  ;;  %v4816_v20 = vld [vmem:[#allocation68_spill] sm:$0xff]  ;;  %v4818_v12 = vld [vmem:[#allocation43_spill] sm:$0xff] }
 0x2c9   : > { %v3226_v41 = vpop.eup %3225 }
 0x2ca   : > { %v1853_v57 = vmul.f32 %v3226_v41, %v1851_v36  ;;  %vm1858_vm2 = vweird.f32 %v3226_v41  ;;  %v4804_v36 = vld [vmem:[#allocation54_spill] sm:$0xff] }
 0x2cb   : > { %2081 = vmatpush.bf16.msrb.mxu1 %v4727_v17  ;;  %2163 = vmatpush.bf16.msrb.mxu3 %v3820_v31  ;;  %vm1859_vm4 = vmor %vm1857_vm3, %vm1858_vm2  ;;  %v4304_v31 = vld [vmem:[%s4455_s6] ss:$0 sm:$0xff] }
 0x2cc   : > { %v1854_v23 = vsub.f32 1.0, %v1853_v57  ;;  %v1891_v17 = vadd.f32 %v4304_v31, %v1842_v30  ;;  %v1884_v30 = vsel %vm1883_vm8, %v3224_v21, %v1880_v37  ;;  %v4806_v21 = vld [vmem:[#allocation31_spill] sm:$0xff]  ;;  %v4810_v57 = vld [vmem:[#allocation61_spill] sm:$0xff]  ;;  %v4822_v37 = vld [vmem:[#allocation72_spill] sm:$0xff] }
 0x2ce   : > { %v1855_v14 = vmul.f32 %v3226_v41, %v1854_v23  ;;  %v4812_v23 = vld [vmem:[#allocation37_spill] sm:$0xff] }
 0x2cf   : > { %2082 = vmatpush.bf16.msrb.mxu1 %v4728_v39  ;;  %2164 = vmatpush.bf16.msrb.mxu3 %v3829_v51  ;;  %v1887_v51 = vand.u32 2147483648, %v4286_v49 }
 0x2d0   : > { %v1856_v38 = vadd.f32 %v3226_v41, %v1855_v14  ;;  %v4814_v14 = vld [vmem:[#allocation78_spill] sm:$0xff] }
 0x2d2   : > { %v1860_v16 = vsel %vm1859_vm4, %v3226_v41, %v1856_v38  ;;  %v4809_v41 = vld [vmem:[#allocation34_spill] sm:$0xff]  ;;  %v4817_v38 = vld [vmem:[#allocation81_spill] sm:$0xff] }
 0x2d3   : > { %v1865_v42 = vsel %vm1862_vm5, %v1864_v58, %v1860_v16  ;;  %2083 = vmatpush.bf16.msrb.mxu1 %v4730_v48  ;;  %2165 = vmatpush.bf16.msrb.mxu3 %v3843_v8  ;;  %v1888_v8 = vor.u32 1.1754944e-38, %v1887_v51  ;;  %v4819_v58 = vld [vmem:[#allocation70_spill] sm:$0xff]  ;;  %v4820_v16 = vld [vmem:[#allocation84_spill] sm:$0xff]  ;;  %v4824_v51 = vld [vmem:[#allocation73_spill] sm:$0xff] }
 0x2d4   : > { %v1892_v39 = vmul.f32 %v1891_v17, %v1865_v42  ;;  %v4821_v17 = vld [vmem:[#allocation44_spill] sm:$0xff]  ;;  %v4823_v42 = vld [vmem:[#allocation45_spill] sm:$0xff] }
 0x2d5   : > { %v1889_v48 = vsel %vm1886_vm9, %v1888_v8, %v1884_v30  ;;  %v4829_v30 = vld [vmem:[#allocation50_spill] sm:$0xff] }
 0x2d6   : > { %v1894_v60 = vadd.f32 %v1893_v2, %v1892_v39  ;;  %1975 = vmatmul.bf16.vlgmr.msra.gmra.mxu1 %v1901_v43  ;;  %2001 = vmatmul.bf16.vlgmr.msra.gmra.mxu3 %v1901_v43  ;;  %v1896_v49 = vsub.f32 1.0, %v1889_v48  ;;  %v1898_v54 = vmul.f32 %v1889_v48, %v4203_v47  ;;  %v4807_v43 = vld [vmem:[#allocation57_spill] sm:$0xff]  ;;  %v4825_v39 = vld [vmem:[#allocation47_spill] sm:$0xff]  ;;  %v4826_v2 = vld [vmem:[#allocation76_spill] sm:$0xff] }
 0x2d7   : > { %2084 = vmatpush.bf16.msrb.mxu1 %v4731_v52  ;;  %2166 = vmatpush.bf16.msrb.mxu3 %v3860_v59  ;;  %v4830_v8 = vld [vmem:[#allocation82_spill] sm:$0xff]  ;;  %v4831_v48 = vld [vmem:[#allocation51_spill] sm:$0xff] }
 0x2d8   : > { %3227 = vtanh.f32 %v1894_v60  ;;  %v4828_v60 = vld [vmem:[#allocation79_spill] sm:$0xff] }
 0x2db   : > { %2085 = vmatpush.bf16.msrb.mxu1 %v4732_v7  ;;  %2167 = vmatpush.bf16.msrb.mxu3 %v3876_v0  ;;  %v2053_v0 = vstv %s2052_s12  ;;  %v2313_v7 = vstv %s2312_s13 }
 0x2de   : > { %v3228_v15 = vpop.eup %3227 }
 0x2df   : > { %v1897_v4 = vmul.f32 %v3228_v15, %v1896_v49  ;;  %2086 = vmatpush.bf16.msrb.mxu1 %v4733_v10  ;;  %2168 = vmatpush.bf16.msrb.mxu3 %v3889_v56  ;;  %v4783_v56 = vld [vmem:[#allocation90_spill] sm:$0xff]  ;;  %v4784_v10 = vmov 0.0   ;;  %v4833_v15 = vld [vmem:[#allocation53_spill] sm:$0xff] }
 0x2e0   : > { %vm2054_vm10 = vcmp.lt.s32.totalorder %v2053_v0, %v4783_v56  ;;  %vm2314_vm11 = vcmp.lt.s32.totalorder %v2313_v7, %v4783_v56  ;;  %v4832_v49 = vld [vmem:[#allocation86_spill] sm:$0xff]  ;;  %v4837_v0 = vld [vmem:[#allocation60_spill] sm:$0xff]  ;;  %v4838_v7 = vld [vmem:[#allocation89_spill] sm:$0xff] }
 0x2e1   : > { %v4319_v52 = vadd.f32 %v1898_v54, %v1897_v4  ;;  %v2938_v47 = vsel %vm2054_vm10, 1.0, %v4784_v10  ;;  %v4834_v4 = vld [vmem:[#allocation87_spill] sm:$0xff]  ;;  %v4835_v54 = vld [vmem:[#allocation56_spill] sm:$0xff] }
 0x2e3   : > { %v1900_v59 = vpack.c.bf16 %v4319_v52, %v4319_v52  ;;  %2087 = vmatpush.bf16.msrb.mxu1 %v4734_v28  ;;  %2169 = vmatpush.bf16.msrb.mxu3 %v3912_v63  ;;  %v2943_v63 = vsel %vm2314_vm11, 1.0, %v4784_v10 }
 0x2e4   : > { %v3172_v28 = vpack.i.bf16 %v2943_v63, %v2938_v47 }
 0x2e5   : > { %1910 = vmatmul.bf16.vlgmr.msrb.gmra.mxu0 %v1900_v59  ;;  %1936 = vmatmul.bf16.vlgmr.msrb.gmra.mxu2 %v1900_v59 }
 0x2e6   : > { %2067 = vmatpush.bf16.msrb.mxu0 %v3694_v19  ;;  %2093 = vmatpush.bf16.msrb.mxu2 %v3720_v33  ;;  %v4785_v19 = vld [vmem:[#allocation21_spill] sm:$0xff] }
 0x2e7   : > { %2188 = vmatpush.bf16.msra.mxu1 %v4735_v44  ;;  %2214 = vmatpush.bf16.msra.mxu3 %v3918_v29  ;;  %v4788_v33 = vld [vmem:[#allocation77_spill] sm:$0xff]  ;;  %v4796_v29 = vld [vmem:[#allocation83_spill] sm:$0xff]  ;;  %v4801_v44 = vld [vmem:[#allocation52_spill] sm:$0xff] }
 0x2e8   : > { %2088 = vmatmul.bf16.vlgmr.msrb.gmra.mxu1 %v1900_v59  ;;  %3173 = vperm.xlu0 %3166, %v3172_v28  }
 0x2ea   : > { %2068 = vmatpush.bf16.msrb.mxu0 %v3697_v24  ;;  %2094 = vmatpush.bf16.msrb.mxu2 %v3731_v46  ;;  %v4786_v24 = vld [vmem:[#allocation33_spill] sm:$0xff]  ;;  %v4789_v46 = vld [vmem:[#allocation22_spill] sm:$0xff] }
 0x2eb   : > { %2189 = vmatpush.bf16.msra.mxu1 %v4736_v13  ;;  %2215 = vmatpush.bf16.msra.mxu3 %v3934_v3  ;;  %v4797_v3 = vld [vmem:[#allocation64_spill] sm:$0xff]  ;;  %v4802_v13 = vld [vmem:[#allocation67_spill] sm:$0xff] }
 0x2ee   : > { %2069 = vmatpush.bf16.msrb.mxu0 %v3700_v34  ;;  %2095 = vmatpush.bf16.msrb.mxu2 %v3746_v62  ;;  %v4787_v34 = vld [vmem:[#allocation55_spill] sm:$0xff]  ;;  %v4790_v62 = vld [vmem:[#allocation36_spill] sm:$0xff] }
 0x2ef   : > { %2190 = vmatpush.bf16.msra.mxu1 %v3831_v61  ;;  %2216 = vmatpush.bf16.msra.mxu3 %v3946_v27  ;;  %v4793_v61 = vld [vmem:[#allocation23_spill] sm:$0xff]  ;;  %v4798_v27 = vld [vmem:[#allocation25_spill] sm:$0xff] }
 0x2f2   : > { %2070 = vmatpush.bf16.msrb.mxu0 %v3703_v45  ;;  %2096 = vmatpush.bf16.msrb.mxu2 %v3756_v11  ;;  %v4791_v45 = vld [vmem:[#allocation59_spill] sm:$0xff]  ;;  %v4792_v11 = vld [vmem:[#allocation80_spill] sm:$0xff] }
 0x2f3   : > { %2191 = vmatpush.bf16.msra.mxu1 %v3851_v25  ;;  %2217 = vmatpush.bf16.msra.mxu3 %v3962_v50  ;;  %v4794_v25 = vld [vmem:[#allocation39_spill] sm:$0xff]  ;;  %v4799_v50 = vld [vmem:[#allocation41_spill] sm:$0xff] }
 0x2f5   : > { %1962 = vmatmul.bf16.vlgmr.msra.gmra.mxu0 %v1900_v59  ;;  %1988 = vmatmul.bf16.vlgmr.msra.gmra.mxu2 %v1900_v59 }
 0x2f6   : > { %2071 = vmatpush.bf16.msrb.mxu0 %v4785_v19  ;;  %2097 = vmatpush.bf16.msrb.mxu2 %v4786_v24 }
 0x2f7   : > { %2192 = vmatpush.bf16.msra.mxu1 %v3862_v5  ;;  %2218 = vmatpush.bf16.msra.mxu3 %v4691_v26  ;;  %v4795_v5 = vld [vmem:[#allocation63_spill] sm:$0xff]  ;;  %v4800_v26 = vld [vmem:[#allocation28_spill] sm:$0xff] }
 0x2fa   : > { %2072 = vmatpush.bf16.msrb.mxu0 %v4789_v46  ;;  %2098 = vmatpush.bf16.msrb.mxu2 %v4790_v62  ;;  %v4839_v46 = vld [vmem:[#allocation66_spill] sm:$0xff] }
 0x2fb   : > { %2193 = vmatpush.bf16.msra.mxu1 %v4787_v34  ;;  %2219 = vmatpush.bf16.msra.mxu3 %v4788_v33 }
 0x2fe   : > { %2073 = vmatpush.bf16.msrb.mxu0 %v4793_v61  ;;  %2099 = vmatpush.bf16.msrb.mxu2 %v4794_v25 }
 0x2ff   : > { %2194 = vmatpush.bf16.msra.mxu1 %v4791_v45  ;;  %2220 = vmatpush.bf16.msra.mxu3 %v4792_v11 }
 0x302   : > { %2074 = vmatpush.bf16.msrb.mxu0 %v4798_v27  ;;  %2100 = vmatpush.bf16.msrb.mxu2 %v4799_v50 }
 0x303   : > { %2195 = vmatpush.bf16.msra.mxu1 %v4795_v5  ;;  %2221 = vmatpush.bf16.msra.mxu3 %v4796_v29  ;;  %v4840_v5 = vld [vmem:[#allocation74_spill] sm:$0xff] }
 0x305   : > { %2075 = vmatmul.bf16.vlgmr.msrb.gmra.mxu0 %v1900_v59  ;;  %2101 = vmatmul.bf16.vlgmr.msrb.gmra.mxu2 %v1900_v59  ;;  %v4836_v59 = vld [vmem:[#allocation88_spill] sm:$0xff] }
 0x306   : > { %2175 = vmatpush.bf16.msra.mxu0 %v4800_v26  ;;  %2201 = vmatpush.bf16.msra.mxu2 %v4801_v44  ;;  %v2065_v44 = vld [vmem:[#allocation4 + $0x24] sm:$0xff] }
 0x307   : > { %2240 = vmatpush.bf16.msrb.mxu1 %v4797_v3 }
 0x30a   : > { %2176 = vmatpush.bf16.msra.mxu0 %v4803_v40  ;;  %2202 = vmatpush.bf16.msra.mxu2 %v4804_v36 }
 0x30b   : > { %2241 = vmatpush.bf16.msrb.mxu1 %v4802_v13 }
 0x30e   : > { %2177 = vmatpush.bf16.msra.mxu0 %v4806_v21  ;;  %2203 = vmatpush.bf16.msra.mxu2 %v4807_v43 }
 0x30f   : > { %2242 = vmatpush.bf16.msrb.mxu1 %v4805_v55  ;;  %v2128_v55 = vrot.slane %v2065_v44, 4 }
 0x312   : > { %2178 = vmatpush.bf16.msra.mxu0 %v4809_v41  ;;  %2204 = vmatpush.bf16.msra.mxu2 %v4810_v57 }
 0x313   : > { %2243 = vmatpush.bf16.msrb.mxu1 %v4808_v22  ;;  %v2130_v22 = vunpack.c.l.bf16 %v2128_v55 }
 0x316   : > { %2179 = vmatpush.bf16.msra.mxu0 %v4812_v23  ;;  %2205 = vmatpush.bf16.msra.mxu2 %v4813_v1 }
 0x317   : > { %2244 = vmatpush.bf16.msrb.mxu1 %v4811_v32 }
 0x31a   : > { %2180 = vmatpush.bf16.msra.mxu0 %v4815_v9  ;;  %2206 = vmatpush.bf16.msra.mxu2 %v4816_v20 }
 0x31b   : > { %2245 = vmatpush.bf16.msrb.mxu1 %v4814_v14  ;;  %v4841_v14 = vld [vmem:[#allocation62_spill] sm:$0xff] }
 0x31e   : > { %2181 = vmatpush.bf16.msra.mxu0 %v4818_v12  ;;  %2207 = vmatpush.bf16.msra.mxu2 %v4819_v58 }
 0x31f   : > { %2246 = vmatpush.bf16.msrb.mxu1 %v4817_v38 }
 0x322   : > { %2182 = vmatpush.bf16.msra.mxu0 %v4821_v17  ;;  %2208 = vmatpush.bf16.msra.mxu2 %v4822_v37 }
 0x323   : > { %2247 = vmatpush.bf16.msrb.mxu1 %v4820_v16 }
 0x326   : > { %2227 = vmatpush.bf16.msrb.mxu0 %v4823_v42  ;;  %2253 = vmatpush.bf16.msrb.mxu2 %v4824_v51  ;;  %v4842_v51 = vld [vmem:[#allocation91_spill] sm:$0xff] }
 0x32a   : > { %2228 = vmatpush.bf16.msrb.mxu0 %v4825_v39  ;;  %2254 = vmatpush.bf16.msrb.mxu2 %v4826_v2 }
 0x32e   : > { %2229 = vmatpush.bf16.msrb.mxu0 %v4827_v18  ;;  %2255 = vmatpush.bf16.msrb.mxu2 %v4828_v60 }
 0x332   : > { %2230 = vmatpush.bf16.msrb.mxu0 %v4829_v30  ;;  %2256 = vmatpush.bf16.msrb.mxu2 %v4830_v8  ;;  %v2106_v8 = vunpack.c.l.bf16 %v2065_v44 }
 0x336   : > { %2231 = vmatpush.bf16.msrb.mxu0 %v4831_v48  ;;  %2257 = vmatpush.bf16.msrb.mxu2 %v4832_v49 }
 0x33a   : > { %2232 = vmatpush.bf16.msrb.mxu0 %v4833_v15  ;;  %2258 = vmatpush.bf16.msrb.mxu2 %v4834_v4 }
 0x33e   : > { %2233 = vmatpush.bf16.msrb.mxu0 %v4835_v54  ;;  %2259 = vmatpush.bf16.msrb.mxu2 %v4836_v59 }
 0x342   : > { %2234 = vmatpush.bf16.msrb.mxu0 %v4837_v0  ;;  %2260 = vmatpush.bf16.msrb.mxu2 %v4838_v7 }
 0x343   : > { %v1924_v56 = vpop.f32.mrf.mxu1 }
 0x349   : > { %v1950_v10 = vpop.f32.mrf.mxu3 }
 0x34b   : > { %v1926_v47 = vpop.f32.mrf.mxu1 }
 0x351   : > { %v1952_v63 = vpop.f32.mrf.mxu3 }
 0x353   : > { %v1976_v28 = vpop.f32.mrf.mxu1 }
 0x359   : > { %v2002_v19 = vpop.f32.mrf.mxu3 }
 0x35b   : > { %v1978_v24 = vpop.f32.mrf.mxu1 }
 0x361   : > { %v2004_v34 = vpop.f32.mrf.mxu3 }
 0x362   : > { %v1911_v33 = vpop.f32.mrf.mxu0 }
 0x363   : > { %v1912_v62 = vadd.f32 %v1911_v33, %v4839_v46 }
 0x365   : > { %v2089_v45 = vpop.f32.mrf.mxu1  ;;  %v1925_v11 = vadd.f32 %v1924_v56, %v1912_v62 }
 0x366   : > { %v2131_v57 = vadd.f32 %v2130_v22, %v2089_v45 }
 0x367   : > { %v2936_v61 = vmul.f32 -1.442695, %v1925_v11 }
 0x368   : > { %v1937_v25 = vpop.f32.mrf.mxu2  ;;  %v2940_v38 = vmul.f32 -1.442695, %v2131_v57 }
 0x369   : > { %3229 = vpow2.f32 %v2936_v61  ;;  %v1938_v29 = vadd.f32 %v1937_v25, %v4840_v5 }
 0x36a   : > { %v1913_v3 = vpop.f32.mrf.mxu0 }
 0x36b   : > { %v1951_v27 = vadd.f32 %v1950_v10, %v1938_v29 }
 0x36d   : > { %v2091_v50 = vpop.f32.mrf.mxu1  ;;  %v2937_v26 = vmul.f32 -1.442695, %v1951_v27 }
 0x36f   : > { %v3230_v13 = vpop.eup %3229  ;;  %3231 = vpow2.f32 %v2937_v26 }
 0x370   : > { %v2009_v40 = vadd.f32 1.0, %v3230_v13  ;;  %v1939_v36 = vpop.f32.mrf.mxu2 }
 0x372   : > { %3233 = vrcp.f32 %v2009_v40  ;;  %v1963_v21 = vpop.f32.mrf.mxu0  ;;  %v2021_v58 = vand.u32 2147483648, %v2009_v40  ;;  %v2019_v37 = vand.u32 2147483647, %v2009_v40  ;;  %vm2015_vm13 = vweird.f32 %v2009_v40 }
 0x373   : > { %v1964_v39 = vadd.f32 %v1963_v21, %v4842_v51 }
 0x374   : > { %v2022_v60 = vor.u32 1.1754944e-38, %v2021_v58  ;;  %vm2020_vm15 = vcmp.eq.f32.partialorder %v2019_v37, 8.507059e+37 }
 0x375   : > { %v3232_v43 = vpop.eup %3231  ;;  %v1977_v4 = vadd.f32 %v1976_v28, %v1964_v39 }
 0x376   : > { %v2028_v41 = vadd.f32 1.0, %v3232_v43 }
 0x378   : > { %v3234_v32 = vpop.eup %3233  ;;  %3235 = vrcp.f32 %v2028_v41  ;;  %v1989_v23 = vpop.f32.mrf.mxu2  ;;  %v2040_v0 = vand.u32 2147483648, %v2028_v41  ;;  %v2038_v47 = vand.u32 2147483647, %v2028_v41  ;;  %vm2034_vm1 = vweird.f32 %v2028_v41 }
 0x379   : > { %v2011_v1 = vmul.f32 %v3234_v32, %v2009_v40  ;;  %v1990_v9 = vadd.f32 %v1989_v23, %v4841_v14  ;;  %vm2016_vm12 = vweird.f32 %v3234_v32  ;;  %3237 = vpow2.f32 %v2940_v38 }
 0x37a   : > { %v1965_v20 = vpop.f32.mrf.mxu0  ;;  %vm2017_vm14 = vmor %vm2015_vm13, %vm2016_vm12  ;;  %v2041_v62 = vor.u32 1.1754944e-38, %v2040_v0  ;;  %vm2039_vm3 = vcmp.eq.f32.partialorder %v2038_v47, 8.507059e+37 }
 0x37b   : > { %v2012_v12 = vsub.f32 1.0, %v2011_v1  ;;  %v2003_v16 = vadd.f32 %v2002_v19, %v1990_v9  ;;  %v2066_v9 = vld [vmem:[#allocation4 + $0x2c] sm:$0xf] }
 0x37d   : > { %v2013_v17 = vmul.f32 %v3234_v32, %v2012_v12  ;;  %v2044_v15 = vadd.f32 %v4173_v6, %v2003_v16 }
 0x37e   : > { %v3236_v42 = vpop.eup %3235 }
 0x37f   : > { %v2030_v2 = vmul.f32 %v3236_v42, %v2028_v41  ;;  %v2014_v18 = vadd.f32 %v3234_v32, %v2013_v17  ;;  %vm2035_vm0 = vweird.f32 %v3236_v42  ;;  %v3238_v63 = vpop.eup %3237 }
 0x380   : > { %v1991_v30 = vpop.f32.mrf.mxu2  ;;  %vm2036_vm2 = vmor %vm2034_vm1, %vm2035_vm0  ;;  %v2135_v45 = vadd.f32 1.0, %v3238_v63 }
 0x381   : > { %v2031_v48 = vsub.f32 1.0, %v2030_v2  ;;  %v2018_v49 = vsel %vm2017_vm14, %v3234_v32, %v2014_v18 }
 0x382   : > { %v2023_v54 = vsel %vm2020_vm15, %v2022_v60, %v2018_v49  ;;  %v2076_v59 = vpop.f32.mrf.mxu0  ;;  %v2147_v17 = vand.u32 2147483648, %v2135_v45  ;;  %vm2141_vm9 = vweird.f32 %v2135_v45  ;;  %v2145_v39 = vand.u32 2147483647, %v2135_v45 }
 0x383   : > { %v2045_v7 = vmul.f32 %v2044_v15, %v2023_v54  ;;  %v2107_v56 = vadd.f32 %v2106_v8, %v2076_v59  ;;  %v2032_v10 = vmul.f32 %v3236_v42, %v2031_v48 }
 0x384   : > { %v2148_v60 = vor.u32 1.1754944e-38, %v2147_v17  ;;  %vm2146_vm11 = vcmp.eq.f32.partialorder %v2145_v39, 8.507059e+37 }
 0x385   : > { %v2046_v19 = vadd.f32 %v2045_v7, %v1977_v4  ;;  %v2939_v24 = vmul.f32 -1.442695, %v2107_v56  ;;  %v2033_v34 = vadd.f32 %v3236_v42, %v2032_v10 }
 0x387   : > { %3239 = vtanh.f32 %v2046_v19  ;;  %v2037_v33 = vsel %vm2036_vm2, %v3236_v42, %v2033_v34  ;;  %v2153_v42 = vunpack.c.l.bf16 %v2066_v9 }
 0x388   : > { %3241 = vpow2.f32 %v2939_v24  ;;  %v2102_v6 = vpop.f32.mrf.mxu2  ;;  %v2042_v28 = vsel %vm2039_vm3, %v2041_v62, %v2037_v33 }
 0x389   : > { %3243 = vrcp.f32 %v2135_v45  ;;  %v2048_v61 = vsub.f32 1.0, %v2042_v28  ;;  %v2050_v27 = vmul.f32 %v2042_v28, %v4290_v35  ;;  %v2151_v12 = vadd.f32 %v4304_v31, %v2102_v6 }
 0x38a   : > { %v2078_v11 = vpop.f32.mrf.mxu0 }
 0x38d   : > { %v3240_v25 = vpop.eup %3239 }
 0x38e   : > { %v3242_v29 = vpop.eup %3241  ;;  %v2049_v3 = vmul.f32 %v3240_v25, %v2048_v61 }
 0x38f   : > { %v2111_v50 = vadd.f32 1.0, %v3242_v29  ;;  %v3244_v13 = vpop.eup %3243 }
 0x390   : > { %v4409_v26 = vadd.f32 %v2050_v27, %v2049_v3  ;;  %v2104_v44 = vpop.f32.mrf.mxu2  ;;  %v2137_v36 = vmul.f32 %v3244_v13, %v2135_v45  ;;  %vm2142_vm8 = vweird.f32 %v3244_v13 }
 0x391   : > { %3245 = vrcp.f32 %v2111_v50  ;;  %v2123_v41 = vand.u32 2147483648, %v2111_v50  ;;  %v2121_v32 = vand.u32 2147483647, %v2111_v50  ;;  %vm2117_vm5 = vweird.f32 %v2111_v50  ;;  %vm2143_vm10 = vmor %vm2141_vm9, %vm2142_vm8 }
 0x392   : > { %v2161_v40 = vpack.c.bf16 %v4409_v26, %v4409_v26  ;;  %v2138_v43 = vsub.f32 1.0, %v2137_v36 }
 0x393   : > { %v2124_v20 = vor.u32 1.1754944e-38, %v2123_v41  ;;  %vm2122_vm7 = vcmp.eq.f32.partialorder %v2121_v32, 8.507059e+37 }
 0x394   : > { %2183 = vmatmul.bf16.vlgmr.msra.gmra.mxu0 %v2161_v40  ;;  %2209 = vmatmul.bf16.vlgmr.msra.gmra.mxu2 %v2161_v40  ;;  %v2139_v23 = vmul.f32 %v3244_v13, %v2138_v43 }
 0x396   : > { %v2140_v16 = vadd.f32 %v3244_v13, %v2139_v23 }
 0x397   : > { %v3246_v55 = vpop.eup %3245 }
 0x398   : > { %v2113_v21 = vmul.f32 %v3246_v55, %v2111_v50  ;;  %vm2118_vm4 = vweird.f32 %v3246_v55  ;;  %v2144_v18 = vsel %vm2143_vm10, %v3244_v13, %v2140_v16 }
 0x399   : > { %vm2119_vm6 = vmor %vm2117_vm5, %vm2118_vm4  ;;  %v2149_v30 = vsel %vm2146_vm11, %v2148_v60, %v2144_v18 }
 0x39a   : > { %v2114_v22 = vsub.f32 1.0, %v2113_v21  ;;  %v2156_v8 = vsub.f32 1.0, %v2149_v30  ;;  %v2158_v49 = vmul.f32 %v2149_v30, %v4319_v52 }
 0x39c   : > { %v2115_v57 = vmul.f32 %v3246_v55, %v2114_v22 }
 0x39e   : > { %v2116_v1 = vadd.f32 %v3246_v55, %v2115_v57 }
 0x3a0   : > { %v2120_v38 = vsel %vm2119_vm6, %v3246_v55, %v2116_v1  ;;  %v3169_v1 = vpop.permute.xlu0 %3168 }
 0x3a1   : > { %v2125_v58 = vsel %vm2122_vm7, %v2124_v20, %v2120_v38 }
 0x3a2   : > { %v2152_v37 = vmul.f32 %v2151_v12, %v2125_v58 }
 0x3a4   : > { %v2154_v2 = vadd.f32 %v2153_v42, %v2152_v37  ;;  %2235 = vmatmul.bf16.vlgmr.msrb.gmra.mxu0 %v2161_v40  ;;  %2261 = vmatmul.bf16.vlgmr.msrb.gmra.mxu2 %v2161_v40 }
 0x3a6   : > { %3247 = vtanh.f32 %v2154_v2 }
 0x3a8   : > { %v3174_v60 = vpop.permute.xlu0 %3173 }
 0x3ac   : > { %v3248_v48 = vpop.eup %3247 }
 0x3ad   : > { %v2157_v31 = vmul.f32 %v3248_v48, %v2156_v8  ;;  %v3171_v8 = vunpack.i.h.bf16 %v3169_v1 }
 0x3af   : > { %v2159_v15 = vadd.f32 %v2158_v49, %v2157_v31  ;;  %v3170_v31 = vunpack.i.l.bf16 %v3169_v1  ;;  %v3175_v49 = vunpack.i.l.bf16 %v3174_v60 }
 0x3b1   : > { %v2160_v4 = vpack.c.bf16 %v2159_v15, %v2159_v15  ;;  %2324 = vst [vmem:[#allocation2] sm:$0xff] %v2159_v15  ;;  %v1802_v15 = vmul.f32 %v3171_v8, %v4290_v35 }
 0x3b3   : > { %2170 = vmatmul.bf16.vlgmr.msrb.gmra.mxu3 %v2160_v4  ;;  %2196 = vmatmul.bf16.vlgmr.msra.gmra.mxu1 %v2160_v4 }
 0x3c3   : > { %2222 = vmatmul.bf16.vlgmr.msra.gmra.mxu3 %v2160_v4  ;;  %2248 = vmatmul.bf16.vlgmr.msrb.gmra.mxu1 %v2160_v4 }
 0x411   : > { %v2184_v54 = vpop.f32.mrf.mxu0 }
 0x417   : > { %v2210_v59 = vpop.f32.mrf.mxu2 }
 0x419   : > { %v2186_v0 = vpop.f32.mrf.mxu0 }
 0x41a   : > { %v2062_v0 = vmul.f32 %v3175_v49, %v4409_v26 }
 0x41f   : > { %v2212_v7 = vpop.f32.mrf.mxu2 }
 0x421   : > { %v2236_v56 = vpop.f32.mrf.mxu0 }
 0x427   : > { %v2262_v10 = vpop.f32.mrf.mxu2 }
 0x429   : > { %v2238_v47 = vpop.f32.mrf.mxu0 }
 0x42f   : > { %v2264_v63 = vpop.f32.mrf.mxu2 }
 0x430   : > { %v2197_v19 = vpop.f32.mrf.mxu1 }
 0x431   : > { %v2198_v24 = vadd.f32 %v2197_v19, %v4840_v5 }
 0x433   : > { %v2211_v34 = vadd.f32 %v2210_v59, %v2198_v24  ;;  %v1542_v59 = vmul.f32 %v3170_v31, %v4182_v53 }
 0x435   : > { %v2942_v52 = vmul.f32 -1.442695, %v2211_v34  ;;  %v1803_v47 = vadd.f32 %v1802_v15, %v1542_v59  ;;  %v2326_v34 = vld [vmem:[#allocation15] sm:$0xff] }
 0x436   : > { %v2171_v33 = vpop.f32.mrf.mxu3 }
 0x437   : > { %3249 = vpow2.f32 %v2942_v52  ;;  %v2172_v62 = vadd.f32 %v2171_v33, %v4839_v46  ;;  %v2063_v19 = vadd.f32 %v2062_v0, %v1803_v47 }
 0x438   : > { %v2199_v45 = vpop.f32.mrf.mxu1 }
 0x439   : > { %v2185_v6 = vadd.f32 %v2184_v54, %v2172_v62 }
 0x43b   : > { %v2941_v28 = vmul.f32 -1.442695, %v2185_v6 }
 0x43d   : > { %v3250_v11 = vpop.eup %3249  ;;  %3251 = vpow2.f32 %v2941_v28 }
 0x43e   : > { %v2288_v61 = vadd.f32 1.0, %v3250_v11  ;;  %v2173_v25 = vpop.f32.mrf.mxu3 }
 0x440   : > { %v2249_v29 = vpop.f32.mrf.mxu1  ;;  %3253 = vrcp.f32 %v2288_v61  ;;  %v2300_v37 = vand.u32 2147483648, %v2288_v61  ;;  %vm2294_vm1 = vweird.f32 %v2288_v61  ;;  %v2298_v2 = vand.u32 2147483647, %v2288_v61 }
 0x441   : > { %v2250_v46 = vadd.f32 %v2249_v29, %v4841_v14  ;;  %v3260_v14 = vld [vmem:[%s4724_s25] ss:$0 sm:$0xff] }
 0x442   : > { %v2301_v30 = vor.u32 1.1754944e-38, %v2300_v37  ;;  %vm2299_vm3 = vcmp.eq.f32.partialorder %v2298_v2, 8.507059e+37 }
 0x443   : > { %v3252_v3 = vpop.eup %3251  ;;  %v2263_v41 = vadd.f32 %v2262_v10, %v2250_v46  ;;  %v3176_v10 = vunpack.i.h.bf16 %v3174_v60 }
 0x444   : > { %v2269_v27 = vadd.f32 1.0, %v3252_v3 }
 0x445   : > { %v2304_v12 = vadd.f32 %v3260_v14, %v2263_v41 }
 0x446   : > { %3255 = vrcp.f32 %v2269_v27  ;;  %v2223_v50 = vpop.f32.mrf.mxu3  ;;  %v3254_v5 = vpop.eup %3253  ;;  %v2281_v22 = vand.u32 2147483648, %v2269_v27  ;;  %v2279_v32 = vand.u32 2147483647, %v2269_v27  ;;  %vm2275_vm13 = vweird.f32 %v2269_v27 }
 0x447   : > { %v2290_v13 = vmul.f32 %v3254_v5, %v2288_v61  ;;  %v2224_v9 = vadd.f32 %v2223_v50, %v4842_v51  ;;  %vm2295_vm0 = vweird.f32 %v3254_v5 }
 0x448   : > { %v2251_v44 = vpop.f32.mrf.mxu1  ;;  %v2282_v38 = vor.u32 1.1754944e-38, %v2281_v22  ;;  %vm2280_vm15 = vcmp.eq.f32.partialorder %v2279_v32, 8.507059e+37  ;;  %vm2296_vm2 = vmor %vm2294_vm1, %vm2295_vm0 }
 0x449   : > { %v2291_v55 = vsub.f32 1.0, %v2290_v13  ;;  %v2237_v42 = vadd.f32 %v2236_v56, %v2224_v9 }
 0x44b   : > { %v2292_v23 = vmul.f32 %v3254_v5, %v2291_v55 }
 0x44c   : > { %v3256_v40 = vpop.eup %3255 }
 0x44d   : > { %v2271_v36 = vmul.f32 %v3256_v40, %v2269_v27  ;;  %vm2276_vm12 = vweird.f32 %v3256_v40  ;;  %v2293_v17 = vadd.f32 %v3254_v5, %v2292_v23 }
 0x44e   : > { %v2225_v21 = vpop.f32.mrf.mxu3  ;;  %vm2277_vm14 = vmor %vm2275_vm13, %vm2276_vm12 }
 0x44f   : > { %v2272_v43 = vsub.f32 1.0, %v2271_v36  ;;  %v2297_v18 = vsel %vm2296_vm2, %v3254_v5, %v2293_v17 }
 0x450   : > { %v2302_v48 = vsel %vm2299_vm3, %v2301_v30, %v2297_v18 }
 0x451   : > { %v2273_v57 = vmul.f32 %v3256_v40, %v2272_v43  ;;  %v2308_v4 = vsub.f32 1.0, %v2302_v48  ;;  %v2310_v56 = vmul.f32 %v2302_v48, %v4409_v26 }
 0x453   : > { %v2274_v20 = vadd.f32 %v3256_v40, %v2273_v57 }
 0x455   : > { %v2278_v58 = vsel %vm2277_vm14, %v3256_v40, %v2274_v20 }
 0x456   : > { %v2283_v16 = vsel %vm2280_vm15, %v2282_v38, %v2278_v58 }
 0x457   : > { %v2305_v39 = vmul.f32 %v2304_v12, %v2283_v16 }
 0x459   : > { %v2306_v51 = vadd.f32 %v2305_v39, %v2237_v42 }
 0x45b   : > { %3257 = vtanh.f32 %v2306_v51 }
 0x461   : > { %v3258_v54 = vpop.eup %3257 }
 0x462   : > { %v2309_v7 = vmul.f32 %v3258_v54, %v2308_v4 }
 0x464   : > { %v2311_v63 = vadd.f32 %v2310_v56, %v2309_v7 }
 0x466   : > { %v2322_v24 = vmul.f32 %v3176_v10, %v2311_v63  ;;  %2325 = vst [vmem:[#allocation3] sm:$0xff] %v2311_v63 }
 0x468   : > { %v2323_v52 = vadd.f32 %v2322_v24, %v2063_v19 }
 0x46a   : > { %v2327_v33 = vadd.f32 %v2326_v34, %v2323_v52 }
 0x46c   : > { %2328 = vst [vmem:[#allocation15] sm:$0xff] %v2327_v33 }
 0x46d PF: > { %s4843_s7 = sadd.s32 4294967295, %s3485_s21   ;;  %s4844_s23 = sld [smem:[#allocation96_spill]] }
 0x46e   : > { %p3102_p1 = scmp.eq.s32.totalorder %s4843_s7, 1  ;;  %s3500_s28 = smov [#allocation15]  }
 0x46f   : > { %s2337_s30 = sshll.u32 %s3500_s28, 4  ;;  %s2338_s30 = int_to_ptr.vmem [resolvable:$true] %s2337_s30 }
 0x473   : > { %s2339_s24 = sshll.u32 %s4844_s23, 4  ;;  %s2340_s24 = int_to_ptr.hbm [resolvable:$true] %s2339_s24 }
 0x474   : > { %3078 = dma.vmem_to_hbm [thread:$0]  (%p3102_p1), %s2338_s30, 128, %s2340_s24, [#allocation9]  }
 0x475   : > { %3460 = dma.done.wait (%p3102_p1), [#allocation9], 128  }
 0x476   : > { %3462 = vsyncadd (%p3102_p1), [#allocation9], 4294967168 }
 0x477 PF: > { %s34_s21 = sadd.s32 1, %s3485_s21   ;;  %s4845_s17 = smov %s3469_s18 }
 0x478   : > { %p31_p0 = scmp.ge.s32.totalorder %s34_s21, 4   ;;  %s4846_s18 = smov %s3473_s19 }
 0x479   : > { %s4847_s19 = smov %s3651_s10  ;;  %s4848_s20 = smov %s3481_s0 }
 0x47a   : > { %s4849_s0 = smov %s4851_s3  ;;  %33 = sbr.rel (!%p31_p0) target bundleno = 17 (0x11), region = 120 }
 0x47f   :  { %2353 = vsyncpa [#allocation8], 1 }
 0x480   :  { %2355 = vsyncpa [#allocation8 + $0x1], 1 }
 0x481   :  { %2356 = vsyncpa [#allocation11], 1 }
 0x482   :  { %2357 = vsyncpa [#allocation14], 1 }
 0x483   :  { %2358 = vsyncpa [#allocation9], 1 }
 0x484   :  { %2360 = vsyncpa [#allocation9 + $0x1], 1 }

</bundles_post_ra>
